<compile_context>
chip_gen: v7x
topology: tpu7x:2x2x1
jax: 0.10.0
libtpu: 0.0.40
codegen_flags: <defaults>
</compile_context>

<pallas_src>
import functools
import math

import jax
import jax.numpy as jnp
from jax.experimental import pallas as pl
from jax.experimental.pallas import tpu as pltpu


NEG_INF = -1e9   # additive bias for masked attention logits (score path is f32)
LN_EPS = 1e-5
VMEM_BUDGET = 24 << 20   # per-step working-set target (safe on v5e/v6e/v7x)


# --------------------------------------------------------------------------
# Small helpers: tiling, VMEM footprint estimates, compiler params.
# --------------------------------------------------------------------------
def _round_up(n, m):
    return ((n + m - 1) // m) * m


def _pick_tile(n, cap, align, cost_fn=None, budget=VMEM_BUDGET):
    """Largest tile dividing n (n must be a multiple of `align`), <= cap unless
    n <= cap, optionally bounded so cost_fn(tile) <= budget."""
    cands = []
    if n <= cap:
        cands.append(n)
    t = min(n, (cap // align) * align)
    while t >= align:
        if n % t == 0:
            cands.append(t)
        t -= align
    cands = sorted(set(cands), reverse=True)
    for t in cands:
        if cost_fn is None or cost_fn(t) <= budget:
            return t
    return cands[-1]


def _vmem_limit(est_bytes):
    # Never below the 32 MiB scoped default of v6e/v7x (and above v5e's 16 MiB),
    # capped at v7x's 64 MiB physical VMEM.
    return int(min(64 << 20, max(32 << 20, 2 * est_bytes)))


def _attn_bytes(bb, lq, lk, d, cross):
    bf, f32 = 2, 4
    wts = 4 * d * d * bf + 10 * d * f32              # wq+wkv+wo + biases + LN
    act_in = 2 * bb * lq * d * bf + (2 * bb * lk * d * bf if cross else 0)
    act_out = 2 * bb * lq * d * bf
    qkv = bb * lq * d * f32 + 4 * bb * lk * d * f32
    scores = 4 * bb * lq * lk * f32                  # bias + s + p + temp
    misc = 3 * bb * lq * d * f32                     # heads concat / out / LN temps
    return act_in + act_out + 2 * wts + qkv + scores + misc


def _ffn_bytes(tm, d, dff):
    bf, f32 = 2, 4
    wts = (d * dff + dff * d) * bf + (dff + 3 * d) * f32
    return 4 * tm * d * bf + 2 * wts + 2 * tm * dff * f32 + 3 * tm * d * f32


def _logits_bytes(tm, tn, d):
    bf, f32 = 2, 4
    return 2 * tm * d * bf + 2 * (d * tn * bf + tn * f32) + 3 * tm * tn * f32


def _pick_attn_batch_block(batch, lq, lk, d, cross, budget=VMEM_BUDGET):
    best = 1
    for bb in range(1, batch + 1):
        if batch % bb == 0 and _attn_bytes(bb, lq, lk, d, cross) <= budget:
            best = bb
    return best


# --------------------------------------------------------------------------
# Shared MHA + residual + LayerNorm body (values already loaded from refs).
# --------------------------------------------------------------------------
def _mha_residual_ln(x, mem, bias, wq, wkv, bq, bkv, wo, bo, gamma, beta,
                     *, nhead, scale, eps):
    Bb, Lq, D = x.shape
    Lk = mem.shape[1]
    Dh = D // nhead

    x_res = x.reshape(Bb * Lq, D).astype(jnp.float32)     # residual path f32
    x_mm = x.reshape(Bb * Lq, D).astype(jnp.bfloat16)
    m_mm = mem.reshape(Bb * Lk, D).astype(jnp.bfloat16)

    # QKV projections (bf16 weights, f32 accumulation).
    q = jnp.dot(x_mm, wq, preferred_element_type=jnp.float32) + bq
    kv = jnp.dot(m_mm, wkv, preferred_element_type=jnp.float32) + bkv
    q = (q * scale).reshape(Bb, Lq, D)
    k = kv[:, :D].reshape(Bb, Lk, D)
    v = kv[:, D:].reshape(Bb, Lk, D)

    # Per-head attention; bias already combined/broadcast -> single add per head.
    # TODO(synk): per-head Dh-wide lane slices still force small relayouts; a
    # head-major batched dot_general would remove them but is riskier to lower.
    head_outs = []
    for h in range(nhead):                                 # static unroll
        sl = slice(h * Dh, (h + 1) * Dh)
        qh = q[:, :, sl].astype(jnp.bfloat16)
        kh = k[:, :, sl].astype(jnp.bfloat16)
        vh = v[:, :, sl].astype(jnp.bfloat16)
        s = jnp.einsum("bqd,bkd->bqk", qh, kh,
                       preferred_element_type=jnp.float32)
        s = s + bias
        m = jnp.max(s, axis=-1, keepdims=True)
        p = jnp.exp(s - m)
        denom = jnp.sum(p, axis=-1, keepdims=True)
        # approx reciprocal on the EUP (inference tolerance; not bit-exact).
        p = p * pl.reciprocal(denom, approx=True)
        oh = jnp.einsum("bqk,bkd->bqd", p.astype(jnp.bfloat16), vh,
                        preferred_element_type=jnp.float32)
        head_outs.append(oh.reshape(Bb * Lq, Dh).astype(jnp.bfloat16))

    # Concatenated heads -> ONE K=D output-projection matmul.
    heads = jnp.concatenate(head_outs, axis=-1)            # [Bb*Lq, D] bf16
    out = jnp.dot(heads, wo, preferred_element_type=jnp.float32) + bo

    # Residual add + LayerNorm in f32.
    z = x_res + out
    mean = jnp.mean(z, axis=-1, keepdims=True)
    var = jnp.mean((z - mean) ** 2, axis=-1, keepdims=True)
    zn = (z - mean) * jax.lax.rsqrt(var + eps)
    return zn * gamma + beta


# --------------------------------------------------------------------------
# Fused self-attention sub-layer kernel (x passed once; K/V derived from x).
# --------------------------------------------------------------------------
def _self_attn_ln_kernel(x_ref, kpm_ref, wq_ref, wkv_ref, bq_ref, bkv_ref,
                         wo_ref, bo_ref, g_ref, b_ref, o_ref,
                         *, nhead, scale, causal, eps):
    Bb, L, D = x_ref.shape
    x = x_ref[...]
    # Combined additive bias, built ONCE before the head loop.
    bias = jnp.broadcast_to(kpm_ref[...], (Bb, L, L))
    if causal:
        rows = jax.lax.broadcasted_iota(jnp.int32, (L, L), 0)
        cols = jax.lax.broadcasted_iota(jnp.int32, (L, L), 1)
        bias = bias + jnp.where(cols > rows, NEG_INF, 0.0)[None, :, :]
    y = _mha_residual_ln(x, x, bias, wq_ref[...], wkv_ref[...], bq_ref[...],
                         bkv_ref[...], wo_ref[...], bo_ref[...],
                         g_ref[...], b_ref[...],
                         nhead=nhead, scale=scale, eps=eps)
    o_ref[...] = y.reshape(Bb, L, D).astype(o_ref.dtype)


def self_attention_block(x, kpm, ap, ln_g, ln_b, nhead, causal):
    """x: [B,L,D] bf16, kpm: [B,1,L] additive f32 key-padding bias."""
    B, L, D = x.shape
    Bb = _pick_attn_batch_block(B, L, L, D, cross=False)
    # TODO(synk): for very long L (v7x, 64 MiB VMEM) an Lq tile grid axis with
    # online softmax would further bound the [Lq,Lk] score footprint.
    kernel = functools.partial(_self_attn_ln_kernel, nhead=nhead,
                               scale=1.0 / math.sqrt(D // nhead),
                               causal=causal, eps=LN_EPS)
    est = _attn_bytes(Bb, L, L, D, cross=False)
    return pl.pallas_call(
        kernel,
        grid=(B // Bb,),
        in_specs=[
            pl.BlockSpec((Bb, L, D), lambda b: (b, 0, 0)),
            pl.BlockSpec((Bb, 1, L), lambda b: (b, 0, 0)),
            pl.BlockSpec((D, D), lambda b: (0, 0)),
            pl.BlockSpec((D, 2 * D), lambda b: (0, 0)),
            pl.BlockSpec((1, D), lambda b: (0, 0)),
            pl.BlockSpec((1, 2 * D), lambda b: (0, 0)),
            pl.BlockSpec((D, D), lambda b: (0, 0)),
            pl.BlockSpec((1, D), lambda b: (0, 0)),
            pl.BlockSpec((1, D), lambda b: (0, 0)),
            pl.BlockSpec((1, D), lambda b: (0, 0)),
        ],
        out_specs=pl.BlockSpec((Bb, L, D), lambda b: (b, 0, 0)),
        out_shape=jax.ShapeDtypeStruct((B, L, D), jnp.bfloat16),
        compiler_params=pltpu.CompilerParams(
            dimension_semantics=("parallel",),
            vmem_limit_bytes=_vmem_limit(est)),
    )(x, kpm, ap["wq"], ap["wkv"], ap["bq"], ap["bkv"], ap["wo"], ap["bo"],
      ln_g, ln_b)


# --------------------------------------------------------------------------
# Fused cross-attention sub-layer kernel (query x, memory mem).
# --------------------------------------------------------------------------
def _cross_attn_ln_kernel(x_ref, mem_ref, kpm_ref, wq_ref, wkv_ref, bq_ref,
                          bkv_ref, wo_ref, bo_ref, g_ref, b_ref, o_ref,
                          *, nhead, scale, eps):
    Bb, Lq, D = x_ref.shape
    Lk = mem_ref.shape[1]
    bias = jnp.broadcast_to(kpm_ref[...], (Bb, Lq, Lk))
    y = _mha_residual_ln(x_ref[...], mem_ref[...], bias, wq_ref[...],
                         wkv_ref[...], bq_ref[...], bkv_ref[...], wo_ref[...],
                         bo_ref[...], g_ref[...], b_ref[...],
                         nhead=nhead, scale=scale, eps=eps)
    o_ref[...] = y.reshape(Bb, Lq, D).astype(o_ref.dtype)


def cross_attention_block(x, mem, kpm, ap, ln_g, ln_b, nhead):
    B, Lq, D = x.shape
    Lk = mem.shape[1]
    Bb = _pick_attn_batch_block(B, Lq, Lk, D, cross=True)
    kernel = functools.partial(_cross_attn_ln_kernel, nhead=nhead,
                               scale=1.0 / math.sqrt(D // nhead), eps=LN_EPS)
    est = _attn_bytes(Bb, Lq, Lk, D, cross=True)
    return pl.pallas_call(
        kernel,
        grid=(B // Bb,),
        in_specs=[
            pl.BlockSpec((Bb, Lq, D), lambda b: (b, 0, 0)),
            pl.BlockSpec((Bb, Lk, D), lambda b: (b, 0, 0)),
            pl.BlockSpec((Bb, 1, Lk), lambda b: (b, 0, 0)),
            pl.BlockSpec((D, D), lambda b: (0, 0)),
            pl.BlockSpec((D, 2 * D), lambda b: (0, 0)),
            pl.BlockSpec((1, D), lambda b: (0, 0)),
            pl.BlockSpec((1, 2 * D), lambda b: (0, 0)),
            pl.BlockSpec((D, D), lambda b: (0, 0)),
            pl.BlockSpec((1, D), lambda b: (0, 0)),
            pl.BlockSpec((1, D), lambda b: (0, 0)),
            pl.BlockSpec((1, D), lambda b: (0, 0)),
        ],
        out_specs=pl.BlockSpec((Bb, Lq, D), lambda b: (b, 0, 0)),
        out_shape=jax.ShapeDtypeStruct((B, Lq, D), jnp.bfloat16),
        compiler_params=pltpu.CompilerParams(
            dimension_semantics=("parallel",),
            vmem_limit_bytes=_vmem_limit(est)),
    )(x, mem, kpm, ap["wq"], ap["wkv"], ap["bq"], ap["bkv"], ap["wo"],
      ap["bo"], ln_g, ln_b)


# --------------------------------------------------------------------------
# Fused feed-forward sub-layer: relu(x@W1+b1)@W2+b2 + residual + LayerNorm.
# --------------------------------------------------------------------------
def _ffn_block_kernel(x_ref, w1_ref, b1_ref, w2_ref, b2_ref, g_ref, b_ref,
                      o_ref, *, eps):
    x = x_ref[...]                                          # bf16
    h = jnp.dot(x, w1_ref[...], preferred_element_type=jnp.float32) + b1_ref[...]
    h = jnp.maximum(h, 0.0)
    y = jnp.dot(h.astype(jnp.bfloat16), w2_ref[...],
                preferred_element_type=jnp.float32) + b2_ref[...]
    z = x.astype(jnp.float32) + y
    mean = jnp.mean(z, axis=-1, keepdims=True)
    var = jnp.mean((z - mean) ** 2, axis=-1, keepdims=True)
    zn = (z - mean) * jax.lax.rsqrt(var + eps)
    o_ref[...] = (zn * g_ref[...] + b_ref[...]).astype(o_ref.dtype)


def ffn_block(x, lp, ln_g, ln_b):
    B, L, D = x.shape
    dff = lp["ff_w1"].shape[1]
    N = B * L
    xf = x.reshape(N, D)
    Np = _round_up(N, 16)
    if Np != N:
        xf = jnp.pad(xf, ((0, Np - N), (0, 0)))
    tm = _pick_tile(Np, 1024, 16, cost_fn=lambda t: _ffn_bytes(t, D, dff))
    out = pl.pallas_call(
        functools.partial(_ffn_block_kernel, eps=LN_EPS),
        grid=(Np // tm,),
        in_specs=[
            pl.BlockSpec((tm, D), lambda i: (i, 0)),
            pl.BlockSpec((D, dff), lambda i: (0, 0)),
            pl.BlockSpec((1, dff), lambda i: (0, 0)),
            pl.BlockSpec((dff, D), lambda i: (0, 0)),
            pl.BlockSpec((1, D), lambda i: (0, 0)),
            pl.BlockSpec((1, D), lambda i: (0, 0)),
            pl.BlockSpec((1, D), lambda i: (0, 0)),
        ],
        out_specs=pl.BlockSpec((tm, D), lambda i: (i, 0)),
        out_shape=jax.ShapeDtypeStruct((Np, D), jnp.bfloat16),
        compiler_params=pltpu.CompilerParams(
            dimension_semantics=("parallel",),
            vmem_limit_bytes=_vmem_limit(_ffn_bytes(tm, D, dff))),
    )(xf, lp["ff_w1"], lp["ff_b1"], lp["ff_w2"], lp["ff_b2"], ln_g, ln_b)
    if Np != N:
        out = out[:N]
    return out.reshape(B, L, D)


# --------------------------------------------------------------------------
# Final vocab projection (weights pre-padded to 128 lanes & pre-cast to bf16).
# Vocab axis is the OUTER grid axis: the W column block stays resident while
# activation row tiles stream.
# --------------------------------------------------------------------------
def _logits_kernel(x_ref, w_ref, b_ref, o_ref):
    o_ref[...] = (jnp.dot(x_ref[...], w_ref[...],
                          preferred_element_type=jnp.float32)
                  + b_ref[...]).astype(o_ref.dtype)


def output_projection(x, w_pad, b_pad, v_out):
    N, D = x.shape
    Vp = w_pad.shape[1]
    Np = _round_up(N, 16)
    if Np != N:
        x = jnp.pad(x, ((0, Np - N), (0, 0)))
    tn = _pick_tile(Vp, 512, 128)
    tm = _pick_tile(Np, 1024, 16, cost_fn=lambda t: _logits_bytes(t, tn, D))
    out = pl.pallas_call(
        _logits_kernel,
        grid=(Vp // tn, Np // tm),            # vocab outer, rows inner
        in_specs=[
            pl.BlockSpec((tm, D), lambda j, i: (i, 0)),
            pl.BlockSpec((D, tn), lambda j, i: (0, j)),
            pl.BlockSpec((1, tn), lambda j, i: (0, j)),
        ],
        out_specs=pl.BlockSpec((tm, tn), lambda j, i: (i, j)),
        out_shape=jax.ShapeDtypeStruct((Np, Vp), jnp.float32),
        compiler_params=pltpu.CompilerParams(
            dimension_semantics=("parallel", "parallel"),
            vmem_limit_bytes=_vmem_limit(_logits_bytes(tm, tn, D))),
    )(x, w_pad, b_pad)
    return out[:N, :v_out]


# --------------------------- model building blocks -------------------------


def encoder_layer(src, src_kpm, lp, nhead):
    src = self_attention_block(src, src_kpm, lp["self_attn"],
                               lp["ln1_g"], lp["ln1_b"], nhead, causal=False)
    src = ffn_block(src, lp, lp["ln2_g"], lp["ln2_b"])
    return src


def decoder_layer(enc, tgt, src_kpm, tgt_kpm, lp, nhead):
    tgt = self_attention_block(tgt, tgt_kpm, lp["self_attn"],
                               lp["ln1_g"], lp["ln1_b"], nhead, causal=True)
    tgt = cross_attention_block(tgt, enc, src_kpm, lp["cross_attn"],
                                lp["ln2_g"], lp["ln2_b"], nhead)
    tgt = ffn_block(tgt, lp, lp["ln3_g"], lp["ln3_b"])
    return tgt


def translation_transformer_forward(params, source, target, cfg):
    """source: [B, S_src] int32, target: [B, S_tgt] int32 -> [B, S_tgt, n_tokens_tgt]."""
    B, S_src = source.shape
    _, S_tgt = target.shape
    nhead = cfg["n_heads"]
    V = cfg["n_tokens_tgt"]

    # Additive key-padding biases (0 / -1e9); the O(B*H*L^2) bias array is never
    # materialized in HBM -- the causal mask is built in-kernel from iota.
    # NOTE: a fully-padded key row would give a uniform distribution instead of
    # NaN (callers never produce one); safe because the score path stays f32.
    src_kpm = jnp.where(source == cfg["src_pad_idx"], NEG_INF, 0.0
                        ).astype(jnp.float32).reshape(B, 1, S_src)
    tgt_kpm = jnp.where(target == cfg["tgt_pad_idx"], NEG_INF, 0.0
                        ).astype(jnp.float32).reshape(B, 1, S_tgt)

    # TODO(synk): embedding gathers stay in plain JAX (no clean Pallas gather here).
    src_emb = params["src_emb"][source] + params["src_pos_emb"][:S_src][None]
    tgt_emb = params["tgt_emb"][target] + params["tgt_pos_emb"][:S_tgt][None]

    # TODO(synk): dropout layers omitted (identity, inference semantics).
    y = src_emb.astype(jnp.bfloat16)          # bf16 activations between kernels
    for lp in params["enc_layers"]:
        y = encoder_layer(y, src_kpm, lp, nhead)
    enc = y

    y = tgt_emb.astype(jnp.bfloat16)
    for lp in params["dec_layers"]:
        y = decoder_layer(enc, y, src_kpm, tgt_kpm, lp, nhead)

    D = y.shape[-1]
    logits = output_projection(y.reshape(B * S_tgt, D),
                               params["out_w_pad"], params["out_b_pad"], V)
    return logits.reshape(B, S_tgt, V)


# ------------------------------ parameter init ------------------------------


def _init_params(key, cfg):
    d, dff, nl = cfg["dim_embedding"], cfg["dim_hidden"], cfg["n_layers"]
    V = cfg["n_tokens_tgt"]
    ks = iter(jax.random.split(key, 512))

    def unif(shape, bound):
        return jax.random.uniform(next(ks), shape, jnp.float32, -bound, bound)

    def nrm(shape):
        return jax.random.normal(next(ks), shape, jnp.float32)

    def mha():
        bd = 1.0 / math.sqrt(d)
        in_w = unif((d, 3 * d), bd)
        in_b = unif((3 * d,), bd)
        return {
            # Matmul weights stored bf16; in_proj pre-split into Q vs KV so no
            # per-forward slicing / HBM copies.
            "wq": in_w[:, :d].astype(jnp.bfloat16),
            "wkv": in_w[:, d:].astype(jnp.bfloat16),
            "bq": in_b[:d].reshape(1, d),
            "bkv": in_b[d:].reshape(1, 2 * d),
            "wo": unif((d, d), bd).astype(jnp.bfloat16),
            "bo": unif((d,), bd).reshape(1, d),
        }

    def ffn():
        b1, b2 = 1.0 / math.sqrt(d), 1.0 / math.sqrt(dff)
        return {
            "ff_w1": unif((d, dff), b1).astype(jnp.bfloat16),
            "ff_b1": unif((dff,), b1).reshape(1, dff),
            "ff_w2": unif((dff, d), b2).astype(jnp.bfloat16),
            "ff_b2": unif((d,), b2).reshape(1, d),
        }

    def ln():
        return jnp.ones((1, d), jnp.float32), jnp.zeros((1, d), jnp.float32)

    params = {
        "src_emb": nrm((cfg["n_tokens_src"], d)).at[cfg["src_pad_idx"]].set(0.0),
        "tgt_emb": nrm((V, d)).at[cfg["tgt_pad_idx"]].set(0.0),
        "src_pos_emb": nrm((256, d)),
        "tgt_pos_emb": nrm((256, d)),
        "enc_layers": [],
        "dec_layers": [],
    }
    for _ in range(nl):
        lp = {"self_attn": mha()}
        lp.update(ffn())
        lp["ln1_g"], lp["ln1_b"] = ln()
        lp["ln2_g"], lp["ln2_b"] = ln()
        params["enc_layers"].append(lp)
    for _ in range(nl):
        lp = {"self_attn": mha(), "cross_attn": mha()}
        lp.update(ffn())
        lp["ln1_g"], lp["ln1_b"] = ln()
        lp["ln2_g"], lp["ln2_b"] = ln()
        lp["ln3_g"], lp["ln3_b"] = ln()
        params["dec_layers"].append(lp)

    # Vocab projection: pre-padded to a 128-lane multiple and pre-cast to bf16
    # once at init (not inside the jitted forward).
    bo = 1.0 / math.sqrt(d)
    Vp = max(128, _round_up(V, 128))
    out_w = unif((d, V), bo)
    out_b = unif((V,), bo)
    params["out_w_pad"] = jnp.zeros((d, Vp), jnp.bfloat16).at[:, :V].set(
        out_w.astype(jnp.bfloat16))
    params["out_b_pad"] = jnp.zeros((1, Vp), jnp.float32).at[0, :V].set(out_b)
    return params


# ----------------------------------- main -----------------------------------


if __name__ == "__main__":
    cfg = dict(
        n_tokens_src=50,
        n_tokens_tgt=48,
        n_heads=4,
        dim_embedding=32,
        dim_hidden=64,
        n_layers=2,
        src_pad_idx=0,
        tgt_pad_idx=0,
    )

    key = jax.random.PRNGKey(0)
    kp, ksrc, ktgt = jax.random.split(key, 3)
    params = _init_params(kp, cfg)

    B, S_src, S_tgt = 2, 8, 8
    source = jax.random.randint(ksrc, (B, S_src), 1, cfg["n_tokens_src"], jnp.int32)
    target = jax.random.randint(ktgt, (B, S_tgt), 1, cfg["n_tokens_tgt"], jnp.int32)
    # introduce some padding at sequence tails (never a fully-masked attention row)
    source = source.at[1, -2:].set(cfg["src_pad_idx"])
    target = target.at[1, -2:].set(cfg["tgt_pad_idx"])

    fwd = jax.jit(functools.partial(translation_transformer_forward, cfg=cfg))
    logits = fwd(params, source, target)
    logits = jax.block_until_ready(logits)

    assert logits.shape == (B, S_tgt, cfg["n_tokens_tgt"]), logits.shape
    assert bool(jnp.all(jnp.isfinite(logits)))
    print("KERNEL_OK")
</pallas_src>

<mosaic_0001>
module attributes {stable_mosaic.version = 11 : i64} {
  func.func @_ffn_block_kernel(%arg0: i32, %arg1: memref<16x32xbf16, #tpu.memory_space<vmem>>, %arg2: memref<32x64xbf16, #tpu.memory_space<vmem>>, %arg3: memref<1x64xf32, #tpu.memory_space<vmem>>, %arg4: memref<64x32xbf16, #tpu.memory_space<vmem>>, %arg5: memref<1x32xf32, #tpu.memory_space<vmem>>, %arg6: memref<1x32xf32, #tpu.memory_space<vmem>>, %arg7: memref<1x32xf32, #tpu.memory_space<vmem>>, %arg8: memref<16x32xbf16, #tpu.memory_space<vmem>>) attributes {dimension_semantics = [#tpu.dimension_semantics<parallel>], iteration_bounds = array<i64: 1>, scalar_prefetch = 0 : i64, scratch_operands = 0 : i64, tpu.core_type = #tpu.core_type<tc>, window_params = [{transform_indices = @transform_0, window_bounds = array<i64: 16, 32>}, {pipeline_mode = #tpu.pipeline_mode<synchronous>, transform_indices = @transform_1, window_bounds = array<i64: 32, 64>}, {pipeline_mode = #tpu.pipeline_mode<synchronous>, transform_indices = @transform_2, window_bounds = array<i64: 1, 64>}, {pipeline_mode = #tpu.pipeline_mode<synchronous>, transform_indices = @transform_3, window_bounds = array<i64: 64, 32>}, {pipeline_mode = #tpu.pipeline_mode<synchronous>, transform_indices = @transform_4, window_bounds = array<i64: 1, 32>}, {pipeline_mode = #tpu.pipeline_mode<synchronous>, transform_indices = @transform_5, window_bounds = array<i64: 1, 32>}, {pipeline_mode = #tpu.pipeline_mode<synchronous>, transform_indices = @transform_6, window_bounds = array<i64: 1, 32>}, {transform_indices = @transform_7, window_bounds = array<i64: 16, 32>}]} {
    %c0 = arith.constant 0 : index
    %c0_0 = arith.constant 0 : index
    %0 = vector.load %arg1[%c0, %c0_0] : memref<16x32xbf16, #tpu.memory_space<vmem>>, vector<16x32xbf16>
    %c0_1 = arith.constant 0 : index
    %c0_2 = arith.constant 0 : index
    %1 = vector.load %arg2[%c0_1, %c0_2] : memref<32x64xbf16, #tpu.memory_space<vmem>>, vector<32x64xbf16>
    %cst = arith.constant dense<0.000000e+00> : vector<16x64xf32>
    %2 = tpu.matmul %0, %1, %cst {dimension_numbers = #tpu.dot_dimension_numbers<[1], [0], [0], [1], [0, 0, 1, 1], [], []>} : vector<16x32xbf16>, vector<32x64xbf16>, vector<16x64xf32> -> vector<16x64xf32>
    %c0_3 = arith.constant 0 : index
    %c0_4 = arith.constant 0 : index
    %3 = vector.load %arg3[%c0_3, %c0_4] : memref<1x64xf32, #tpu.memory_space<vmem>>, vector<1x64xf32>
    %4 = vector.broadcast %3 : vector<1x64xf32> to vector<16x64xf32>
    %5 = arith.addf %2, %4 : vector<16x64xf32>
    %cst_5 = arith.constant 0.000000e+00 : f32
    %6 = vector.broadcast %cst_5 : f32 to vector<16x64xf32>
    %7 = arith.maximumf %5, %6 : vector<16x64xf32>
    %8 = arith.truncf %7 : vector<16x64xf32> to vector<16x64xbf16>
    %c0_6 = arith.constant 0 : index
    %c0_7 = arith.constant 0 : index
    %9 = vector.load %arg4[%c0_6, %c0_7] : memref<64x32xbf16, #tpu.memory_space<vmem>>, vector<64x32xbf16>
    %cst_8 = arith.constant dense<0.000000e+00> : vector<16x32xf32>
    %10 = tpu.matmul %8, %9, %cst_8 {dimension_numbers = #tpu.dot_dimension_numbers<[1], [0], [0], [1], [0, 0, 1, 1], [], []>} : vector<16x64xbf16>, vector<64x32xbf16>, vector<16x32xf32> -> vector<16x32xf32>
    %c0_9 = arith.constant 0 : index
    %c0_10 = arith.constant 0 : index
    %11 = vector.load %arg5[%c0_9, %c0_10] : memref<1x32xf32, #tpu.memory_space<vmem>>, vector<1x32xf32>
    %12 = vector.broadcast %11 : vector<1x32xf32> to vector<16x32xf32>
    %13 = arith.addf %10, %12 : vector<16x32xf32>
    %14 = arith.extf %0 : vector<16x32xbf16> to vector<16x32xf32>
    %15 = arith.addf %14, %13 : vector<16x32xf32>
    %cst_11 = arith.constant dense<0.000000e+00> : vector<16xf32>
    %16 = vector.multi_reduction <add>, %15, %cst_11 [1] : vector<16x32xf32> to vector<16xf32>
    %17 = vector.shape_cast %16 : vector<16xf32> to vector<16x1xf32>
    %cst_12 = arith.constant 3.200000e+01 : f32
    %18 = vector.broadcast %cst_12 : f32 to vector<16x1xf32>
    %19 = arith.divf %17, %18 : vector<16x1xf32>
    %20 = vector.broadcast %19 : vector<16x1xf32> to vector<16x32xf32>
    %21 = arith.subf %15, %20 : vector<16x32xf32>
    %22 = arith.mulf %21, %21 : vector<16x32xf32>
    %cst_13 = arith.constant dense<0.000000e+00> : vector<16xf32>
    %23 = vector.multi_reduction <add>, %22, %cst_13 [1] : vector<16x32xf32> to vector<16xf32>
    %24 = vector.shape_cast %23 : vector<16xf32> to vector<16x1xf32>
    %cst_14 = arith.constant 3.200000e+01 : f32
    %25 = vector.broadcast %cst_14 : f32 to vector<16x1xf32>
    %26 = arith.divf %24, %25 : vector<16x1xf32>
    %27 = vector.broadcast %19 : vector<16x1xf32> to vector<16x32xf32>
    %28 = arith.subf %15, %27 : vector<16x32xf32>
    %cst_15 = arith.constant 9.99999974E-6 : f32
    %29 = vector.broadcast %cst_15 : f32 to vector<16x1xf32>
    %30 = arith.addf %26, %29 : vector<16x1xf32>
    %31 = math.rsqrt %30 : vector<16x1xf32>
    %32 = vector.broadcast %31 : vector<16x1xf32> to vector<16x32xf32>
    %33 = arith.mulf %28, %32 : vector<16x32xf32>
    %c0_16 = arith.constant 0 : index
    %c0_17 = arith.constant 0 : index
    %34 = vector.load %arg6[%c0_16, %c0_17] : memref<1x32xf32, #tpu.memory_space<vmem>>, vector<1x32xf32>
    %35 = vector.broadcast %34 : vector<1x32xf32> to vector<16x32xf32>
    %36 = arith.mulf %33, %35 : vector<16x32xf32>
    %c0_18 = arith.constant 0 : index
    %c0_19 = arith.constant 0 : index
    %37 = vector.load %arg7[%c0_18, %c0_19] : memref<1x32xf32, #tpu.memory_space<vmem>>, vector<1x32xf32>
    %38 = vector.broadcast %37 : vector<1x32xf32> to vector<16x32xf32>
    %39 = arith.addf %36, %38 : vector<16x32xf32>
    %40 = arith.truncf %39 : vector<16x32xf32> to vector<16x32xbf16>
    %c0_20 = arith.constant 0 : index
    %c0_21 = arith.constant 0 : index
    %41 = vector.load %arg8[%c0_20, %c0_21] : memref<16x32xbf16, #tpu.memory_space<vmem>>, vector<16x32xbf16>
    tpu.vector_store %arg8[%c0_20, %c0_21], %40 {strides = array<i32>} : memref<16x32xbf16, #tpu.memory_space<vmem>>, vector<16x32xbf16>,
    return
  }
  func.func @transform_0(%arg0: i32) -> (i32, i32) {
    %c0_i32 = arith.constant 0 : i32
    %c0_i32_0 = arith.constant 0 : i32
    return %arg0, %c0_i32 : i32, i32
  }
  func.func @transform_1(%arg0: i32) -> (i32, i32) {
    %c0_i32 = arith.constant 0 : i32
    %c0_i32_0 = arith.constant 0 : i32
    %c0_i32_1 = arith.constant 0 : i32
    return %c0_i32, %c0_i32_0 : i32, i32
  }
  func.func @transform_2(%arg0: i32) -> (i32, i32) {
    %c0_i32 = arith.constant 0 : i32
    %c0_i32_0 = arith.constant 0 : i32
    %c0_i32_1 = arith.constant 0 : i32
    return %c0_i32, %c0_i32_0 : i32, i32
  }
  func.func @transform_3(%arg0: i32) -> (i32, i32) {
    %c0_i32 = arith.constant 0 : i32
    %c0_i32_0 = arith.constant 0 : i32
    %c0_i32_1 = arith.constant 0 : i32
    return %c0_i32, %c0_i32_0 : i32, i32
  }
  func.func @transform_4(%arg0: i32) -> (i32, i32) {
    %c0_i32 = arith.constant 0 : i32
    %c0_i32_0 = arith.constant 0 : i32
    %c0_i32_1 = arith.constant 0 : i32
    return %c0_i32, %c0_i32_0 : i32, i32
  }
  func.func @transform_5(%arg0: i32) -> (i32, i32) {
    %c0_i32 = arith.constant 0 : i32
    %c0_i32_0 = arith.constant 0 : i32
    %c0_i32_1 = arith.constant 0 : i32
    return %c0_i32, %c0_i32_0 : i32, i32
  }
  func.func @transform_6(%arg0: i32) -> (i32, i32) {
    %c0_i32 = arith.constant 0 : i32
    %c0_i32_0 = arith.constant 0 : i32
    %c0_i32_1 = arith.constant 0 : i32
    return %c0_i32, %c0_i32_0 : i32, i32
  }
  func.func @transform_7(%arg0: i32) -> (i32, i32) {
    %c0_i32 = arith.constant 0 : i32
    %c0_i32_0 = arith.constant 0 : i32
    return %arg0, %c0_i32 : i32, i32
  }
}

module attributes {stable_mosaic.version = 11 : i64} {
  func.func @_self_attn_ln_kernel(%arg0: i32, %arg1: memref<2x8x32xbf16, #tpu.memory_space<vmem>>, %arg2: memref<2x1x8xf32, #tpu.memory_space<vmem>>, %arg3: memref<32x32xbf16, #tpu.memory_space<vmem>>, %arg4: memref<32x64xbf16, #tpu.memory_space<vmem>>, %arg5: memref<1x32xf32, #tpu.memory_space<vmem>>, %arg6: memref<1x64xf32, #tpu.memory_space<vmem>>, %arg7: memref<32x32xbf16, #tpu.memory_space<vmem>>, %arg8: memref<1x32xf32, #tpu.memory_space<vmem>>, %arg9: memref<1x32xf32, #tpu.memory_space<vmem>>, %arg10: memref<1x32xf32, #tpu.memory_space<vmem>>, %arg11: memref<2x8x32xbf16, #tpu.memory_space<vmem>>) attributes {dimension_semantics = [#tpu.dimension_semantics<parallel>], iteration_bounds = array<i64: 1>, scalar_prefetch = 0 : i64, scratch_operands = 0 : i64, tpu.core_type = #tpu.core_type<tc>, window_params = [{transform_indices = @transform_0, window_bounds = array<i64: 2, 8, 32>}, {transform_indices = @transform_1, window_bounds = array<i64: 2, 1, 8>}, {pipeline_mode = #tpu.pipeline_mode<synchronous>, transform_indices = @transform_2, window_bounds = array<i64: 32, 32>}, {pipeline_mode = #tpu.pipeline_mode<synchronous>, transform_indices = @transform_3, window_bounds = array<i64: 32, 64>}, {pipeline_mode = #tpu.pipeline_mode<synchronous>, transform_indices = @transform_4, window_bounds = array<i64: 1, 32>}, {pipeline_mode = #tpu.pipeline_mode<synchronous>, transform_indices = @transform_5, window_bounds = array<i64: 1, 64>}, {pipeline_mode = #tpu.pipeline_mode<synchronous>, transform_indices = @transform_6, window_bounds = array<i64: 32, 32>}, {pipeline_mode = #tpu.pipeline_mode<synchronous>, transform_indices = @transform_7, window_bounds = array<i64: 1, 32>}, {pipeline_mode = #tpu.pipeline_mode<synchronous>, transform_indices = @transform_8, window_bounds = array<i64: 1, 32>}, {pipeline_mode = #tpu.pipeline_mode<synchronous>, transform_indices = @transform_9, window_bounds = array<i64: 1, 32>}, {transform_indices = @transform_10, window_bounds = array<i64: 2, 8, 32>}]} {
    %c0 = arith.constant 0 : index
    %c0_0 = arith.constant 0 : index
    %c0_1 = arith.constant 0 : index
    %0 = vector.load %arg1[%c0, %c0_0, %c0_1] : memref<2x8x32xbf16, #tpu.memory_space<vmem>>, vector<2x8x32xbf16>
    %c0_2 = arith.constant 0 : index
    %c0_3 = arith.constant 0 : index
    %c0_4 = arith.constant 0 : index
    %1 = vector.load %arg2[%c0_2, %c0_3, %c0_4] : memref<2x1x8xf32, #tpu.memory_space<vmem>>, vector<2x1x8xf32>
    %2 = vector.shape_cast %1 : vector<2x1x8xf32> to vector<2x1x8xf32>
    %3 = vector.broadcast %2 : vector<2x1x8xf32> to vector<2x8x8xf32>
    %c0_5 = arith.constant 0 : index
    %c0_6 = arith.constant 0 : index
    %4 = vector.load %arg3[%c0_5, %c0_6] : memref<32x32xbf16, #tpu.memory_space<vmem>>, vector<32x32xbf16>
    %c0_7 = arith.constant 0 : index
    %c0_8 = arith.constant 0 : index
    %5 = vector.load %arg4[%c0_7, %c0_8] : memref<32x64xbf16, #tpu.memory_space<vmem>>, vector<32x64xbf16>
    %c0_9 = arith.constant 0 : index
    %c0_10 = arith.constant 0 : index
    %6 = vector.load %arg5[%c0_9, %c0_10] : memref<1x32xf32, #tpu.memory_space<vmem>>, vector<1x32xf32>
    %c0_11 = arith.constant 0 : index
    %c0_12 = arith.constant 0 : index
    %7 = vector.load %arg6[%c0_11, %c0_12] : memref<1x64xf32, #tpu.memory_space<vmem>>, vector<1x64xf32>
    %c0_13 = arith.constant 0 : index
    %c0_14 = arith.constant 0 : index
    %8 = vector.load %arg7[%c0_13, %c0_14] : memref<32x32xbf16, #tpu.memory_space<vmem>>, vector<32x32xbf16>
    %c0_15 = arith.constant 0 : index
    %c0_16 = arith.constant 0 : index
    %9 = vector.load %arg8[%c0_15, %c0_16] : memref<1x32xf32, #tpu.memory_space<vmem>>, vector<1x32xf32>
    %c0_17 = arith.constant 0 : index
    %c0_18 = arith.constant 0 : index
    %10 = vector.load %arg9[%c0_17, %c0_18] : memref<1x32xf32, #tpu.memory_space<vmem>>, vector<1x32xf32>
    %c0_19 = arith.constant 0 : index
    %c0_20 = arith.constant 0 : index
    %11 = vector.load %arg10[%c0_19, %c0_20] : memref<1x32xf32, #tpu.memory_space<vmem>>, vector<1x32xf32>
    %12 = vector.shape_cast %0 : vector<2x8x32xbf16> to vector<16x32xbf16>
    %13 = arith.extf %12 : vector<16x32xbf16> to vector<16x32xf32>
    %14 = vector.shape_cast %0 : vector<2x8x32xbf16> to vector<16x32xbf16>
    %15 = vector.shape_cast %0 : vector<2x8x32xbf16> to vector<16x32xbf16>
    %cst = arith.constant dense<0.000000e+00> : vector<16x32xf32>
    %16 = tpu.matmul %14, %4, %cst {dimension_numbers = #tpu.dot_dimension_numbers<[1], [0], [0], [1], [0, 0, 1, 1], [], []>} : vector<16x32xbf16>, vector<32x32xbf16>, vector<16x32xf32> -> vector<16x32xf32>
    %17 = vector.broadcast %6 : vector<1x32xf32> to vector<16x32xf32>
    %18 = arith.addf %16, %17 : vector<16x32xf32>
    %cst_21 = arith.constant dense<0.000000e+00> : vector<16x64xf32>
    %19 = tpu.matmul %15, %5, %cst_21 {dimension_numbers = #tpu.dot_dimension_numbers<[1], [0], [0], [1], [0, 0, 1, 1], [], []>} : vector<16x32xbf16>, vector<32x64xbf16>, vector<16x64xf32> -> vector<16x64xf32>
    %20 = vector.broadcast %7 : vector<1x64xf32> to vector<16x64xf32>
    %21 = arith.addf %19, %20 : vector<16x64xf32>
    %cst_22 = arith.constant 0.353553385 : f32
    %22 = vector.broadcast %cst_22 : f32 to vector<16x32xf32>
    %23 = arith.mulf %18, %22 : vector<16x32xf32>
    %24 = vector.shape_cast %23 : vector<16x32xf32> to vector<2x8x32xf32>
    %25 = vector.extract_strided_slice %21 {offsets = [0, 0], sizes = [16, 32], strides = [1, 1]} : vector<16x64xf32> to vector<16x32xf32>
    %26 = vector.shape_cast %25 : vector<16x32xf32> to vector<2x8x32xf32>
    %27 = vector.extract_strided_slice %21 {offsets = [0, 32], sizes = [16, 32], strides = [1, 1]} : vector<16x64xf32> to vector<16x32xf32>
    %28 = vector.shape_cast %27 : vector<16x32xf32> to vector<2x8x32xf32>
    %29 = vector.extract_strided_slice %24 {offsets = [0, 0, 0], sizes = [2, 8, 8], strides = [1, 1, 1]} : vector<2x8x32xf32> to vector<2x8x8xf32>
    %30 = arith.truncf %29 : vector<2x8x8xf32> to vector<2x8x8xbf16>
    %31 = vector.extract_strided_slice %26 {offsets = [0, 0, 0], sizes = [2, 8, 8], strides = [1, 1, 1]} : vector<2x8x32xf32> to vector<2x8x8xf32>
    %32 = arith.truncf %31 : vector<2x8x8xf32> to vector<2x8x8xbf16>
    %33 = vector.extract_strided_slice %28 {offsets = [0, 0, 0], sizes = [2, 8, 8], strides = [1, 1, 1]} : vector<2x8x32xf32> to vector<2x8x8xf32>
    %34 = arith.truncf %33 : vector<2x8x8xf32> to vector<2x8x8xbf16>
    "tpu.trace_start"() <{level = 10 : i32, message = "bqd,bkd->bqk"}> : () -> ()
    %cst_23 = arith.constant dense<0.000000e+00> : vector<2x8x8xf32>
    %35 = tpu.matmul %30, %32, %cst_23 {dimension_numbers = #tpu.dot_dimension_numbers<[2], [2], [1], [1], [0, 0, 0, 1, 1, 1], [0], [0]>} : vector<2x8x8xbf16>, vector<2x8x8xbf16>, vector<2x8x8xf32> -> vector<2x8x8xf32>
    "tpu.trace_stop"() : () -> ()
    %36 = arith.addf %35, %3 : vector<2x8x8xf32>
    %cst_24 = arith.constant dense<0xFF800000> : vector<2x8xf32>
    %37 = vector.multi_reduction <maximumf>, %36, %cst_24 [2] : vector<2x8x8xf32> to vector<2x8xf32>
    %38 = vector.shape_cast %37 : vector<2x8xf32> to vector<2x8x1xf32>
    %39 = vector.broadcast %38 : vector<2x8x1xf32> to vector<2x8x8xf32>
    %40 = arith.subf %36, %39 : vector<2x8x8xf32>
    %41 = math.exp %40 : vector<2x8x8xf32>
    %cst_25 = arith.constant dense<0.000000e+00> : vector<2x8xf32>
    %42 = vector.multi_reduction <add>, %41, %cst_25 [2] : vector<2x8x8xf32> to vector<2x8xf32>
    %43 = vector.shape_cast %42 : vector<2x8xf32> to vector<2x8x1xf32>
    %44 = tpu.reciprocal %43 {approx = true} : vector<2x8x1xf32> -> vector<2x8x1xf32>
    %45 = vector.broadcast %44 : vector<2x8x1xf32> to vector<2x8x8xf32>
    %46 = arith.mulf %41, %45 : vector<2x8x8xf32>
    %47 = arith.truncf %46 : vector<2x8x8xf32> to vector<2x8x8xbf16>
    "tpu.trace_start"() <{level = 10 : i32, message = "bqk,bkd->bqd"}> : () -> ()
    %cst_26 = arith.constant dense<0.000000e+00> : vector<2x8x8xf32>
    %48 = tpu.matmul %47, %34, %cst_26 {dimension_numbers = #tpu.dot_dimension_numbers<[2], [1], [1], [2], [0, 0, 0, 1, 1, 2], [0], [0]>} : vector<2x8x8xbf16>, vector<2x8x8xbf16>, vector<2x8x8xf32> -> vector<2x8x8xf32>
    "tpu.trace_stop"() : () -> ()
    %49 = vector.shape_cast %48 : vector<2x8x8xf32> to vector<16x8xf32>
    %50 = arith.truncf %49 : vector<16x8xf32> to vector<16x8xbf16>
    %51 = vector.extract_strided_slice %24 {offsets = [0, 0, 8], sizes = [2, 8, 8], strides = [1, 1, 1]} : vector<2x8x32xf32> to vector<2x8x8xf32>
    %52 = arith.truncf %51 : vector<2x8x8xf32> to vector<2x8x8xbf16>
    %53 = vector.extract_strided_slice %26 {offsets = [0, 0, 8], sizes = [2, 8, 8], strides = [1, 1, 1]} : vector<2x8x32xf32> to vector<2x8x8xf32>
    %54 = arith.truncf %53 : vector<2x8x8xf32> to vector<2x8x8xbf16>
    %55 = vector.extract_strided_slice %28 {offsets = [0, 0, 8], sizes = [2, 8, 8], strides = [1, 1, 1]} : vector<2x8x32xf32> to vector<2x8x8xf32>
    %56 = arith.truncf %55 : vector<2x8x8xf32> to vector<2x8x8xbf16>
    "tpu.trace_start"() <{level = 10 : i32, message = "bqd,bkd->bqk"}> : () -> ()
    %cst_27 = arith.constant dense<0.000000e+00> : vector<2x8x8xf32>
    %57 = tpu.matmul %52, %54, %cst_27 {dimension_numbers = #tpu.dot_dimension_numbers<[2], [2], [1], [1], [0, 0, 0, 1, 1, 1], [0], [0]>} : vector<2x8x8xbf16>, vector<2x8x8xbf16>, vector<2x8x8xf32> -> vector<2x8x8xf32>
    "tpu.trace_stop"() : () -> ()
    %58 = arith.addf %57, %3 : vector<2x8x8xf32>
    %cst_28 = arith.constant dense<0xFF800000> : vector<2x8xf32>
    %59 = vector.multi_reduction <maximumf>, %58, %cst_28 [2] : vector<2x8x8xf32> to vector<2x8xf32>
    %60 = vector.shape_cast %59 : vector<2x8xf32> to vector<2x8x1xf32>
    %61 = vector.broadcast %60 : vector<2x8x1xf32> to vector<2x8x8xf32>
    %62 = arith.subf %58, %61 : vector<2x8x8xf32>
    %63 = math.exp %62 : vector<2x8x8xf32>
    %cst_29 = arith.constant dense<0.000000e+00> : vector<2x8xf32>
    %64 = vector.multi_reduction <add>, %63, %cst_29 [2] : vector<2x8x8xf32> to vector<2x8xf32>
    %65 = vector.shape_cast %64 : vector<2x8xf32> to vector<2x8x1xf32>
    %66 = tpu.reciprocal %65 {approx = true} : vector<2x8x1xf32> -> vector<2x8x1xf32>
    %67 = vector.broadcast %66 : vector<2x8x1xf32> to vector<2x8x8xf32>
    %68 = arith.mulf %63, %67 : vector<2x8x8xf32>
    %69 = arith.truncf %68 : vector<2x8x8xf32> to vector<2x8x8xbf16>
    "tpu.trace_start"() <{level = 10 : i32, message = "bqk,bkd->bqd"}> : () -> ()
    %cst_30 = arith.constant dense<0.000000e+00> : vector<2x8x8xf32>
    %70 = tpu.matmul %69, %56, %cst_30 {dimension_numbers = #tpu.dot_dimension_numbers<[2], [1], [1], [2], [0, 0, 0, 1, 1, 2], [0], [0]>} : vector<2x8x8xbf16>, vector<2x8x8xbf16>, vector<2x8x8xf32> -> vector<2x8x8xf32>
    "tpu.trace_stop"() : () -> ()
    %71 = vector.shape_cast %70 : vector<2x8x8xf32> to vector<16x8xf32>
    %72 = arith.truncf %71 : vector<16x8xf32> to vector<16x8xbf16>
    %73 = vector.extract_strided_slice %24 {offsets = [0, 0, 16], sizes = [2, 8, 8], strides = [1, 1, 1]} : vector<2x8x32xf32> to vector<2x8x8xf32>
    %74 = arith.truncf %73 : vector<2x8x8xf32> to vector<2x8x8xbf16>
    %75 = vector.extract_strided_slice %26 {offsets = [0, 0, 16], sizes = [2, 8, 8], strides = [1, 1, 1]} : vector<2x8x32xf32> to vector<2x8x8xf32>
    %76 = arith.truncf %75 : vector<2x8x8xf32> to vector<2x8x8xbf16>
    %77 = vector.extract_strided_slice %28 {offsets = [0, 0, 16], sizes = [2, 8, 8], strides = [1, 1, 1]} : vector<2x8x32xf32> to vector<2x8x8xf32>
    %78 = arith.truncf %77 : vector<2x8x8xf32> to vector<2x8x8xbf16>
    "tpu.trace_start"() <{level = 10 : i32, message = "bqd,bkd->bqk"}> : () -> ()
    %cst_31 = arith.constant dense<0.000000e+00> : vector<2x8x8xf32>
    %79 = tpu.matmul %74, %76, %cst_31 {dimension_numbers = #tpu.dot_dimension_numbers<[2], [2], [1], [1], [0, 0, 0, 1, 1, 1], [0], [0]>} : vector<2x8x8xbf16>, vector<2x8x8xbf16>, vector<2x8x8xf32> -> vector<2x8x8xf32>
    "tpu.trace_stop"() : () -> ()
    %80 = arith.addf %79, %3 : vector<2x8x8xf32>
    %cst_32 = arith.constant dense<0xFF800000> : vector<2x8xf32>
    %81 = vector.multi_reduction <maximumf>, %80, %cst_32 [2] : vector<2x8x8xf32> to vector<2x8xf32>
    %82 = vector.shape_cast %81 : vector<2x8xf32> to vector<2x8x1xf32>
    %83 = vector.broadcast %82 : vector<2x8x1xf32> to vector<2x8x8xf32>
    %84 = arith.subf %80, %83 : vector<2x8x8xf32>
    %85 = math.exp %84 : vector<2x8x8xf32>
    %cst_33 = arith.constant dense<0.000000e+00> : vector<2x8xf32>
    %86 = vector.multi_reduction <add>, %85, %cst_33 [2] : vector<2x8x8xf32> to vector<2x8xf32>
    %87 = vector.shape_cast %86 : vector<2x8xf32> to vector<2x8x1xf32>
    %88 = tpu.reciprocal %87 {approx = true} : vector<2x8x1xf32> -> vector<2x8x1xf32>
    %89 = vector.broadcast %88 : vector<2x8x1xf32> to vector<2x8x8xf32>
    %90 = arith.mulf %85, %89 : vector<2x8x8xf32>
    %91 = arith.truncf %90 : vector<2x8x8xf32> to vector<2x8x8xbf16>
    "tpu.trace_start"() <{level = 10 : i32, message = "bqk,bkd->bqd"}> : () -> ()
    %cst_34 = arith.constant dense<0.000000e+00> : vector<2x8x8xf32>
    %92 = tpu.matmul %91, %78, %cst_34 {dimension_numbers = #tpu.dot_dimension_numbers<[2], [1], [1], [2], [0, 0, 0, 1, 1, 2], [0], [0]>} : vector<2x8x8xbf16>, vector<2x8x8xbf16>, vector<2x8x8xf32> -> vector<2x8x8xf32>
    "tpu.trace_stop"() : () -> ()
    %93 = vector.shape_cast %92 : vector<2x8x8xf32> to vector<16x8xf32>
    %94 = arith.truncf %93 : vector<16x8xf32> to vector<16x8xbf16>
    %95 = vector.extract_strided_slice %24 {offsets = [0, 0, 24], sizes = [2, 8, 8], strides = [1, 1, 1]} : vector<2x8x32xf32> to vector<2x8x8xf32>
    %96 = arith.truncf %95 : vector<2x8x8xf32> to vector<2x8x8xbf16>
    %97 = vector.extract_strided_slice %26 {offsets = [0, 0, 24], sizes = [2, 8, 8], strides = [1, 1, 1]} : vector<2x8x32xf32> to vector<2x8x8xf32>
    %98 = arith.truncf %97 : vector<2x8x8xf32> to vector<2x8x8xbf16>
    %99 = vector.extract_strided_slice %28 {offsets = [0, 0, 24], sizes = [2, 8, 8], strides = [1, 1, 1]} : vector<2x8x32xf32> to vector<2x8x8xf32>
    %100 = arith.truncf %99 : vector<2x8x8xf32> to vector<2x8x8xbf16>
    "tpu.trace_start"() <{level = 10 : i32, message = "bqd,bkd->bqk"}> : () -> ()
    %cst_35 = arith.constant dense<0.000000e+00> : vector<2x8x8xf32>
    %101 = tpu.matmul %96, %98, %cst_35 {dimension_numbers = #tpu.dot_dimension_numbers<[2], [2], [1], [1], [0, 0, 0, 1, 1, 1], [0], [0]>} : vector<2x8x8xbf16>, vector<2x8x8xbf16>, vector<2x8x8xf32> -> vector<2x8x8xf32>
    "tpu.trace_stop"() : () -> ()
    %102 = arith.addf %101, %3 : vector<2x8x8xf32>
    %cst_36 = arith.constant dense<0xFF800000> : vector<2x8xf32>
    %103 = vector.multi_reduction <maximumf>, %102, %cst_36 [2] : vector<2x8x8xf32> to vector<2x8xf32>
    %104 = vector.shape_cast %103 : vector<2x8xf32> to vector<2x8x1xf32>
    %105 = vector.broadcast %104 : vector<2x8x1xf32> to vector<2x8x8xf32>
    %106 = arith.subf %102, %105 : vector<2x8x8xf32>
    %107 = math.exp %106 : vector<2x8x8xf32>
    %cst_37 = arith.constant dense<0.000000e+00> : vector<2x8xf32>
    %108 = vector.multi_reduction <add>, %107, %cst_37 [2] : vector<2x8x8xf32> to vector<2x8xf32>
    %109 = vector.shape_cast %108 : vector<2x8xf32> to vector<2x8x1xf32>
    %110 = tpu.reciprocal %109 {approx = true} : vector<2x8x1xf32> -> vector<2x8x1xf32>
    %111 = vector.broadcast %110 : vector<2x8x1xf32> to vector<2x8x8xf32>
    %112 = arith.mulf %107, %111 : vector<2x8x8xf32>
    %113 = arith.truncf %112 : vector<2x8x8xf32> to vector<2x8x8xbf16>
    "tpu.trace_start"() <{level = 10 : i32, message = "bqk,bkd->bqd"}> : () -> ()
    %cst_38 = arith.constant dense<0.000000e+00> : vector<2x8x8xf32>
    %114 = tpu.matmul %113, %100, %cst_38 {dimension_numbers = #tpu.dot_dimension_numbers<[2], [1], [1], [2], [0, 0, 0, 1, 1, 2], [0], [0]>} : vector<2x8x8xbf16>, vector<2x8x8xbf16>, vector<2x8x8xf32> -> vector<2x8x8xf32>
    "tpu.trace_stop"() : () -> ()
    %115 = vector.shape_cast %114 : vector<2x8x8xf32> to vector<16x8xf32>
    %116 = arith.truncf %115 : vector<16x8xf32> to vector<16x8xbf16>
    %117 = tpu.concatenate %50, %72, %94, %116 in 1 : vector<16x8xbf16>, vector<16x8xbf16>, vector<16x8xbf16>, vector<16x8xbf16> -> vector<16x32xbf16>
    %cst_39 = arith.constant dense<0.000000e+00> : vector<16x32xf32>
    %118 = tpu.matmul %117, %8, %cst_39 {dimension_numbers = #tpu.dot_dimension_numbers<[1], [0], [0], [1], [0, 0, 1, 1], [], []>} : vector<16x32xbf16>, vector<32x32xbf16>, vector<16x32xf32> -> vector<16x32xf32>
    %119 = vector.broadcast %9 : vector<1x32xf32> to vector<16x32xf32>
    %120 = arith.addf %118, %119 : vector<16x32xf32>
    %121 = arith.addf %13, %120 : vector<16x32xf32>
    %cst_40 = arith.constant dense<0.000000e+00> : vector<16xf32>
    %122 = vector.multi_reduction <add>, %121, %cst_40 [1] : vector<16x32xf32> to vector<16xf32>
    %123 = vector.shape_cast %122 : vector<16xf32> to vector<16x1xf32>
    %cst_41 = arith.constant 3.200000e+01 : f32
    %124 = vector.broadcast %cst_41 : f32 to vector<16x1xf32>
    %125 = arith.divf %123, %124 : vector<16x1xf32>
    %126 = vector.broadcast %125 : vector<16x1xf32> to vector<16x32xf32>
    %127 = arith.subf %121, %126 : vector<16x32xf32>
    %128 = arith.mulf %127, %127 : vector<16x32xf32>
    %cst_42 = arith.constant dense<0.000000e+00> : vector<16xf32>
    %129 = vector.multi_reduction <add>, %128, %cst_42 [1] : vector<16x32xf32> to vector<16xf32>
    %130 = vector.shape_cast %129 : vector<16xf32> to vector<16x1xf32>
    %cst_43 = arith.constant 3.200000e+01 : f32
    %131 = vector.broadcast %cst_43 : f32 to vector<16x1xf32>
    %132 = arith.divf %130, %131 : vector<16x1xf32>
    %133 = vector.broadcast %125 : vector<16x1xf32> to vector<16x32xf32>
    %134 = arith.subf %121, %133 : vector<16x32xf32>
    %cst_44 = arith.constant 9.99999974E-6 : f32
    %135 = vector.broadcast %cst_44 : f32 to vector<16x1xf32>
    %136 = arith.addf %132, %135 : vector<16x1xf32>
    %137 = math.rsqrt %136 : vector<16x1xf32>
    %138 = vector.broadcast %137 : vector<16x1xf32> to vector<16x32xf32>
    %139 = arith.mulf %134, %138 : vector<16x32xf32>
    %140 = vector.broadcast %10 : vector<1x32xf32> to vector<16x32xf32>
    %141 = arith.mulf %139, %140 : vector<16x32xf32>
    %142 = vector.broadcast %11 : vector<1x32xf32> to vector<16x32xf32>
    %143 = arith.addf %141, %142 : vector<16x32xf32>
    %144 = vector.shape_cast %143 : vector<16x32xf32> to vector<2x8x32xf32>
    %145 = arith.truncf %144 : vector<2x8x32xf32> to vector<2x8x32xbf16>
    %c0_45 = arith.constant 0 : index
    %c0_46 = arith.constant 0 : index
    %c0_47 = arith.constant 0 : index
    %146 = vector.load %arg11[%c0_45, %c0_46, %c0_47] : memref<2x8x32xbf16, #tpu.memory_space<vmem>>, vector<2x8x32xbf16>
    tpu.vector_store %arg11[%c0_45, %c0_46, %c0_47], %145 {strides = array<i32>} : memref<2x8x32xbf16, #tpu.memory_space<vmem>>, vector<2x8x32xbf16>,
    return
  }
  func.func @transform_0(%arg0: i32) -> (i32, i32, i32) {
    %c0_i32 = arith.constant 0 : i32
    %c0_i32_0 = arith.constant 0 : i32
    %c0_i32_1 = arith.constant 0 : i32
    return %arg0, %c0_i32, %c0_i32_0 : i32, i32, i32
  }
  func.func @transform_1(%arg0: i32) -> (i32, i32, i32) {
    %c0_i32 = arith.constant 0 : i32
    %c0_i32_0 = arith.constant 0 : i32
    %c0_i32_1 = arith.constant 0 : i32
    return %arg0, %c0_i32, %c0_i32_0 : i32, i32, i32
  }
  func.func @transform_2(%arg0: i32) -> (i32, i32) {
    %c0_i32 = arith.constant 0 : i32
    %c0_i32_0 = arith.constant 0 : i32
    %c0_i32_1 = arith.constant 0 : i32
    return %c0_i32, %c0_i32_0 : i32, i32
  }
  func.func @transform_3(%arg0: i32) -> (i32, i32) {
    %c0_i32 = arith.constant 0 : i32
    %c0_i32_0 = arith.constant 0 : i32
    %c0_i32_1 = arith.constant 0 : i32
    return %c0_i32, %c0_i32_0 : i32, i32
  }
  func.func @transform_4(%arg0: i32) -> (i32, i32) {
    %c0_i32 = arith.constant 0 : i32
    %c0_i32_0 = arith.constant 0 : i32
    %c0_i32_1 = arith.constant 0 : i32
    return %c0_i32, %c0_i32_0 : i32, i32
  }
  func.func @transform_5(%arg0: i32) -> (i32, i32) {
    %c0_i32 = arith.constant 0 : i32
    %c0_i32_0 = arith.constant 0 : i32
    %c0_i32_1 = arith.constant 0 : i32
    return %c0_i32, %c0_i32_0 : i32, i32
  }
  func.func @transform_6(%arg0: i32) -> (i32, i32) {
    %c0_i32 = arith.constant 0 : i32
    %c0_i32_0 = arith.constant 0 : i32
    %c0_i32_1 = arith.constant 0 : i32
    return %c0_i32, %c0_i32_0 : i32, i32
  }
  func.func @transform_7(%arg0: i32) -> (i32, i32) {
    %c0_i32 = arith.constant 0 : i32
    %c0_i32_0 = arith.constant 0 : i32
    %c0_i32_1 = arith.constant 0 : i32
    return %c0_i32, %c0_i32_0 : i32, i32
  }
  func.func @transform_8(%arg0: i32) -> (i32, i32) {
    %c0_i32 = arith.constant 0 : i32
    %c0_i32_0 = arith.constant 0 : i32
    %c0_i32_1 = arith.constant 0 : i32
    return %c0_i32, %c0_i32_0 : i32, i32
  }
  func.func @transform_9(%arg0: i32) -> (i32, i32) {
    %c0_i32 = arith.constant 0 : i32
    %c0_i32_0 = arith.constant 0 : i32
    %c0_i32_1 = arith.constant 0 : i32
    return %c0_i32, %c0_i32_0 : i32, i32
  }
  func.func @transform_10(%arg0: i32) -> (i32, i32, i32) {
    %c0_i32 = arith.constant 0 : i32
    %c0_i32_0 = arith.constant 0 : i32
    %c0_i32_1 = arith.constant 0 : i32
    return %arg0, %c0_i32, %c0_i32_0 : i32, i32, i32
  }
}

module attributes {stable_mosaic.version = 11 : i64} {
  func.func @_cross_attn_ln_kernel(%arg0: i32, %arg1: memref<2x8x32xbf16, #tpu.memory_space<vmem>>, %arg2: memref<2x8x32xbf16, #tpu.memory_space<vmem>>, %arg3: memref<2x1x8xf32, #tpu.memory_space<vmem>>, %arg4: memref<32x32xbf16, #tpu.memory_space<vmem>>, %arg5: memref<32x64xbf16, #tpu.memory_space<vmem>>, %arg6: memref<1x32xf32, #tpu.memory_space<vmem>>, %arg7: memref<1x64xf32, #tpu.memory_space<vmem>>, %arg8: memref<32x32xbf16, #tpu.memory_space<vmem>>, %arg9: memref<1x32xf32, #tpu.memory_space<vmem>>, %arg10: memref<1x32xf32, #tpu.memory_space<vmem>>, %arg11: memref<1x32xf32, #tpu.memory_space<vmem>>, %arg12: memref<2x8x32xbf16, #tpu.memory_space<vmem>>) attributes {dimension_semantics = [#tpu.dimension_semantics<parallel>], iteration_bounds = array<i64: 1>, scalar_prefetch = 0 : i64, scratch_operands = 0 : i64, tpu.core_type = #tpu.core_type<tc>, window_params = [{transform_indices = @transform_0, window_bounds = array<i64: 2, 8, 32>}, {transform_indices = @transform_1, window_bounds = array<i64: 2, 8, 32>}, {transform_indices = @transform_2, window_bounds = array<i64: 2, 1, 8>}, {pipeline_mode = #tpu.pipeline_mode<synchronous>, transform_indices = @transform_3, window_bounds = array<i64: 32, 32>}, {pipeline_mode = #tpu.pipeline_mode<synchronous>, transform_indices = @transform_4, window_bounds = array<i64: 32, 64>}, {pipeline_mode = #tpu.pipeline_mode<synchronous>, transform_indices = @transform_5, window_bounds = array<i64: 1, 32>}, {pipeline_mode = #tpu.pipeline_mode<synchronous>, transform_indices = @transform_6, window_bounds = array<i64: 1, 64>}, {pipeline_mode = #tpu.pipeline_mode<synchronous>, transform_indices = @transform_7, window_bounds = array<i64: 32, 32>}, {pipeline_mode = #tpu.pipeline_mode<synchronous>, transform_indices = @transform_8, window_bounds = array<i64: 1, 32>}, {pipeline_mode = #tpu.pipeline_mode<synchronous>, transform_indices = @transform_9, window_bounds = array<i64: 1, 32>}, {pipeline_mode = #tpu.pipeline_mode<synchronous>, transform_indices = @transform_10, window_bounds = array<i64: 1, 32>}, {transform_indices = @transform_11, window_bounds = array<i64: 2, 8, 32>}]} {
    %c0 = arith.constant 0 : index
    %c0_0 = arith.constant 0 : index
    %c0_1 = arith.constant 0 : index
    %0 = vector.load %arg3[%c0, %c0_0, %c0_1] : memref<2x1x8xf32, #tpu.memory_space<vmem>>, vector<2x1x8xf32>
    %1 = vector.shape_cast %0 : vector<2x1x8xf32> to vector<2x1x8xf32>
    %2 = vector.broadcast %1 : vector<2x1x8xf32> to vector<2x8x8xf32>
    %c0_2 = arith.constant 0 : index
    %c0_3 = arith.constant 0 : index
    %c0_4 = arith.constant 0 : index
    %3 = vector.load %arg1[%c0_2, %c0_3, %c0_4] : memref<2x8x32xbf16, #tpu.memory_space<vmem>>, vector<2x8x32xbf16>
    %c0_5 = arith.constant 0 : index
    %c0_6 = arith.constant 0 : index
    %c0_7 = arith.constant 0 : index
    %4 = vector.load %arg2[%c0_5, %c0_6, %c0_7] : memref<2x8x32xbf16, #tpu.memory_space<vmem>>, vector<2x8x32xbf16>
    %c0_8 = arith.constant 0 : index
    %c0_9 = arith.constant 0 : index
    %5 = vector.load %arg4[%c0_8, %c0_9] : memref<32x32xbf16, #tpu.memory_space<vmem>>, vector<32x32xbf16>
    %c0_10 = arith.constant 0 : index
    %c0_11 = arith.constant 0 : index
    %6 = vector.load %arg5[%c0_10, %c0_11] : memref<32x64xbf16, #tpu.memory_space<vmem>>, vector<32x64xbf16>
    %c0_12 = arith.constant 0 : index
    %c0_13 = arith.constant 0 : index
    %7 = vector.load %arg6[%c0_12, %c0_13] : memref<1x32xf32, #tpu.memory_space<vmem>>, vector<1x32xf32>
    %c0_14 = arith.constant 0 : index
    %c0_15 = arith.constant 0 : index
    %8 = vector.load %arg7[%c0_14, %c0_15] : memref<1x64xf32, #tpu.memory_space<vmem>>, vector<1x64xf32>
    %c0_16 = arith.constant 0 : index
    %c0_17 = arith.constant 0 : index
    %9 = vector.load %arg8[%c0_16, %c0_17] : memref<32x32xbf16, #tpu.memory_space<vmem>>, vector<32x32xbf16>
    %c0_18 = arith.constant 0 : index
    %c0_19 = arith.constant 0 : index
    %10 = vector.load %arg9[%c0_18, %c0_19] : memref<1x32xf32, #tpu.memory_space<vmem>>, vector<1x32xf32>
    %c0_20 = arith.constant 0 : index
    %c0_21 = arith.constant 0 : index
    %11 = vector.load %arg10[%c0_20, %c0_21] : memref<1x32xf32, #tpu.memory_space<vmem>>, vector<1x32xf32>
    %c0_22 = arith.constant 0 : index
    %c0_23 = arith.constant 0 : index
    %12 = vector.load %arg11[%c0_22, %c0_23] : memref<1x32xf32, #tpu.memory_space<vmem>>, vector<1x32xf32>
    %13 = vector.shape_cast %3 : vector<2x8x32xbf16> to vector<16x32xbf16>
    %14 = arith.extf %13 : vector<16x32xbf16> to vector<16x32xf32>
    %15 = vector.shape_cast %3 : vector<2x8x32xbf16> to vector<16x32xbf16>
    %16 = vector.shape_cast %4 : vector<2x8x32xbf16> to vector<16x32xbf16>
    %cst = arith.constant dense<0.000000e+00> : vector<16x32xf32>
    %17 = tpu.matmul %15, %5, %cst {dimension_numbers = #tpu.dot_dimension_numbers<[1], [0], [0], [1], [0, 0, 1, 1], [], []>} : vector<16x32xbf16>, vector<32x32xbf16>, vector<16x32xf32> -> vector<16x32xf32>
    %18 = vector.broadcast %7 : vector<1x32xf32> to vector<16x32xf32>
    %19 = arith.addf %17, %18 : vector<16x32xf32>
    %cst_24 = arith.constant dense<0.000000e+00> : vector<16x64xf32>
    %20 = tpu.matmul %16, %6, %cst_24 {dimension_numbers = #tpu.dot_dimension_numbers<[1], [0], [0], [1], [0, 0, 1, 1], [], []>} : vector<16x32xbf16>, vector<32x64xbf16>, vector<16x64xf32> -> vector<16x64xf32>
    %21 = vector.broadcast %8 : vector<1x64xf32> to vector<16x64xf32>
    %22 = arith.addf %20, %21 : vector<16x64xf32>
    %cst_25 = arith.constant 0.353553385 : f32
    %23 = vector.broadcast %cst_25 : f32 to vector<16x32xf32>
    %24 = arith.mulf %19, %23 : vector<16x32xf32>
    %25 = vector.shape_cast %24 : vector<16x32xf32> to vector<2x8x32xf32>
    %26 = vector.extract_strided_slice %22 {offsets = [0, 0], sizes = [16, 32], strides = [1, 1]} : vector<16x64xf32> to vector<16x32xf32>
    %27 = vector.shape_cast %26 : vector<16x32xf32> to vector<2x8x32xf32>
    %28 = vector.extract_strided_slice %22 {offsets = [0, 32], sizes = [16, 32], strides = [1, 1]} : vector<16x64xf32> to vector<16x32xf32>
    %29 = vector.shape_cast %28 : vector<16x32xf32> to vector<2x8x32xf32>
    %30 = vector.extract_strided_slice %25 {offsets = [0, 0, 0], sizes = [2, 8, 8], strides = [1, 1, 1]} : vector<2x8x32xf32> to vector<2x8x8xf32>
    %31 = arith.truncf %30 : vector<2x8x8xf32> to vector<2x8x8xbf16>
    %32 = vector.extract_strided_slice %27 {offsets = [0, 0, 0], sizes = [2, 8, 8], strides = [1, 1, 1]} : vector<2x8x32xf32> to vector<2x8x8xf32>
    %33 = arith.truncf %32 : vector<2x8x8xf32> to vector<2x8x8xbf16>
    %34 = vector.extract_strided_slice %29 {offsets = [0, 0, 0], sizes = [2, 8, 8], strides = [1, 1, 1]} : vector<2x8x32xf32> to vector<2x8x8xf32>
    %35 = arith.truncf %34 : vector<2x8x8xf32> to vector<2x8x8xbf16>
    "tpu.trace_start"() <{level = 10 : i32, message = "bqd,bkd->bqk"}> : () -> ()
    %cst_26 = arith.constant dense<0.000000e+00> : vector<2x8x8xf32>
    %36 = tpu.matmul %31, %33, %cst_26 {dimension_numbers = #tpu.dot_dimension_numbers<[2], [2], [1], [1], [0, 0, 0, 1, 1, 1], [0], [0]>} : vector<2x8x8xbf16>, vector<2x8x8xbf16>, vector<2x8x8xf32> -> vector<2x8x8xf32>
    "tpu.trace_stop"() : () -> ()
    %37 = arith.addf %36, %2 : vector<2x8x8xf32>
    %cst_27 = arith.constant dense<0xFF800000> : vector<2x8xf32>
    %38 = vector.multi_reduction <maximumf>, %37, %cst_27 [2] : vector<2x8x8xf32> to vector<2x8xf32>
    %39 = vector.shape_cast %38 : vector<2x8xf32> to vector<2x8x1xf32>
    %40 = vector.broadcast %39 : vector<2x8x1xf32> to vector<2x8x8xf32>
    %41 = arith.subf %37, %40 : vector<2x8x8xf32>
    %42 = math.exp %41 : vector<2x8x8xf32>
    %cst_28 = arith.constant dense<0.000000e+00> : vector<2x8xf32>
    %43 = vector.multi_reduction <add>, %42, %cst_28 [2] : vector<2x8x8xf32> to vector<2x8xf32>
    %44 = vector.shape_cast %43 : vector<2x8xf32> to vector<2x8x1xf32>
    %45 = tpu.reciprocal %44 {approx = true} : vector<2x8x1xf32> -> vector<2x8x1xf32>
    %46 = vector.broadcast %45 : vector<2x8x1xf32> to vector<2x8x8xf32>
    %47 = arith.mulf %42, %46 : vector<2x8x8xf32>
    %48 = arith.truncf %47 : vector<2x8x8xf32> to vector<2x8x8xbf16>
    "tpu.trace_start"() <{level = 10 : i32, message = "bqk,bkd->bqd"}> : () -> ()
    %cst_29 = arith.constant dense<0.000000e+00> : vector<2x8x8xf32>
    %49 = tpu.matmul %48, %35, %cst_29 {dimension_numbers = #tpu.dot_dimension_numbers<[2], [1], [1], [2], [0, 0, 0, 1, 1, 2], [0], [0]>} : vector<2x8x8xbf16>, vector<2x8x8xbf16>, vector<2x8x8xf32> -> vector<2x8x8xf32>
    "tpu.trace_stop"() : () -> ()
    %50 = vector.shape_cast %49 : vector<2x8x8xf32> to vector<16x8xf32>
    %51 = arith.truncf %50 : vector<16x8xf32> to vector<16x8xbf16>
    %52 = vector.extract_strided_slice %25 {offsets = [0, 0, 8], sizes = [2, 8, 8], strides = [1, 1, 1]} : vector<2x8x32xf32> to vector<2x8x8xf32>
    %53 = arith.truncf %52 : vector<2x8x8xf32> to vector<2x8x8xbf16>
    %54 = vector.extract_strided_slice %27 {offsets = [0, 0, 8], sizes = [2, 8, 8], strides = [1, 1, 1]} : vector<2x8x32xf32> to vector<2x8x8xf32>
    %55 = arith.truncf %54 : vector<2x8x8xf32> to vector<2x8x8xbf16>
    %56 = vector.extract_strided_slice %29 {offsets = [0, 0, 8], sizes = [2, 8, 8], strides = [1, 1, 1]} : vector<2x8x32xf32> to vector<2x8x8xf32>
    %57 = arith.truncf %56 : vector<2x8x8xf32> to vector<2x8x8xbf16>
    "tpu.trace_start"() <{level = 10 : i32, message = "bqd,bkd->bqk"}> : () -> ()
    %cst_30 = arith.constant dense<0.000000e+00> : vector<2x8x8xf32>
    %58 = tpu.matmul %53, %55, %cst_30 {dimension_numbers = #tpu.dot_dimension_numbers<[2], [2], [1], [1], [0, 0, 0, 1, 1, 1], [0], [0]>} : vector<2x8x8xbf16>, vector<2x8x8xbf16>, vector<2x8x8xf32> -> vector<2x8x8xf32>
    "tpu.trace_stop"() : () -> ()
    %59 = arith.addf %58, %2 : vector<2x8x8xf32>
    %cst_31 = arith.constant dense<0xFF800000> : vector<2x8xf32>
    %60 = vector.multi_reduction <maximumf>, %59, %cst_31 [2] : vector<2x8x8xf32> to vector<2x8xf32>
    %61 = vector.shape_cast %60 : vector<2x8xf32> to vector<2x8x1xf32>
    %62 = vector.broadcast %61 : vector<2x8x1xf32> to vector<2x8x8xf32>
    %63 = arith.subf %59, %62 : vector<2x8x8xf32>
    %64 = math.exp %63 : vector<2x8x8xf32>
    %cst_32 = arith.constant dense<0.000000e+00> : vector<2x8xf32>
    %65 = vector.multi_reduction <add>, %64, %cst_32 [2] : vector<2x8x8xf32> to vector<2x8xf32>
    %66 = vector.shape_cast %65 : vector<2x8xf32> to vector<2x8x1xf32>
    %67 = tpu.reciprocal %66 {approx = true} : vector<2x8x1xf32> -> vector<2x8x1xf32>
    %68 = vector.broadcast %67 : vector<2x8x1xf32> to vector<2x8x8xf32>
    %69 = arith.mulf %64, %68 : vector<2x8x8xf32>
    %70 = arith.truncf %69 : vector<2x8x8xf32> to vector<2x8x8xbf16>
    "tpu.trace_start"() <{level = 10 : i32, message = "bqk,bkd->bqd"}> : () -> ()
    %cst_33 = arith.constant dense<0.000000e+00> : vector<2x8x8xf32>
    %71 = tpu.matmul %70, %57, %cst_33 {dimension_numbers = #tpu.dot_dimension_numbers<[2], [1], [1], [2], [0, 0, 0, 1, 1, 2], [0], [0]>} : vector<2x8x8xbf16>, vector<2x8x8xbf16>, vector<2x8x8xf32> -> vector<2x8x8xf32>
    "tpu.trace_stop"() : () -> ()
    %72 = vector.shape_cast %71 : vector<2x8x8xf32> to vector<16x8xf32>
    %73 = arith.truncf %72 : vector<16x8xf32> to vector<16x8xbf16>
    %74 = vector.extract_strided_slice %25 {offsets = [0, 0, 16], sizes = [2, 8, 8], strides = [1, 1, 1]} : vector<2x8x32xf32> to vector<2x8x8xf32>
    %75 = arith.truncf %74 : vector<2x8x8xf32> to vector<2x8x8xbf16>
    %76 = vector.extract_strided_slice %27 {offsets = [0, 0, 16], sizes = [2, 8, 8], strides = [1, 1, 1]} : vector<2x8x32xf32> to vector<2x8x8xf32>
    %77 = arith.truncf %76 : vector<2x8x8xf32> to vector<2x8x8xbf16>
    %78 = vector.extract_strided_slice %29 {offsets = [0, 0, 16], sizes = [2, 8, 8], strides = [1, 1, 1]} : vector<2x8x32xf32> to vector<2x8x8xf32>
    %79 = arith.truncf %78 : vector<2x8x8xf32> to vector<2x8x8xbf16>
    "tpu.trace_start"() <{level = 10 : i32, message = "bqd,bkd->bqk"}> : () -> ()
    %cst_34 = arith.constant dense<0.000000e+00> : vector<2x8x8xf32>
    %80 = tpu.matmul %75, %77, %cst_34 {dimension_numbers = #tpu.dot_dimension_numbers<[2], [2], [1], [1], [0, 0, 0, 1, 1, 1], [0], [0]>} : vector<2x8x8xbf16>, vector<2x8x8xbf16>, vector<2x8x8xf32> -> vector<2x8x8xf32>
    "tpu.trace_stop"() : () -> ()
    %81 = arith.addf %80, %2 : vector<2x8x8xf32>
    %cst_35 = arith.constant dense<0xFF800000> : vector<2x8xf32>
    %82 = vector.multi_reduction <maximumf>, %81, %cst_35 [2] : vector<2x8x8xf32> to vector<2x8xf32>
    %83 = vector.shape_cast %82 : vector<2x8xf32> to vector<2x8x1xf32>
    %84 = vector.broadcast %83 : vector<2x8x1xf32> to vector<2x8x8xf32>
    %85 = arith.subf %81, %84 : vector<2x8x8xf32>
    %86 = math.exp %85 : vector<2x8x8xf32>
    %cst_36 = arith.constant dense<0.000000e+00> : vector<2x8xf32>
    %87 = vector.multi_reduction <add>, %86, %cst_36 [2] : vector<2x8x8xf32> to vector<2x8xf32>
    %88 = vector.shape_cast %87 : vector<2x8xf32> to vector<2x8x1xf32>
    %89 = tpu.reciprocal %88 {approx = true} : vector<2x8x1xf32> -> vector<2x8x1xf32>
    %90 = vector.broadcast %89 : vector<2x8x1xf32> to vector<2x8x8xf32>
    %91 = arith.mulf %86, %90 : vector<2x8x8xf32>
    %92 = arith.truncf %91 : vector<2x8x8xf32> to vector<2x8x8xbf16>
    "tpu.trace_start"() <{level = 10 : i32, message = "bqk,bkd->bqd"}> : () -> ()
    %cst_37 = arith.constant dense<0.000000e+00> : vector<2x8x8xf32>
    %93 = tpu.matmul %92, %79, %cst_37 {dimension_numbers = #tpu.dot_dimension_numbers<[2], [1], [1], [2], [0, 0, 0, 1, 1, 2], [0], [0]>} : vector<2x8x8xbf16>, vector<2x8x8xbf16>, vector<2x8x8xf32> -> vector<2x8x8xf32>
    "tpu.trace_stop"() : () -> ()
    %94 = vector.shape_cast %93 : vector<2x8x8xf32> to vector<16x8xf32>
    %95 = arith.truncf %94 : vector<16x8xf32> to vector<16x8xbf16>
    %96 = vector.extract_strided_slice %25 {offsets = [0, 0, 24], sizes = [2, 8, 8], strides = [1, 1, 1]} : vector<2x8x32xf32> to vector<2x8x8xf32>
    %97 = arith.truncf %96 : vector<2x8x8xf32> to vector<2x8x8xbf16>
    %98 = vector.extract_strided_slice %27 {offsets = [0, 0, 24], sizes = [2, 8, 8], strides = [1, 1, 1]} : vector<2x8x32xf32> to vector<2x8x8xf32>
    %99 = arith.truncf %98 : vector<2x8x8xf32> to vector<2x8x8xbf16>
    %100 = vector.extract_strided_slice %29 {offsets = [0, 0, 24], sizes = [2, 8, 8], strides = [1, 1, 1]} : vector<2x8x32xf32> to vector<2x8x8xf32>
    %101 = arith.truncf %100 : vector<2x8x8xf32> to vector<2x8x8xbf16>
    "tpu.trace_start"() <{level = 10 : i32, message = "bqd,bkd->bqk"}> : () -> ()
    %cst_38 = arith.constant dense<0.000000e+00> : vector<2x8x8xf32>
    %102 = tpu.matmul %97, %99, %cst_38 {dimension_numbers = #tpu.dot_dimension_numbers<[2], [2], [1], [1], [0, 0, 0, 1, 1, 1], [0], [0]>} : vector<2x8x8xbf16>, vector<2x8x8xbf16>, vector<2x8x8xf32> -> vector<2x8x8xf32>
    "tpu.trace_stop"() : () -> ()
    %103 = arith.addf %102, %2 : vector<2x8x8xf32>
    %cst_39 = arith.constant dense<0xFF800000> : vector<2x8xf32>
    %104 = vector.multi_reduction <maximumf>, %103, %cst_39 [2] : vector<2x8x8xf32> to vector<2x8xf32>
    %105 = vector.shape_cast %104 : vector<2x8xf32> to vector<2x8x1xf32>
    %106 = vector.broadcast %105 : vector<2x8x1xf32> to vector<2x8x8xf32>
    %107 = arith.subf %103, %106 : vector<2x8x8xf32>
    %108 = math.exp %107 : vector<2x8x8xf32>
    %cst_40 = arith.constant dense<0.000000e+00> : vector<2x8xf32>
    %109 = vector.multi_reduction <add>, %108, %cst_40 [2] : vector<2x8x8xf32> to vector<2x8xf32>
    %110 = vector.shape_cast %109 : vector<2x8xf32> to vector<2x8x1xf32>
    %111 = tpu.reciprocal %110 {approx = true} : vector<2x8x1xf32> -> vector<2x8x1xf32>
    %112 = vector.broadcast %111 : vector<2x8x1xf32> to vector<2x8x8xf32>
    %113 = arith.mulf %108, %112 : vector<2x8x8xf32>
    %114 = arith.truncf %113 : vector<2x8x8xf32> to vector<2x8x8xbf16>
    "tpu.trace_start"() <{level = 10 : i32, message = "bqk,bkd->bqd"}> : () -> ()
    %cst_41 = arith.constant dense<0.000000e+00> : vector<2x8x8xf32>
    %115 = tpu.matmul %114, %101, %cst_41 {dimension_numbers = #tpu.dot_dimension_numbers<[2], [1], [1], [2], [0, 0, 0, 1, 1, 2], [0], [0]>} : vector<2x8x8xbf16>, vector<2x8x8xbf16>, vector<2x8x8xf32> -> vector<2x8x8xf32>
    "tpu.trace_stop"() : () -> ()
    %116 = vector.shape_cast %115 : vector<2x8x8xf32> to vector<16x8xf32>
    %117 = arith.truncf %116 : vector<16x8xf32> to vector<16x8xbf16>
    %118 = tpu.concatenate %51, %73, %95, %117 in 1 : vector<16x8xbf16>, vector<16x8xbf16>, vector<16x8xbf16>, vector<16x8xbf16> -> vector<16x32xbf16>
    %cst_42 = arith.constant dense<0.000000e+00> : vector<16x32xf32>
    %119 = tpu.matmul %118, %9, %cst_42 {dimension_numbers = #tpu.dot_dimension_numbers<[1], [0], [0], [1], [0, 0, 1, 1], [], []>} : vector<16x32xbf16>, vector<32x32xbf16>, vector<16x32xf32> -> vector<16x32xf32>
    %120 = vector.broadcast %10 : vector<1x32xf32> to vector<16x32xf32>
    %121 = arith.addf %119, %120 : vector<16x32xf32>
    %122 = arith.addf %14, %121 : vector<16x32xf32>
    %cst_43 = arith.constant dense<0.000000e+00> : vector<16xf32>
    %123 = vector.multi_reduction <add>, %122, %cst_43 [1] : vector<16x32xf32> to vector<16xf32>
    %124 = vector.shape_cast %123 : vector<16xf32> to vector<16x1xf32>
    %cst_44 = arith.constant 3.200000e+01 : f32
    %125 = vector.broadcast %cst_44 : f32 to vector<16x1xf32>
    %126 = arith.divf %124, %125 : vector<16x1xf32>
    %127 = vector.broadcast %126 : vector<16x1xf32> to vector<16x32xf32>
    %128 = arith.subf %122, %127 : vector<16x32xf32>
    %129 = arith.mulf %128, %128 : vector<16x32xf32>
    %cst_45 = arith.constant dense<0.000000e+00> : vector<16xf32>
    %130 = vector.multi_reduction <add>, %129, %cst_45 [1] : vector<16x32xf32> to vector<16xf32>
    %131 = vector.shape_cast %130 : vector<16xf32> to vector<16x1xf32>
    %cst_46 = arith.constant 3.200000e+01 : f32
    %132 = vector.broadcast %cst_46 : f32 to vector<16x1xf32>
    %133 = arith.divf %131, %132 : vector<16x1xf32>
    %134 = vector.broadcast %126 : vector<16x1xf32> to vector<16x32xf32>
    %135 = arith.subf %122, %134 : vector<16x32xf32>
    %cst_47 = arith.constant 9.99999974E-6 : f32
    %136 = vector.broadcast %cst_47 : f32 to vector<16x1xf32>
    %137 = arith.addf %133, %136 : vector<16x1xf32>
    %138 = math.rsqrt %137 : vector<16x1xf32>
    %139 = vector.broadcast %138 : vector<16x1xf32> to vector<16x32xf32>
    %140 = arith.mulf %135, %139 : vector<16x32xf32>
    %141 = vector.broadcast %11 : vector<1x32xf32> to vector<16x32xf32>
    %142 = arith.mulf %140, %141 : vector<16x32xf32>
    %143 = vector.broadcast %12 : vector<1x32xf32> to vector<16x32xf32>
    %144 = arith.addf %142, %143 : vector<16x32xf32>
    %145 = vector.shape_cast %144 : vector<16x32xf32> to vector<2x8x32xf32>
    %146 = arith.truncf %145 : vector<2x8x32xf32> to vector<2x8x32xbf16>
    %c0_48 = arith.constant 0 : index
    %c0_49 = arith.constant 0 : index
    %c0_50 = arith.constant 0 : index
    %147 = vector.load %arg12[%c0_48, %c0_49, %c0_50] : memref<2x8x32xbf16, #tpu.memory_space<vmem>>, vector<2x8x32xbf16>
    tpu.vector_store %arg12[%c0_48, %c0_49, %c0_50], %146 {strides = array<i32>} : memref<2x8x32xbf16, #tpu.memory_space<vmem>>, vector<2x8x32xbf16>,
    return
  }
  func.func @transform_0(%arg0: i32) -> (i32, i32, i32) {
    %c0_i32 = arith.constant 0 : i32
    %c0_i32_0 = arith.constant 0 : i32
    %c0_i32_1 = arith.constant 0 : i32
    return %arg0, %c0_i32, %c0_i32_0 : i32, i32, i32
  }
  func.func @transform_1(%arg0: i32) -> (i32, i32, i32) {
    %c0_i32 = arith.constant 0 : i32
    %c0_i32_0 = arith.constant 0 : i32
    %c0_i32_1 = arith.constant 0 : i32
    return %arg0, %c0_i32, %c0_i32_0 : i32, i32, i32
  }
  func.func @transform_2(%arg0: i32) -> (i32, i32, i32) {
    %c0_i32 = arith.constant 0 : i32
    %c0_i32_0 = arith.constant 0 : i32
    %c0_i32_1 = arith.constant 0 : i32
    return %arg0, %c0_i32, %c0_i32_0 : i32, i32, i32
  }
  func.func @transform_3(%arg0: i32) -> (i32, i32) {
    %c0_i32 = arith.constant 0 : i32
    %c0_i32_0 = arith.constant 0 : i32
    %c0_i32_1 = arith.constant 0 : i32
    return %c0_i32, %c0_i32_0 : i32, i32
  }
  func.func @transform_4(%arg0: i32) -> (i32, i32) {
    %c0_i32 = arith.constant 0 : i32
    %c0_i32_0 = arith.constant 0 : i32
    %c0_i32_1 = arith.constant 0 : i32
    return %c0_i32, %c0_i32_0 : i32, i32
  }
  func.func @transform_5(%arg0: i32) -> (i32, i32) {
    %c0_i32 = arith.constant 0 : i32
    %c0_i32_0 = arith.constant 0 : i32
    %c0_i32_1 = arith.constant 0 : i32
    return %c0_i32, %c0_i32_0 : i32, i32
  }
  func.func @transform_6(%arg0: i32) -> (i32, i32) {
    %c0_i32 = arith.constant 0 : i32
    %c0_i32_0 = arith.constant 0 : i32
    %c0_i32_1 = arith.constant 0 : i32
    return %c0_i32, %c0_i32_0 : i32, i32
  }
  func.func @transform_7(%arg0: i32) -> (i32, i32) {
    %c0_i32 = arith.constant 0 : i32
    %c0_i32_0 = arith.constant 0 : i32
    %c0_i32_1 = arith.constant 0 : i32
    return %c0_i32, %c0_i32_0 : i32, i32
  }
  func.func @transform_8(%arg0: i32) -> (i32, i32) {
    %c0_i32 = arith.constant 0 : i32
    %c0_i32_0 = arith.constant 0 : i32
    %c0_i32_1 = arith.constant 0 : i32
    return %c0_i32, %c0_i32_0 : i32, i32
  }
  func.func @transform_9(%arg0: i32) -> (i32, i32) {
    %c0_i32 = arith.constant 0 : i32
    %c0_i32_0 = arith.constant 0 : i32
    %c0_i32_1 = arith.constant 0 : i32
    return %c0_i32, %c0_i32_0 : i32, i32
  }
  func.func @transform_10(%arg0: i32) -> (i32, i32) {
    %c0_i32 = arith.constant 0 : i32
    %c0_i32_0 = arith.constant 0 : i32
    %c0_i32_1 = arith.constant 0 : i32
    return %c0_i32, %c0_i32_0 : i32, i32
  }
  func.func @transform_11(%arg0: i32) -> (i32, i32, i32) {
    %c0_i32 = arith.constant 0 : i32
    %c0_i32_0 = arith.constant 0 : i32
    %c0_i32_1 = arith.constant 0 : i32
    return %arg0, %c0_i32, %c0_i32_0 : i32, i32, i32
  }
}

module attributes {stable_mosaic.version = 11 : i64} {
  func.func @_self_attn_ln_kernel(%arg0: i32, %arg1: memref<2x8x32xbf16, #tpu.memory_space<vmem>>, %arg2: memref<2x1x8xf32, #tpu.memory_space<vmem>>, %arg3: memref<32x32xbf16, #tpu.memory_space<vmem>>, %arg4: memref<32x64xbf16, #tpu.memory_space<vmem>>, %arg5: memref<1x32xf32, #tpu.memory_space<vmem>>, %arg6: memref<1x64xf32, #tpu.memory_space<vmem>>, %arg7: memref<32x32xbf16, #tpu.memory_space<vmem>>, %arg8: memref<1x32xf32, #tpu.memory_space<vmem>>, %arg9: memref<1x32xf32, #tpu.memory_space<vmem>>, %arg10: memref<1x32xf32, #tpu.memory_space<vmem>>, %arg11: memref<2x8x32xbf16, #tpu.memory_space<vmem>>) attributes {dimension_semantics = [#tpu.dimension_semantics<parallel>], iteration_bounds = array<i64: 1>, scalar_prefetch = 0 : i64, scratch_operands = 0 : i64, tpu.core_type = #tpu.core_type<tc>, window_params = [{transform_indices = @transform_0, window_bounds = array<i64: 2, 8, 32>}, {transform_indices = @transform_1, window_bounds = array<i64: 2, 1, 8>}, {pipeline_mode = #tpu.pipeline_mode<synchronous>, transform_indices = @transform_2, window_bounds = array<i64: 32, 32>}, {pipeline_mode = #tpu.pipeline_mode<synchronous>, transform_indices = @transform_3, window_bounds = array<i64: 32, 64>}, {pipeline_mode = #tpu.pipeline_mode<synchronous>, transform_indices = @transform_4, window_bounds = array<i64: 1, 32>}, {pipeline_mode = #tpu.pipeline_mode<synchronous>, transform_indices = @transform_5, window_bounds = array<i64: 1, 64>}, {pipeline_mode = #tpu.pipeline_mode<synchronous>, transform_indices = @transform_6, window_bounds = array<i64: 32, 32>}, {pipeline_mode = #tpu.pipeline_mode<synchronous>, transform_indices = @transform_7, window_bounds = array<i64: 1, 32>}, {pipeline_mode = #tpu.pipeline_mode<synchronous>, transform_indices = @transform_8, window_bounds = array<i64: 1, 32>}, {pipeline_mode = #tpu.pipeline_mode<synchronous>, transform_indices = @transform_9, window_bounds = array<i64: 1, 32>}, {transform_indices = @transform_10, window_bounds = array<i64: 2, 8, 32>}]} {
    %c0 = arith.constant 0 : index
    %c0_0 = arith.constant 0 : index
    %c0_1 = arith.constant 0 : index
    %0 = vector.load %arg1[%c0, %c0_0, %c0_1] : memref<2x8x32xbf16, #tpu.memory_space<vmem>>, vector<2x8x32xbf16>
    %c0_2 = arith.constant 0 : index
    %c0_3 = arith.constant 0 : index
    %c0_4 = arith.constant 0 : index
    %1 = vector.load %arg2[%c0_2, %c0_3, %c0_4] : memref<2x1x8xf32, #tpu.memory_space<vmem>>, vector<2x1x8xf32>
    %2 = vector.shape_cast %1 : vector<2x1x8xf32> to vector<2x1x8xf32>
    %3 = vector.broadcast %2 : vector<2x1x8xf32> to vector<2x8x8xf32>
    %4 = tpu.iota {dimensions = array<i32: 0>} : vector<8x8xi32>
    %5 = tpu.iota {dimensions = array<i32: 1>} : vector<8x8xi32>
    %6 = arith.cmpi sgt, %5, %4 : vector<8x8xi32>
    %cst = arith.constant -1.000000e+09 : f32
    %cst_5 = arith.constant 0.000000e+00 : f32
    %7 = vector.broadcast %cst : f32 to vector<8x8xf32>
    %8 = vector.broadcast %cst_5 : f32 to vector<8x8xf32>
    %9 = arith.select %6, %7, %8 : vector<8x8xi1>, vector<8x8xf32>
    %10 = vector.shape_cast %9 : vector<8x8xf32> to vector<1x8x8xf32>
    %11 = vector.broadcast %10 : vector<1x8x8xf32> to vector<2x8x8xf32>
    %12 = arith.addf %3, %11 : vector<2x8x8xf32>
    %c0_6 = arith.constant 0 : index
    %c0_7 = arith.constant 0 : index
    %13 = vector.load %arg3[%c0_6, %c0_7] : memref<32x32xbf16, #tpu.memory_space<vmem>>, vector<32x32xbf16>
    %c0_8 = arith.constant 0 : index
    %c0_9 = arith.constant 0 : index
    %14 = vector.load %arg4[%c0_8, %c0_9] : memref<32x64xbf16, #tpu.memory_space<vmem>>, vector<32x64xbf16>
    %c0_10 = arith.constant 0 : index
    %c0_11 = arith.constant 0 : index
    %15 = vector.load %arg5[%c0_10, %c0_11] : memref<1x32xf32, #tpu.memory_space<vmem>>, vector<1x32xf32>
    %c0_12 = arith.constant 0 : index
    %c0_13 = arith.constant 0 : index
    %16 = vector.load %arg6[%c0_12, %c0_13] : memref<1x64xf32, #tpu.memory_space<vmem>>, vector<1x64xf32>
    %c0_14 = arith.constant 0 : index
    %c0_15 = arith.constant 0 : index
    %17 = vector.load %arg7[%c0_14, %c0_15] : memref<32x32xbf16, #tpu.memory_space<vmem>>, vector<32x32xbf16>
    %c0_16 = arith.constant 0 : index
    %c0_17 = arith.constant 0 : index
    %18 = vector.load %arg8[%c0_16, %c0_17] : memref<1x32xf32, #tpu.memory_space<vmem>>, vector<1x32xf32>
    %c0_18 = arith.constant 0 : index
    %c0_19 = arith.constant 0 : index
    %19 = vector.load %arg9[%c0_18, %c0_19] : memref<1x32xf32, #tpu.memory_space<vmem>>, vector<1x32xf32>
    %c0_20 = arith.constant 0 : index
    %c0_21 = arith.constant 0 : index
    %20 = vector.load %arg10[%c0_20, %c0_21] : memref<1x32xf32, #tpu.memory_space<vmem>>, vector<1x32xf32>
    %21 = vector.shape_cast %0 : vector<2x8x32xbf16> to vector<16x32xbf16>
    %22 = arith.extf %21 : vector<16x32xbf16> to vector<16x32xf32>
    %23 = vector.shape_cast %0 : vector<2x8x32xbf16> to vector<16x32xbf16>
    %24 = vector.shape_cast %0 : vector<2x8x32xbf16> to vector<16x32xbf16>
    %cst_22 = arith.constant dense<0.000000e+00> : vector<16x32xf32>
    %25 = tpu.matmul %23, %13, %cst_22 {dimension_numbers = #tpu.dot_dimension_numbers<[1], [0], [0], [1], [0, 0, 1, 1], [], []>} : vector<16x32xbf16>, vector<32x32xbf16>, vector<16x32xf32> -> vector<16x32xf32>
    %26 = vector.broadcast %15 : vector<1x32xf32> to vector<16x32xf32>
    %27 = arith.addf %25, %26 : vector<16x32xf32>
    %cst_23 = arith.constant dense<0.000000e+00> : vector<16x64xf32>
    %28 = tpu.matmul %24, %14, %cst_23 {dimension_numbers = #tpu.dot_dimension_numbers<[1], [0], [0], [1], [0, 0, 1, 1], [], []>} : vector<16x32xbf16>, vector<32x64xbf16>, vector<16x64xf32> -> vector<16x64xf32>
    %29 = vector.broadcast %16 : vector<1x64xf32> to vector<16x64xf32>
    %30 = arith.addf %28, %29 : vector<16x64xf32>
    %cst_24 = arith.constant 0.353553385 : f32
    %31 = vector.broadcast %cst_24 : f32 to vector<16x32xf32>
    %32 = arith.mulf %27, %31 : vector<16x32xf32>
    %33 = vector.shape_cast %32 : vector<16x32xf32> to vector<2x8x32xf32>
    %34 = vector.extract_strided_slice %30 {offsets = [0, 0], sizes = [16, 32], strides = [1, 1]} : vector<16x64xf32> to vector<16x32xf32>
    %35 = vector.shape_cast %34 : vector<16x32xf32> to vector<2x8x32xf32>
    %36 = vector.extract_strided_slice %30 {offsets = [0, 32], sizes = [16, 32], strides = [1, 1]} : vector<16x64xf32> to vector<16x32xf32>
    %37 = vector.shape_cast %36 : vector<16x32xf32> to vector<2x8x32xf32>
    %38 = vector.extract_strided_slice %33 {offsets = [0, 0, 0], sizes = [2, 8, 8], strides = [1, 1, 1]} : vector<2x8x32xf32> to vector<2x8x8xf32>
    %39 = arith.truncf %38 : vector<2x8x8xf32> to vector<2x8x8xbf16>
    %40 = vector.extract_strided_slice %35 {offsets = [0, 0, 0], sizes = [2, 8, 8], strides = [1, 1, 1]} : vector<2x8x32xf32> to vector<2x8x8xf32>
    %41 = arith.truncf %40 : vector<2x8x8xf32> to vector<2x8x8xbf16>
    %42 = vector.extract_strided_slice %37 {offsets = [0, 0, 0], sizes = [2, 8, 8], strides = [1, 1, 1]} : vector<2x8x32xf32> to vector<2x8x8xf32>
    %43 = arith.truncf %42 : vector<2x8x8xf32> to vector<2x8x8xbf16>
    "tpu.trace_start"() <{level = 10 : i32, message = "bqd,bkd->bqk"}> : () -> ()
    %cst_25 = arith.constant dense<0.000000e+00> : vector<2x8x8xf32>
    %44 = tpu.matmul %39, %41, %cst_25 {dimension_numbers = #tpu.dot_dimension_numbers<[2], [2], [1], [1], [0, 0, 0, 1, 1, 1], [0], [0]>} : vector<2x8x8xbf16>, vector<2x8x8xbf16>, vector<2x8x8xf32> -> vector<2x8x8xf32>
    "tpu.trace_stop"() : () -> ()
    %45 = arith.addf %44, %12 : vector<2x8x8xf32>
    %cst_26 = arith.constant dense<0xFF800000> : vector<2x8xf32>
    %46 = vector.multi_reduction <maximumf>, %45, %cst_26 [2] : vector<2x8x8xf32> to vector<2x8xf32>
    %47 = vector.shape_cast %46 : vector<2x8xf32> to vector<2x8x1xf32>
    %48 = vector.broadcast %47 : vector<2x8x1xf32> to vector<2x8x8xf32>
    %49 = arith.subf %45, %48 : vector<2x8x8xf32>
    %50 = math.exp %49 : vector<2x8x8xf32>
    %cst_27 = arith.constant dense<0.000000e+00> : vector<2x8xf32>
    %51 = vector.multi_reduction <add>, %50, %cst_27 [2] : vector<2x8x8xf32> to vector<2x8xf32>
    %52 = vector.shape_cast %51 : vector<2x8xf32> to vector<2x8x1xf32>
    %53 = tpu.reciprocal %52 {approx = true} : vector<2x8x1xf32> -> vector<2x8x1xf32>
    %54 = vector.broadcast %53 : vector<2x8x1xf32> to vector<2x8x8xf32>
    %55 = arith.mulf %50, %54 : vector<2x8x8xf32>
    %56 = arith.truncf %55 : vector<2x8x8xf32> to vector<2x8x8xbf16>
    "tpu.trace_start"() <{level = 10 : i32, message = "bqk,bkd->bqd"}> : () -> ()
    %cst_28 = arith.constant dense<0.000000e+00> : vector<2x8x8xf32>
    %57 = tpu.matmul %56, %43, %cst_28 {dimension_numbers = #tpu.dot_dimension_numbers<[2], [1], [1], [2], [0, 0, 0, 1, 1, 2], [0], [0]>} : vector<2x8x8xbf16>, vector<2x8x8xbf16>, vector<2x8x8xf32> -> vector<2x8x8xf32>
    "tpu.trace_stop"() : () -> ()
    %58 = vector.shape_cast %57 : vector<2x8x8xf32> to vector<16x8xf32>
    %59 = arith.truncf %58 : vector<16x8xf32> to vector<16x8xbf16>
    %60 = vector.extract_strided_slice %33 {offsets = [0, 0, 8], sizes = [2, 8, 8], strides = [1, 1, 1]} : vector<2x8x32xf32> to vector<2x8x8xf32>
    %61 = arith.truncf %60 : vector<2x8x8xf32> to vector<2x8x8xbf16>
    %62 = vector.extract_strided_slice %35 {offsets = [0, 0, 8], sizes = [2, 8, 8], strides = [1, 1, 1]} : vector<2x8x32xf32> to vector<2x8x8xf32>
    %63 = arith.truncf %62 : vector<2x8x8xf32> to vector<2x8x8xbf16>
    %64 = vector.extract_strided_slice %37 {offsets = [0, 0, 8], sizes = [2, 8, 8], strides = [1, 1, 1]} : vector<2x8x32xf32> to vector<2x8x8xf32>
    %65 = arith.truncf %64 : vector<2x8x8xf32> to vector<2x8x8xbf16>
    "tpu.trace_start"() <{level = 10 : i32, message = "bqd,bkd->bqk"}> : () -> ()
    %cst_29 = arith.constant dense<0.000000e+00> : vector<2x8x8xf32>
    %66 = tpu.matmul %61, %63, %cst_29 {dimension_numbers = #tpu.dot_dimension_numbers<[2], [2], [1], [1], [0, 0, 0, 1, 1, 1], [0], [0]>} : vector<2x8x8xbf16>, vector<2x8x8xbf16>, vector<2x8x8xf32> -> vector<2x8x8xf32>
    "tpu.trace_stop"() : () -> ()
    %67 = arith.addf %66, %12 : vector<2x8x8xf32>
    %cst_30 = arith.constant dense<0xFF800000> : vector<2x8xf32>
    %68 = vector.multi_reduction <maximumf>, %67, %cst_30 [2] : vector<2x8x8xf32> to vector<2x8xf32>
    %69 = vector.shape_cast %68 : vector<2x8xf32> to vector<2x8x1xf32>
    %70 = vector.broadcast %69 : vector<2x8x1xf32> to vector<2x8x8xf32>
    %71 = arith.subf %67, %70 : vector<2x8x8xf32>
    %72 = math.exp %71 : vector<2x8x8xf32>
    %cst_31 = arith.constant dense<0.000000e+00> : vector<2x8xf32>
    %73 = vector.multi_reduction <add>, %72, %cst_31 [2] : vector<2x8x8xf32> to vector<2x8xf32>
    %74 = vector.shape_cast %73 : vector<2x8xf32> to vector<2x8x1xf32>
    %75 = tpu.reciprocal %74 {approx = true} : vector<2x8x1xf32> -> vector<2x8x1xf32>
    %76 = vector.broadcast %75 : vector<2x8x1xf32> to vector<2x8x8xf32>
    %77 = arith.mulf %72, %76 : vector<2x8x8xf32>
    %78 = arith.truncf %77 : vector<2x8x8xf32> to vector<2x8x8xbf16>
    "tpu.trace_start"() <{level = 10 : i32, message = "bqk,bkd->bqd"}> : () -> ()
    %cst_32 = arith.constant dense<0.000000e+00> : vector<2x8x8xf32>
    %79 = tpu.matmul %78, %65, %cst_32 {dimension_numbers = #tpu.dot_dimension_numbers<[2], [1], [1], [2], [0, 0, 0, 1, 1, 2], [0], [0]>} : vector<2x8x8xbf16>, vector<2x8x8xbf16>, vector<2x8x8xf32> -> vector<2x8x8xf32>
    "tpu.trace_stop"() : () -> ()
    %80 = vector.shape_cast %79 : vector<2x8x8xf32> to vector<16x8xf32>
    %81 = arith.truncf %80 : vector<16x8xf32> to vector<16x8xbf16>
    %82 = vector.extract_strided_slice %33 {offsets = [0, 0, 16], sizes = [2, 8, 8], strides = [1, 1, 1]} : vector<2x8x32xf32> to vector<2x8x8xf32>
    %83 = arith.truncf %82 : vector<2x8x8xf32> to vector<2x8x8xbf16>
    %84 = vector.extract_strided_slice %35 {offsets = [0, 0, 16], sizes = [2, 8, 8], strides = [1, 1, 1]} : vector<2x8x32xf32> to vector<2x8x8xf32>
    %85 = arith.truncf %84 : vector<2x8x8xf32> to vector<2x8x8xbf16>
    %86 = vector.extract_strided_slice %37 {offsets = [0, 0, 16], sizes = [2, 8, 8], strides = [1, 1, 1]} : vector<2x8x32xf32> to vector<2x8x8xf32>
    %87 = arith.truncf %86 : vector<2x8x8xf32> to vector<2x8x8xbf16>
    "tpu.trace_start"() <{level = 10 : i32, message = "bqd,bkd->bqk"}> : () -> ()
    %cst_33 = arith.constant dense<0.000000e+00> : vector<2x8x8xf32>
    %88 = tpu.matmul %83, %85, %cst_33 {dimension_numbers = #tpu.dot_dimension_numbers<[2], [2], [1], [1], [0, 0, 0, 1, 1, 1], [0], [0]>} : vector<2x8x8xbf16>, vector<2x8x8xbf16>, vector<2x8x8xf32> -> vector<2x8x8xf32>
    "tpu.trace_stop"() : () -> ()
    %89 = arith.addf %88, %12 : vector<2x8x8xf32>
    %cst_34 = arith.constant dense<0xFF800000> : vector<2x8xf32>
    %90 = vector.multi_reduction <maximumf>, %89, %cst_34 [2] : vector<2x8x8xf32> to vector<2x8xf32>
    %91 = vector.shape_cast %90 : vector<2x8xf32> to vector<2x8x1xf32>
    %92 = vector.broadcast %91 : vector<2x8x1xf32> to vector<2x8x8xf32>
    %93 = arith.subf %89, %92 : vector<2x8x8xf32>
    %94 = math.exp %93 : vector<2x8x8xf32>
    %cst_35 = arith.constant dense<0.000000e+00> : vector<2x8xf32>
    %95 = vector.multi_reduction <add>, %94, %cst_35 [2] : vector<2x8x8xf32> to vector<2x8xf32>
    %96 = vector.shape_cast %95 : vector<2x8xf32> to vector<2x8x1xf32>
    %97 = tpu.reciprocal %96 {approx = true} : vector<2x8x1xf32> -> vector<2x8x1xf32>
    %98 = vector.broadcast %97 : vector<2x8x1xf32> to vector<2x8x8xf32>
    %99 = arith.mulf %94, %98 : vector<2x8x8xf32>
    %100 = arith.truncf %99 : vector<2x8x8xf32> to vector<2x8x8xbf16>
    "tpu.trace_start"() <{level = 10 : i32, message = "bqk,bkd->bqd"}> : () -> ()
    %cst_36 = arith.constant dense<0.000000e+00> : vector<2x8x8xf32>
    %101 = tpu.matmul %100, %87, %cst_36 {dimension_numbers = #tpu.dot_dimension_numbers<[2], [1], [1], [2], [0, 0, 0, 1, 1, 2], [0], [0]>} : vector<2x8x8xbf16>, vector<2x8x8xbf16>, vector<2x8x8xf32> -> vector<2x8x8xf32>
    "tpu.trace_stop"() : () -> ()
    %102 = vector.shape_cast %101 : vector<2x8x8xf32> to vector<16x8xf32>
    %103 = arith.truncf %102 : vector<16x8xf32> to vector<16x8xbf16>
    %104 = vector.extract_strided_slice %33 {offsets = [0, 0, 24], sizes = [2, 8, 8], strides = [1, 1, 1]} : vector<2x8x32xf32> to vector<2x8x8xf32>
    %105 = arith.truncf %104 : vector<2x8x8xf32> to vector<2x8x8xbf16>
    %106 = vector.extract_strided_slice %35 {offsets = [0, 0, 24], sizes = [2, 8, 8], strides = [1, 1, 1]} : vector<2x8x32xf32> to vector<2x8x8xf32>
    %107 = arith.truncf %106 : vector<2x8x8xf32> to vector<2x8x8xbf16>
    %108 = vector.extract_strided_slice %37 {offsets = [0, 0, 24], sizes = [2, 8, 8], strides = [1, 1, 1]} : vector<2x8x32xf32> to vector<2x8x8xf32>
    %109 = arith.truncf %108 : vector<2x8x8xf32> to vector<2x8x8xbf16>
    "tpu.trace_start"() <{level = 10 : i32, message = "bqd,bkd->bqk"}> : () -> ()
    %cst_37 = arith.constant dense<0.000000e+00> : vector<2x8x8xf32>
    %110 = tpu.matmul %105, %107, %cst_37 {dimension_numbers = #tpu.dot_dimension_numbers<[2], [2], [1], [1], [0, 0, 0, 1, 1, 1], [0], [0]>} : vector<2x8x8xbf16>, vector<2x8x8xbf16>, vector<2x8x8xf32> -> vector<2x8x8xf32>
    "tpu.trace_stop"() : () -> ()
    %111 = arith.addf %110, %12 : vector<2x8x8xf32>
    %cst_38 = arith.constant dense<0xFF800000> : vector<2x8xf32>
    %112 = vector.multi_reduction <maximumf>, %111, %cst_38 [2] : vector<2x8x8xf32> to vector<2x8xf32>
    %113 = vector.shape_cast %112 : vector<2x8xf32> to vector<2x8x1xf32>
    %114 = vector.broadcast %113 : vector<2x8x1xf32> to vector<2x8x8xf32>
    %115 = arith.subf %111, %114 : vector<2x8x8xf32>
    %116 = math.exp %115 : vector<2x8x8xf32>
    %cst_39 = arith.constant dense<0.000000e+00> : vector<2x8xf32>
    %117 = vector.multi_reduction <add>, %116, %cst_39 [2] : vector<2x8x8xf32> to vector<2x8xf32>
    %118 = vector.shape_cast %117 : vector<2x8xf32> to vector<2x8x1xf32>
    %119 = tpu.reciprocal %118 {approx = true} : vector<2x8x1xf32> -> vector<2x8x1xf32>
    %120 = vector.broadcast %119 : vector<2x8x1xf32> to vector<2x8x8xf32>
    %121 = arith.mulf %116, %120 : vector<2x8x8xf32>
    %122 = arith.truncf %121 : vector<2x8x8xf32> to vector<2x8x8xbf16>
    "tpu.trace_start"() <{level = 10 : i32, message = "bqk,bkd->bqd"}> : () -> ()
    %cst_40 = arith.constant dense<0.000000e+00> : vector<2x8x8xf32>
    %123 = tpu.matmul %122, %109, %cst_40 {dimension_numbers = #tpu.dot_dimension_numbers<[2], [1], [1], [2], [0, 0, 0, 1, 1, 2], [0], [0]>} : vector<2x8x8xbf16>, vector<2x8x8xbf16>, vector<2x8x8xf32> -> vector<2x8x8xf32>
    "tpu.trace_stop"() : () -> ()
    %124 = vector.shape_cast %123 : vector<2x8x8xf32> to vector<16x8xf32>
    %125 = arith.truncf %124 : vector<16x8xf32> to vector<16x8xbf16>
    %126 = tpu.concatenate %59, %81, %103, %125 in 1 : vector<16x8xbf16>, vector<16x8xbf16>, vector<16x8xbf16>, vector<16x8xbf16> -> vector<16x32xbf16>
    %cst_41 = arith.constant dense<0.000000e+00> : vector<16x32xf32>
    %127 = tpu.matmul %126, %17, %cst_41 {dimension_numbers = #tpu.dot_dimension_numbers<[1], [0], [0], [1], [0, 0, 1, 1], [], []>} : vector<16x32xbf16>, vector<32x32xbf16>, vector<16x32xf32> -> vector<16x32xf32>
    %128 = vector.broadcast %18 : vector<1x32xf32> to vector<16x32xf32>
    %129 = arith.addf %127, %128 : vector<16x32xf32>
    %130 = arith.addf %22, %129 : vector<16x32xf32>
    %cst_42 = arith.constant dense<0.000000e+00> : vector<16xf32>
    %131 = vector.multi_reduction <add>, %130, %cst_42 [1] : vector<16x32xf32> to vector<16xf32>
    %132 = vector.shape_cast %131 : vector<16xf32> to vector<16x1xf32>
    %cst_43 = arith.constant 3.200000e+01 : f32
    %133 = vector.broadcast %cst_43 : f32 to vector<16x1xf32>
    %134 = arith.divf %132, %133 : vector<16x1xf32>
    %135 = vector.broadcast %134 : vector<16x1xf32> to vector<16x32xf32>
    %136 = arith.subf %130, %135 : vector<16x32xf32>
    %137 = arith.mulf %136, %136 : vector<16x32xf32>
    %cst_44 = arith.constant dense<0.000000e+00> : vector<16xf32>
    %138 = vector.multi_reduction <add>, %137, %cst_44 [1] : vector<16x32xf32> to vector<16xf32>
    %139 = vector.shape_cast %138 : vector<16xf32> to vector<16x1xf32>
    %cst_45 = arith.constant 3.200000e+01 : f32
    %140 = vector.broadcast %cst_45 : f32 to vector<16x1xf32>
    %141 = arith.divf %139, %140 : vector<16x1xf32>
    %142 = vector.broadcast %134 : vector<16x1xf32> to vector<16x32xf32>
    %143 = arith.subf %130, %142 : vector<16x32xf32>
    %cst_46 = arith.constant 9.99999974E-6 : f32
    %144 = vector.broadcast %cst_46 : f32 to vector<16x1xf32>
    %145 = arith.addf %141, %144 : vector<16x1xf32>
    %146 = math.rsqrt %145 : vector<16x1xf32>
    %147 = vector.broadcast %146 : vector<16x1xf32> to vector<16x32xf32>
    %148 = arith.mulf %143, %147 : vector<16x32xf32>
    %149 = vector.broadcast %19 : vector<1x32xf32> to vector<16x32xf32>
    %150 = arith.mulf %148, %149 : vector<16x32xf32>
    %151 = vector.broadcast %20 : vector<1x32xf32> to vector<16x32xf32>
    %152 = arith.addf %150, %151 : vector<16x32xf32>
    %153 = vector.shape_cast %152 : vector<16x32xf32> to vector<2x8x32xf32>
    %154 = arith.truncf %153 : vector<2x8x32xf32> to vector<2x8x32xbf16>
    %c0_47 = arith.constant 0 : index
    %c0_48 = arith.constant 0 : index
    %c0_49 = arith.constant 0 : index
    %155 = vector.load %arg11[%c0_47, %c0_48, %c0_49] : memref<2x8x32xbf16, #tpu.memory_space<vmem>>, vector<2x8x32xbf16>
    tpu.vector_store %arg11[%c0_47, %c0_48, %c0_49], %154 {strides = array<i32>} : memref<2x8x32xbf16, #tpu.memory_space<vmem>>, vector<2x8x32xbf16>,
    return
  }
  func.func @transform_0(%arg0: i32) -> (i32, i32, i32) {
    %c0_i32 = arith.constant 0 : i32
    %c0_i32_0 = arith.constant 0 : i32
    %c0_i32_1 = arith.constant 0 : i32
    return %arg0, %c0_i32, %c0_i32_0 : i32, i32, i32
  }
  func.func @transform_1(%arg0: i32) -> (i32, i32, i32) {
    %c0_i32 = arith.constant 0 : i32
    %c0_i32_0 = arith.constant 0 : i32
    %c0_i32_1 = arith.constant 0 : i32
    return %arg0, %c0_i32, %c0_i32_0 : i32, i32, i32
  }
  func.func @transform_2(%arg0: i32) -> (i32, i32) {
    %c0_i32 = arith.constant 0 : i32
    %c0_i32_0 = arith.constant 0 : i32
    %c0_i32_1 = arith.constant 0 : i32
    return %c0_i32, %c0_i32_0 : i32, i32
  }
  func.func @transform_3(%arg0: i32) -> (i32, i32) {
    %c0_i32 = arith.constant 0 : i32
    %c0_i32_0 = arith.constant 0 : i32
    %c0_i32_1 = arith.constant 0 : i32
    return %c0_i32, %c0_i32_0 : i32, i32
  }
  func.func @transform_4(%arg0: i32) -> (i32, i32) {
    %c0_i32 = arith.constant 0 : i32
    %c0_i32_0 = arith.constant 0 : i32
    %c0_i32_1 = arith.constant 0 : i32
    return %c0_i32, %c0_i32_0 : i32, i32
  }
  func.func @transform_5(%arg0: i32) -> (i32, i32) {
    %c0_i32 = arith.constant 0 : i32
    %c0_i32_0 = arith.constant 0 : i32
    %c0_i32_1 = arith.constant 0 : i32
    return %c0_i32, %c0_i32_0 : i32, i32
  }
  func.func @transform_6(%arg0: i32) -> (i32, i32) {
    %c0_i32 = arith.constant 0 : i32
    %c0_i32_0 = arith.constant 0 : i32
    %c0_i32_1 = arith.constant 0 : i32
    return %c0_i32, %c0_i32_0 : i32, i32
  }
  func.func @transform_7(%arg0: i32) -> (i32, i32) {
    %c0_i32 = arith.constant 0 : i32
    %c0_i32_0 = arith.constant 0 : i32
    %c0_i32_1 = arith.constant 0 : i32
    return %c0_i32, %c0_i32_0 : i32, i32
  }
  func.func @transform_8(%arg0: i32) -> (i32, i32) {
    %c0_i32 = arith.constant 0 : i32
    %c0_i32_0 = arith.constant 0 : i32
    %c0_i32_1 = arith.constant 0 : i32
    return %c0_i32, %c0_i32_0 : i32, i32
  }
  func.func @transform_9(%arg0: i32) -> (i32, i32) {
    %c0_i32 = arith.constant 0 : i32
    %c0_i32_0 = arith.constant 0 : i32
    %c0_i32_1 = arith.constant 0 : i32
    return %c0_i32, %c0_i32_0 : i32, i32
  }
  func.func @transform_10(%arg0: i32) -> (i32, i32, i32) {
    %c0_i32 = arith.constant 0 : i32
    %c0_i32_0 = arith.constant 0 : i32
    %c0_i32_1 = arith.constant 0 : i32
    return %arg0, %c0_i32, %c0_i32_0 : i32, i32, i32
  }
}

module attributes {stable_mosaic.version = 11 : i64} {
  func.func @_logits_kernel(%arg0: i32, %arg1: i32, %arg2: memref<16x32xbf16, #tpu.memory_space<vmem>>, %arg3: memref<32x128xbf16, #tpu.memory_space<vmem>>, %arg4: memref<1x128xf32, #tpu.memory_space<vmem>>, %arg5: memref<16x128xf32, #tpu.memory_space<vmem>>) attributes {dimension_semantics = [#tpu.dimension_semantics<parallel>, #tpu.dimension_semantics<parallel>], iteration_bounds = array<i64: 1, 1>, scalar_prefetch = 0 : i64, scratch_operands = 0 : i64, tpu.core_type = #tpu.core_type<tc>, window_params = [{transform_indices = @transform_0, window_bounds = array<i64: 16, 32>}, {transform_indices = @transform_1, window_bounds = array<i64: 32, 128>}, {transform_indices = @transform_2, window_bounds = array<i64: 1, 128>}, {transform_indices = @transform_3, window_bounds = array<i64: 16, 128>}]} {
    %c0 = arith.constant 0 : index
    %c0_0 = arith.constant 0 : index
    %0 = vector.load %arg2[%c0, %c0_0] : memref<16x32xbf16, #tpu.memory_space<vmem>>, vector<16x32xbf16>
    %c0_1 = arith.constant 0 : index
    %c0_2 = arith.constant 0 : index
    %1 = vector.load %arg3[%c0_1, %c0_2] : memref<32x128xbf16, #tpu.memory_space<vmem>>, vector<32x128xbf16>
    %cst = arith.constant dense<0.000000e+00> : vector<16x128xf32>
    %2 = tpu.matmul %0, %1, %cst {dimension_numbers = #tpu.dot_dimension_numbers<[1], [0], [0], [1], [0, 0, 1, 1], [], []>} : vector<16x32xbf16>, vector<32x128xbf16>, vector<16x128xf32> -> vector<16x128xf32>
    %c0_3 = arith.constant 0 : index
    %c0_4 = arith.constant 0 : index
    %3 = vector.load %arg4[%c0_3, %c0_4] : memref<1x128xf32, #tpu.memory_space<vmem>>, vector<1x128xf32>
    %4 = vector.broadcast %3 : vector<1x128xf32> to vector<16x128xf32>
    %5 = arith.addf %2, %4 : vector<16x128xf32>
    %c0_5 = arith.constant 0 : index
    %c0_6 = arith.constant 0 : index
    %6 = vector.load %arg5[%c0_5, %c0_6] : memref<16x128xf32, #tpu.memory_space<vmem>>, vector<16x128xf32>
    tpu.vector_store %arg5[%c0_5, %c0_6], %5 {strides = array<i32>} : memref<16x128xf32, #tpu.memory_space<vmem>>, vector<16x128xf32>,
    return
  }
  func.func @transform_0(%arg0: i32, %arg1: i32) -> (i32, i32) {
    %c0_i32 = arith.constant 0 : i32
    %c0_i32_0 = arith.constant 0 : i32
    return %arg1, %c0_i32 : i32, i32
  }
  func.func @transform_1(%arg0: i32, %arg1: i32) -> (i32, i32) {
    %c0_i32 = arith.constant 0 : i32
    %c0_i32_0 = arith.constant 0 : i32
    return %c0_i32, %arg0 : i32, i32
  }
  func.func @transform_2(%arg0: i32, %arg1: i32) -> (i32, i32) {
    %c0_i32 = arith.constant 0 : i32
    %c0_i32_0 = arith.constant 0 : i32
    return %c0_i32, %arg0 : i32, i32
  }
  func.func @transform_3(%arg0: i32, %arg1: i32) -> (i32, i32) {
    %c0_i32 = arith.constant 0 : i32
    return %arg1, %arg0 : i32, i32
  }
}

</mosaic_0001>

<bundles_post_ra>
// kernel: translation_transformer_forward.12
= control target key start
LH: loop header
LB: loop body
LE: loop exit
PB: predicated region body
PF: predicated region fallthrough
CT: control target
= control target key end

     0   :  { %v312_v0 = vmov 0.0   ;;  %vm313_vm0 = vmmov 0   ;;  %vm57_vm1 = vcmask 261120   ;;  %vm144_vm2 = vcmask 523264   ;;  %s398_s1 = inlined_call_operand.vmem [shape: bf16[32,64], index: 1, kind: input, shape index: {}]   ;;  %s399_s0 = inlined_call_operand.vmem [shape: bf16[16,32], index: 0, kind: input, shape index: {}]   ;;  %s400_s3 = inlined_call_operand.vmem [shape: bf16[64,32], index: 3, kind: input, shape index: {}]   ;;  %s401_s2 = inlined_call_operand.vmem [shape: f32[1,64], index: 2, kind: input, shape index: {}]   ;;  %s402_s4 = inlined_call_operand.vmem [shape: f32[1,32], index: 4, kind: input, shape index: {}]   ;;  %s403_s5 = inlined_call_operand.vmem [shape: f32[1,32], index: 5, kind: input, shape index: {}]   ;;  %s404_s6 = inlined_call_operand.vmem [shape: f32[1,32], index: 6, kind: input, shape index: {}]   ;;  %s405_s7 = inlined_call_operand.vmem [shape: bf16[16,32], index: 7, kind: output, shape index: {}]  }
   0x1   :  { %278 = vmatprep.subr.bf16.mxu0 %v312_v0  ;;  %v300_v1 = vld [vmem:[%s398_s1] sm:$0xff]   ;;  %282 = vmatprep.mubr.msk.bf16.mxu0 %vm313_vm0, %v312_v0  ;;  %v301_v2 = vld [vmem:[%s398_s1 + $0x8] sm:$0xff]   ;;  %v305_v6 = vld [vmem:[%s400_s3 + $0x10] sm:$0xff]   ;;  %vm246_vm3 = vcmask 257024  }
   0x2   :  { %286 = vmatprep.subr.bf16.mxu1 %v312_v0  ;;  %294 = vmatprep.mubr.msk.bf16.mxu1 %vm313_vm0, %v312_v0  ;;  %v27_v3 = vld [vmem:[%s399_s0] sm:$0xff]   ;;  %v304_v5 = vld [vmem:[%s400_s3 + $0x8] sm:$0xff]   ;;  %v306_v7 = vld [vmem:[%s400_s3 + $0x18] sm:$0xff]  }
   0x3   :  { %279 = vmatpush3.bf16.msra.mxu0 %v300_v1  ;;  %v303_v4 = vld [vmem:[%s400_s3] sm:$0xff]   ;;  %v189_v19 = vunpack.c.l.bf16 %v27_v3  ;;  %v190_v23 = vunpack.c.h.bf16 %v27_v3 }
   0x4   :  { %280 = vmatprep.subr.bf16.mxu0 %v312_v0  ;;  %287 = vmatpush3.bf16.msra.mxu1 %v303_v4  ;;  %v253_v8 = vld [vmem:[%s401_s2] ss:$0 sm:$0xff] }
   0x5   :  { %288 = vmatprep.subr.bf16.mxu1 %v312_v0  ;;  %v258_v18 = vld [vmem:[%s402_s4] ss:$0 sm:$0xff] }
   0x6   :  { %v264_v48 = vld [vmem:[%s403_s5] ss:$0 sm:$0xff] }
   0x7   :  { %281 = vmatpush3.bf16.msra.mxu0 %v301_v2  ;;  %v265_v50 = vld [vmem:[%s404_s6] ss:$0 sm:$0xff] }
   0x8   :  { %289 = vmatpush3.bf16.msra.mxu1 %v304_v5 }
   0x9   :  { %290 = vmatprep.subr.bf16.mxu1 %v312_v0 }
   0xa   :  { %283 = vmatmul.mubr.msk.bf16.vlgmr.msra.gmra.mrb[0].mxu0 %vm57_vm1, %v27_v3 }
   0xc   :  { %291 = vmatpush3.bf16.msra.mxu1 %v305_v6 }
   0xd   :  { %292 = vmatprep.subr.bf16.mxu1 %v312_v0 }
  0x10   :  { %293 = vmatpush3.bf16.msra.mxu1 %v306_v7 }
  0xdd   :  { %v95_v9 = vpop.f32.mrb[0].mxu0 }
  0xde   :  { %v96_v10 = vadd.f32 %v253_v8, %v95_v9  ;;  %v284_v11 = vpop.f32.mrb[1].mxu0 }
  0xdf   :  { %v98_v12 = vpop.f32.mrb[2].mxu0 }
  0xe0   :  { %v99_v13 = vadd.f32 %v253_v8, %v98_v12  ;;  %v285_v14 = vpop.f32.mrb[3].mxu0  ;;  %v102_v15 = vmax.f32 %v96_v10, 0.0 }
  0xe2   :  { %v103_v16 = vmax.f32 %v99_v13, 0.0 }
  0xe4   :  { %v104_v17 = vpack.c.bf16 %v103_v16, %v102_v15 }
  0xe6   :  { %295 = vmatmul.mubr.msk.bf16.vlgmr.msra.gmra.mrb[0].mxu1 %vm144_vm2, %v104_v17 }
 0x1b9   :  { %v182_v20 = vpop.f32.mrb[0].mxu1 }
 0x1ba   :  { %v183_v21 = vadd.f32 %v258_v18, %v182_v20  ;;  %v296_v22 = vpop.f32.mrb[1].mxu1 }
 0x1bb   :  { %v185_v24 = vpop.f32.mrb[2].mxu1 }
 0x1bc   :  { %v186_v25 = vadd.f32 %v258_v18, %v185_v24  ;;  %v297_v26 = vpop.f32.mrb[3].mxu1  ;;  %v191_v27 = vadd.f32 %v189_v19, %v183_v21 }
 0x1be   :  { %v193_v28 = vsel %vm57_vm1, %v191_v27, 0.0  ;;  %v192_v29 = vadd.f32 %v190_v23, %v186_v25 }
 0x1bf   :  { %194 = vadd.xlane.f32.xlu0 %v193_v28 }
 0x1c0   :  { %v196_v30 = vsel %vm57_vm1, %v192_v29, 0.0 }
 0x1c3   :  { %197 = vadd.xlane.f32.xlu0 %v196_v30 }
 0x24c   :  { %v195_v31 = vpop.xlane.xlu0 %194 }
 0x24d   :  { %v200_v32 = vmul.f32 0.03125, %v195_v31 }
 0x24f   :  { %v202_v33 = vsub.f32 %v191_v27, %v200_v32 }
 0x250   :  { %v198_v34 = vpop.xlane.xlu0 %197 }
 0x251   :  { %v201_v35 = vmul.f32 0.03125, %v198_v34  ;;  %v204_v36 = vmul.f32 %v202_v33, %v202_v33 }
 0x253   :  { %v203_v37 = vsub.f32 %v192_v29, %v201_v35  ;;  %v206_v38 = vsel %vm57_vm1, %v204_v36, 0.0 }
 0x254   :  { %207 = vadd.xlane.f32.xlu1 %v206_v38 }
 0x255   :  { %v205_v39 = vmul.f32 %v203_v37, %v203_v37 }
 0x257   :  { %v209_v40 = vsel %vm57_vm1, %v205_v39, 0.0 }
 0x258   :  { %210 = vadd.xlane.f32.xlu1 %v209_v40 }
 0x2e1   :  { %v208_v41 = vpop.xlane.xlu1 %207 }
 0x2e2   :  { %v212_v42 = vmul.f32 0.03125, %v208_v41 }
 0x2e4   :  { %v214_v43 = vadd.f32 1e-05, %v212_v42 }
 0x2e5   :  { %v211_v44 = vpop.xlane.xlu1 %210 }
 0x2e6   :  { %308 = vrsqrt.f32 %v214_v43  ;;  %v213_v45 = vmul.f32 0.03125, %v211_v44 }
 0x2e8   :  { %v215_v46 = vadd.f32 1e-05, %v213_v45 }
 0x2ea   :  { %310 = vrsqrt.f32 %v215_v46 }
 0x2f0   :  { %v309_v47 = vpop.eup %308 }
 0x2f1   :  { %v218_v49 = vmul.f32 %v309_v47, %v202_v33 }
 0x2f3   :  { %v227_v51 = vmul.f32 %v264_v48, %v218_v49 }
 0x2f4   :  { %v311_v52 = vpop.eup %310 }
 0x2f5   :  { %v236_v53 = vadd.f32 %v265_v50, %v227_v51  ;;  %v219_v54 = vmul.f32 %v311_v52, %v203_v37 }
 0x2f7   :  { %v268_v55 = vpack.c.bf16 %v236_v53, %v236_v53  ;;  %v228_v56 = vmul.f32 %v264_v48, %v219_v54 }
 0x2f9   :  { %247 = vst.msk [vmem:[%s405_s7] sm:$0xf] %vm246_vm3, %v268_v55  ;;  %v237_v57 = vadd.f32 %v265_v50, %v228_v56 }
 0x2fb   :  { %v269_v58 = vpack.c.bf16 %v237_v57, %v237_v57 }
 0x2fd   :  { %248 = vst.msk [vmem:[%s405_s7 + $0x4] sm:$0xf] %vm246_vm3, %v269_v58 }

// kernel: translation_transformer_forward.11
= control target key start
LH: loop header
LB: loop body
LE: loop exit
PB: predicated region body
PF: predicated region fallthrough
CT: control target
= control target key end

     0   :  { %v1469_v0 = vmov 0.0   ;;  %vm1470_vm0 = vmmov 0   ;;  %vm94_vm1 = vcmask 261120   ;;  %vm204_vm2 = vcmask 64512   ;;  %s1474_s28 = smov 112   ;;  %s1475_s29 = smov 80   ;;  %s1774_s3 = inlined_call_operand.vmem [shape: bf16[32,64], index: 3, kind: input, shape index: {}]   ;;  %s1775_s2 = inlined_call_operand.vmem [shape: bf16[32,32], index: 2, kind: input, shape index: {}]   ;;  %s1776_s0 = inlined_call_operand.vmem [shape: bf16[2,8,32], index: 0, kind: input, shape index: {}]   ;;  %s1777_s5 = inlined_call_operand.vmem [shape: f32[1,64], index: 5, kind: input, shape index: {}]   ;;  %s1778_s4 = inlined_call_operand.vmem [shape: f32[1,32], index: 4, kind: input, shape index: {}]   ;;  %s1779_s1 = inlined_call_operand.vmem [shape: f32[2,1,8], index: 1, kind: input, shape index: {}]   ;;  %s1780_s6 = inlined_call_operand.vmem [shape: bf16[32,32], index: 6, kind: input, shape index: {}]   ;;  %s1781_s7 = inlined_call_operand.vmem [shape: f32[1,32], index: 7, kind: input, shape index: {}]   ;;  %s1782_s8 = inlined_call_operand.vmem [shape: f32[1,32], index: 8, kind: input, shape index: {}]   ;;  %s1783_s9 = inlined_call_operand.vmem [shape: f32[1,32], index: 9, kind: input, shape index: {}]   ;;  %s1784_s10 = inlined_call_operand.vmem [shape: bf16[2,8,32], index: 10, kind: output, shape index: {}]  }
   0x1   :  { %1301 = vmatprep.subr.bf16.mxu1 %v1469_v0  ;;  %v1425_v1 = vld [vmem:[%s1774_s3] sm:$0xff]   ;;  %1293 = vmatprep.subr.bf16.mxu0 %v1469_v0  ;;  %v1427_v3 = vld [vmem:[%s1774_s3 + $0x8] sm:$0xff]   ;;  %vm327_vm3 = vcmask 1043456   ;;  %s1476_s30 = smov 104   ;;  %s1477_s11 = smov 72   ;;  %vm1098_vm4 = vcmask 130048  }
   0x2   :  { %v1426_v2 = vld [vmem:[%s1775_s2] sm:$0xff]   ;;  %1305 = vmatprep.mubr.msk.bf16.mxu1 %vm1470_vm0, %v1469_v0  ;;  %1297 = vmatprep.mubr.msk.bf16.mxu0 %vm1470_vm0, %v1469_v0  ;;  %v1428_v4 = vld [vmem:[%s1775_s2 + $0x8] sm:$0xff]   ;;  %s1478_s12 = smov 8   ;;  %s1479_s13 = smov 16   ;;  %vm1101_vm5 = vcmask 195584   ;;  %vm1212_vm6 = vcmask 257024  }
   0x3   :  { %1302 = vmatpush3.bf16.msra.mxu1 %v1425_v1  ;;  %1294 = vmatpush3.bf16.msra.mxu0 %v1426_v2  ;;  %v1559_v5 = vld [vmem:[%s1776_s0] sm:$0xff]   ;;  %s1480_s18 = smov 24  }
   0x4   :  { %1303 = vmatprep.subr.bf16.mxu1 %v1469_v0  ;;  %1295 = vmatprep.subr.bf16.mxu0 %v1469_v0  ;;  %v1226_v6 = vld [vmem:[%s1777_s5] ss:$0 sm:$0xff]  ;;  %s1472_s5 = smov 120   ;;  %v1613_v32 = vld [vmem:[%s1779_s1 + $0x1] ss:$0 sm:$0xff] }
   0x5   :  { %v1221_v7 = vld [vmem:[%s1778_s4] ss:$0 sm:$0xff]  ;;  %s1471_s4 = smov 96  }
   0x6   :  { %v1608_v30 = vld [vmem:[%s1779_s1] ss:$0 sm:$0xff]  ;;  %s1473_s1 = smov 88  }
   0x7   :  { %1304 = vmatpush3.bf16.msra.mxu1 %v1427_v3  ;;  %1296 = vmatpush3.bf16.msra.mxu0 %v1428_v4 }
   0x8   :  { %1315 = vmatprep.subr.bf16.mxu1 %v1469_v0  ;;  %1309 = vmatprep.subr.bf16.mxu0 %v1469_v0 }
   0xa   :  { %1306 = vmatmul.mubr.msk.bf16.vlgmr.msra.gmra.mrb[0].mxu1 %vm94_vm1, %v1559_v5  ;;  %1298 = vmatmul.mubr.msk.bf16.vlgmr.msra.gmra.mrb[0].mxu0 %vm94_vm1, %v1559_v5 }
   0xb   :  { %1317 = vmatprep.mubr.msk.bf16.mxu1 %vm1470_vm0, %v1469_v0  ;;  %1311 = vmatprep.mubr.msk.bf16.mxu0 %vm1470_vm0, %v1469_v0 }
  0xdd   :  { %v191_v8 = vpop.f32.mrb[0].mxu1  ;;  %v132_v11 = vpop.f32.mrb[0].mxu0 }
  0xde   :  { %v192_v9 = vadd.f32 %v1226_v6, %v191_v8  ;;  %v1307_v10 = vpop.f32.mrb[1].mxu1  ;;  %v133_v13 = vadd.f32 %v1221_v7, %v132_v11  ;;  %v1299_v14 = vpop.f32.mrb[1].mxu0 }
  0xdf   :  { %v194_v12 = vpop.f32.mrb[2].mxu1  ;;  %v135_v18 = vpop.f32.mrb[2].mxu0 }
  0xe0   :  { %v1577_v15 = vpack.c.bf16 %v192_v9, %v192_v9  ;;  %v195_v16 = vadd.f32 %v1226_v6, %v194_v12  ;;  %v1308_v17 = vpop.f32.mrb[3].mxu1  ;;  %v1300_v19 = vpop.f32.mrb[3].mxu0  ;;  %v198_v21 = vmul.f32 0.35355338, %v133_v13  ;;  %v136_v22 = vadd.f32 %v1221_v7, %v135_v18 }
  0xe2   :  { %v1579_v20 = vpack.c.bf16 %v195_v16, %v195_v16  ;;  %v209_v23 = vsel %vm204_vm2, %v1577_v15, 0  ;;  %v1588_v25 = vpack.c.bf16 %v198_v21, %v198_v21  ;;  %v199_v26 = vmul.f32 0.35355338, %v136_v22 }
  0xe3   :  { %1310 = vmatpush3.bf16.xpose.msra.mxu0 %v209_v23 }
  0xe4   :  { %372 = vrot.lane.b32.xlu1 %v1579_v20, %s1471_s4  ;;  %v255_v24 = vsel %vm204_vm2, %v1579_v20, 0  ;;  %1321 = vmatprep.subr.bf16.mxu0 %v1469_v0  ;;  %v1593_v27 = vpack.c.bf16 %v199_v26, %v199_v26 }
  0xe5   :  { %1316 = vmatpush3.bf16.xpose.msra.mxu1 %v255_v24 }
  0xe6   :  { %1327 = vmatprep.subr.bf16.mxu1 %v1469_v0 }
  0xe8   :  { %424 = vrot.lane.b32.xlu1 %v1577_v15, %s1472_s5 }
  0xea   :  { %1312 = vmatmul.mubr.msk.bf16.vlgmr.msra.gmra.mrb[4].mxu0 %vm204_vm2, %v1588_v25 }
  0xeb   :  { %1323 = vmatprep.mubr.msk.bf16.mxu0 %vm1470_vm0, %v1469_v0 }
  0xec   :  { %1318 = vmatmul.mubr.msk.bf16.vlgmr.msra.gmra.mrb[4].mxu1 %vm204_vm2, %v1593_v27 }
  0xed   :  { %1329 = vmatprep.mubr.msk.bf16.mxu1 %vm1470_vm0, %v1469_v0 }
 0x156   :  { %v373_v28 = vpop.permute.xlu1 %372 }
 0x157   :  { %v378_v29 = vsel %vm327_vm3, %v373_v28, 0 }
 0x158   :  { %1328 = vmatpush3.bf16.msra.mxu1 %v378_v29 }
 0x159   :  { %1339 = vmatprep.subr.bf16.mxu1 %v1469_v0 }
 0x15a   :  { %v425_v56 = vpop.permute.xlu1 %424 }
 0x15b   :  { %v430_v63 = vsel %vm204_vm2, %v425_v56, 0 }
 0x1bd   :  { %v245_v31 = vpop.f32.mrb[4].mxu0 }
 0x1be   :  { %v246_v33 = vadd.f32 %v1608_v30, %v245_v31  ;;  %v1313_v34 = vpop.f32.mrb[5].mxu0 }
 0x1bf   :  { %v248_v35 = vpop.f32.mrb[6].mxu0  ;;  %v291_v36 = vpop.f32.mrb[4].mxu1 }
 0x1c0   :  { %v292_v37 = vadd.f32 %v1613_v32, %v291_v36  ;;  %v1314_v38 = vpop.f32.mrb[7].mxu0  ;;  %v1319_v39 = vpop.f32.mrb[5].mxu1  ;;  %v297_v40 = vsel %vm204_vm2, %v246_v33, -inf }
 0x1c1   :  { %v294_v41 = vpop.f32.mrb[6].mxu1  ;;  %298 = vmax.xlane.f32.xlu0 %v297_v40 }
 0x1c2   :  { %v1320_v42 = vpop.f32.mrb[7].mxu1  ;;  %v300_v43 = vsel %vm204_vm2, %v292_v37, -inf }
 0x1c5   :  { %301 = vmax.xlane.f32.xlu0 %v300_v43 }
 0x1db   :  { %322 = vrot.lane.b32.xlu0 %v1577_v15, %s1471_s4 }
 0x1df   :  { %422 = vrot.lane.b32.xlu0 %v1588_v25, %s1472_s5 }
 0x24e   :  { %v299_v44 = vpop.xlane.xlu0 %298 }
 0x24f   :  { %v303_v45 = vsub.f32 %v246_v33, %v299_v44 }
 0x251   :  { %v305_v46 = vmul.f32 1.442695, %v303_v45 }
 0x252   :  { %v302_v47 = vpop.xlane.xlu0 %301 }
 0x253   :  { %1433 = vpow2.f32 %v305_v46  ;;  %v304_v48 = vsub.f32 %v292_v37, %v302_v47 }
 0x255   :  { %v307_v49 = vmul.f32 1.442695, %v304_v48 }
 0x256   :  { %v323_v50 = vpop.permute.xlu0 %322 }
 0x257   :  { %1435 = vpow2.f32 %v307_v49  ;;  %v329_v51 = vsel %vm327_vm3, %v323_v50, 0 }
 0x258   :  { %1322 = vmatpush3.bf16.msra.mxu0 %v329_v51 }
 0x259   :  { %1333 = vmatprep.subr.bf16.mxu0 %v1469_v0 }
 0x25a   :  { %v423_v6 = vpop.permute.xlu0 %422 }
 0x25d   :  { %v1434_v52 = vpop.eup %1433 }
 0x25e   :  { %v309_v53 = vsel %vm204_vm2, %v1434_v52, 0.0 }
 0x25f   :  { %310 = vadd.xlane.f32.xlu1 %v309_v53 }
 0x261   :  { %v1436_v54 = vpop.eup %1435 }
 0x262   :  { %v312_v55 = vsel %vm204_vm2, %v1436_v54, 0.0 }
 0x263   :  { %313 = vadd.xlane.f32.xlu1 %v312_v55 }
 0x274   :  { %475 = vrot.lane.b32.xlu1 %v1579_v20, %s1472_s5 }
 0x278   :  { %473 = vrot.lane.b32.xlu1 %v1593_v27, %s1472_s5 }
 0x2ec   :  { %v311_v57 = vpop.xlane.xlu1 %310 }
 0x2ed   :  { %1437 = vrcp.f32 %v311_v57 }
 0x2f0   :  { %v314_v58 = vpop.xlane.xlu1 %313 }
 0x2f1   :  { %1439 = vrcp.f32 %v314_v58 }
 0x2f4   :  { %v476_v2 = vpop.permute.xlu1 %475 }
 0x2f5   :  { %v481_v4 = vsel %vm204_vm2, %v476_v2, 0 }
 0x2f7   :  { %v1438_v59 = vpop.eup %1437 }
 0x2f8   :  { %v317_v60 = vmul.f32 %v1438_v59, %v1434_v52  ;;  %v474_v7 = vpop.permute.xlu1 %473 }
 0x2fa   :  { %v319_v61 = vpack.c.bf16 %v317_v60, %v317_v60 }
 0x2fb   :  { %v1440_v62 = vpop.eup %1439 }
 0x2fc   :  { %v318_v1 = vmul.f32 %v1440_v62, %v1436_v54  ;;  %1324 = vmatmul.mubr.msk.bf16.vlgmr.msra.gmra.mrb[8].mxu0 %vm204_vm2, %v319_v61 }
 0x2fd   :  { %1334 = vmatpush3.bf16.xpose.msra.mxu0 %v430_v63  ;;  %1335 = vmatprep.mubr.msk.bf16.mxu0 %vm1470_vm0, %v1469_v0 }
 0x2fe   :  { %v320_v3 = vpack.c.bf16 %v318_v1, %v318_v1  ;;  %1345 = vmatprep.subr.bf16.mxu0 %v1469_v0 }
 0x300   :  { %1330 = vmatmul.mubr.msk.bf16.vlgmr.msra.gmra.mrb[8].mxu1 %vm204_vm2, %v320_v3 }
 0x301   :  { %1340 = vmatpush3.bf16.xpose.msra.mxu1 %v481_v4  ;;  %1341 = vmatprep.mubr.msk.bf16.mxu1 %vm1470_vm0, %v1469_v0 }
 0x302   :  { %1351 = vmatprep.subr.bf16.mxu1 %v1469_v0 }
 0x304   :  { %1336 = vmatmul.mubr.msk.bf16.vlgmr.msra.gmra.mrb[12].mxu0 %vm204_vm2, %v423_v6 }
 0x305   :  { %1347 = vmatprep.mubr.msk.bf16.mxu0 %vm1470_vm0, %v1469_v0 }
 0x308   :  { %1342 = vmatmul.mubr.msk.bf16.vlgmr.msra.gmra.mrb[12].mxu1 %vm204_vm2, %v474_v7 }
 0x309   :  { %1353 = vmatprep.mubr.msk.bf16.mxu1 %vm1470_vm0, %v1469_v0 }
 0x3cf   :  { %v1647_v8 = vpop.f32.mrb[8].mxu0 }
 0x3d0   :  { %v1325_v9 = vpop.f32.mrb[9].mxu0 }
 0x3d1   :  { %v368_v10 = vpop.f32.mrb[10].mxu0 }
 0x3d2   :  { %v1326_v11 = vpop.f32.mrb[11].mxu0 }
 0x3d3   :  { %v1649_v12 = vpop.f32.mrb[8].mxu1 }
 0x3d4   :  { %v420_v13 = vpack.c.bf16 %v1649_v12, %v1647_v8  ;;  %v1331_v14 = vpop.f32.mrb[9].mxu1 }
 0x3d5   :  { %v417_v16 = vpop.f32.mrb[10].mxu1 }
 0x3d6   :  { %v1332_v17 = vpop.f32.mrb[11].mxu1 }
 0x3d7   :  { %v466_v18 = vpop.f32.mrb[12].mxu0 }
 0x3d8   :  { %v467_v19 = vadd.f32 %v1608_v30, %v466_v18  ;;  %v1337_v21 = vpop.f32.mrb[13].mxu0 }
 0x3d9   :  { %v469_v22 = vpop.f32.mrb[14].mxu0 }
 0x3da   :  { %v1338_v23 = vpop.f32.mrb[15].mxu0  ;;  %v523_v24 = vsel %vm204_vm2, %v467_v19, -inf }
 0x3db   :  { %v517_v26 = vpop.f32.mrb[12].mxu1  ;;  %524 = vmax.xlane.f32.xlu0 %v523_v24 }
 0x3dc   :  { %v518_v28 = vadd.f32 %v1613_v32, %v517_v26  ;;  %v1343_v29 = vpop.f32.mrb[13].mxu1 }
 0x3dd   :  { %v520_v31 = vpop.f32.mrb[14].mxu1 }
 0x3de   :  { %v1344_v33 = vpop.f32.mrb[15].mxu1  ;;  %v526_v34 = vsel %vm204_vm2, %v518_v28, -inf }
 0x3df   :  { %527 = vmax.xlane.f32.xlu1 %v526_v34 }
 0x3f0   :  { %595 = vrot.lane.b32.xlu1 %v1579_v20, %s1473_s1 }
 0x3f4   :  { %646 = vrot.lane.b32.xlu1 %v1577_v15, %s1474_s28 }
 0x3f8   :  { %696 = vrot.lane.b32.xlu1 %v1579_v20, %s1474_s28 }
 0x3fc   :  { %694 = vrot.lane.b32.xlu1 %v1593_v27, %s1474_s28 }
 0x468   :  { %v525_v35 = vpop.xlane.xlu0 %524 }
 0x469   :  { %v529_v36 = vsub.f32 %v467_v19, %v525_v35 }
 0x46b   :  { %v531_v37 = vmul.f32 1.442695, %v529_v36 }
 0x46c   :  { %v528_v38 = vpop.xlane.xlu1 %527 }
 0x46d   :  { %1441 = vpow2.f32 %v531_v37  ;;  %v530_v39 = vsub.f32 %v518_v28, %v528_v38 }
 0x46f   :  { %v533_v40 = vmul.f32 1.442695, %v530_v39 }
 0x470   :  { %v596_v41 = vpop.permute.xlu1 %595 }
 0x471   :  { %1443 = vpow2.f32 %v533_v40  ;;  %v601_v42 = vsel %vm327_vm3, %v596_v41, 0 }
 0x472   :  { %1352 = vmatpush3.bf16.msra.mxu1 %v601_v42 }
 0x473   :  { %1363 = vmatprep.subr.bf16.mxu1 %v1469_v0 }
 0x474   :  { %v647_v52 = vpop.permute.xlu1 %646 }
 0x475   :  { %v652_v58 = vsel %vm204_vm2, %v647_v52, 0 }
 0x477   :  { %v1442_v43 = vpop.eup %1441 }
 0x478   :  { %v535_v44 = vsel %vm204_vm2, %v1442_v43, 0.0  ;;  %v697_v57 = vpop.permute.xlu1 %696 }
 0x479   :  { %536 = vadd.xlane.f32.xlu0 %v535_v44  ;;  %v702_v60 = vsel %vm204_vm2, %v697_v57, 0 }
 0x47b   :  { %v1444_v45 = vpop.eup %1443 }
 0x47c   :  { %v538_v46 = vsel %vm204_vm2, %v1444_v45, 0.0  ;;  %v695_v62 = vpop.permute.xlu1 %694 }
 0x47d   :  { %539 = vadd.xlane.f32.xlu0 %v538_v46 }
 0x493   :  { %547 = vrot.lane.b32.xlu0 %v1577_v15, %s1473_s1 }
 0x497   :  { %644 = vrot.lane.b32.xlu0 %v1588_v25, %s1474_s28 }
 0x506   :  { %v537_v47 = vpop.xlane.xlu0 %536 }
 0x507   :  { %1445 = vrcp.f32 %v537_v47 }
 0x50a   :  { %v540_v48 = vpop.xlane.xlu0 %539 }
 0x50b   :  { %1447 = vrcp.f32 %v540_v48 }
 0x50e   :  { %v548_v49 = vpop.permute.xlu0 %547 }
 0x50f   :  { %v553_v50 = vsel %vm327_vm3, %v548_v49, 0 }
 0x510   :  { %1346 = vmatpush3.bf16.msra.mxu0 %v553_v50 }
 0x511   :  { %v1446_v51 = vpop.eup %1445  ;;  %1357 = vmatprep.subr.bf16.mxu0 %v1469_v0 }
 0x512   :  { %v543_v53 = vmul.f32 %v1446_v51, %v1442_v43  ;;  %v645_v61 = vpop.permute.xlu0 %644 }
 0x514   :  { %v545_v54 = vpack.c.bf16 %v543_v53, %v543_v53 }
 0x515   :  { %v1448_v55 = vpop.eup %1447 }
 0x516   :  { %v544_v56 = vmul.f32 %v1448_v55, %v1444_v45  ;;  %1348 = vmatmul.mubr.msk.bf16.vlgmr.msra.gmra.mrb[16].mxu0 %vm204_vm2, %v545_v54 }
 0x517   :  { %1359 = vmatprep.mubr.msk.bf16.mxu0 %vm1470_vm0, %v1469_v0 }
 0x518   :  { %v546_v59 = vpack.c.bf16 %v544_v56, %v544_v56 }
 0x519   :  { %1358 = vmatpush3.bf16.xpose.msra.mxu0 %v652_v58 }
 0x51a   :  { %1354 = vmatmul.mubr.msk.bf16.vlgmr.msra.gmra.mrb[16].mxu1 %vm204_vm2, %v546_v59  ;;  %1369 = vmatprep.subr.bf16.mxu0 %v1469_v0 }
 0x51b   :  { %1364 = vmatpush3.bf16.xpose.msra.mxu1 %v702_v60  ;;  %1365 = vmatprep.mubr.msk.bf16.mxu1 %vm1470_vm0, %v1469_v0 }
 0x51c   :  { %1375 = vmatprep.subr.bf16.mxu1 %v1469_v0 }
 0x520   :  { %1360 = vmatmul.mubr.msk.bf16.vlgmr.msra.gmra.mrb[20].mxu0 %vm204_vm2, %v645_v61 }
 0x521   :  { %1371 = vmatprep.mubr.msk.bf16.mxu0 %vm1470_vm0, %v1469_v0 }
 0x522   :  { %1366 = vmatmul.mubr.msk.bf16.vlgmr.msra.gmra.mrb[20].mxu1 %vm204_vm2, %v695_v62 }
 0x523   :  { %1377 = vmatprep.mubr.msk.bf16.mxu1 %vm1470_vm0, %v1469_v0 }
 0x5e9   :  { %v1685_v63 = vpop.f32.mrb[16].mxu0 }
 0x5ea   :  { %v1349_v1 = vpop.f32.mrb[17].mxu0 }
 0x5eb   :  { %v592_v2 = vpop.f32.mrb[18].mxu0 }
 0x5ec   :  { %v1350_v3 = vpop.f32.mrb[19].mxu0 }
 0x5ed   :  { %v1687_v4 = vpop.f32.mrb[16].mxu1 }
 0x5ee   :  { %v643_v6 = vpack.c.bf16 %v1687_v4, %v1685_v63  ;;  %v1355_v7 = vpop.f32.mrb[17].mxu1 }
 0x5ef   :  { %v640_v9 = vpop.f32.mrb[18].mxu1 }
 0x5f0   :  { %v1356_v10 = vpop.f32.mrb[19].mxu1 }
 0x5f3   :  { %v688_v11 = vpop.f32.mrb[20].mxu0 }
 0x5f4   :  { %v689_v14 = vadd.f32 %v1608_v30, %v688_v11  ;;  %v1361_v16 = vpop.f32.mrb[21].mxu0 }
 0x5f5   :  { %v691_v17 = vpop.f32.mrb[22].mxu0  ;;  %v738_v18 = vpop.f32.mrb[20].mxu1 }
 0x5f6   :  { %v739_v19 = vadd.f32 %v1613_v32, %v738_v18  ;;  %v1362_v21 = vpop.f32.mrb[23].mxu0  ;;  %v1367_v22 = vpop.f32.mrb[21].mxu1  ;;  %v744_v23 = vsel %vm204_vm2, %v689_v14, -inf }
 0x5f7   :  { %v741_v24 = vpop.f32.mrb[22].mxu1  ;;  %745 = vmax.xlane.f32.xlu0 %v744_v23 }
 0x5f8   :  { %v1368_v26 = vpop.f32.mrb[23].mxu1  ;;  %v747_v28 = vsel %vm204_vm2, %v739_v19, -inf }
 0x5f9   :  { %748 = vmax.xlane.f32.xlu1 %v747_v28 }
 0x60a   :  { %816 = vrot.lane.b32.xlu1 %v1579_v20, %s1475_s29 }
 0x60e   :  { %867 = vrot.lane.b32.xlu1 %v1577_v15, %s1476_s30 }
 0x612   :  { %917 = vrot.lane.b32.xlu1 %v1579_v20, %s1476_s30 }
 0x616   :  { %915 = vrot.lane.b32.xlu1 %v1593_v27, %s1476_s30 }
 0x684   :  { %v746_v29 = vpop.xlane.xlu0 %745 }
 0x685   :  { %v750_v31 = vsub.f32 %v689_v14, %v746_v29 }
 0x686   :  { %v749_v33 = vpop.xlane.xlu1 %748 }
 0x687   :  { %v752_v34 = vmul.f32 1.442695, %v750_v31  ;;  %v751_v35 = vsub.f32 %v739_v19, %v749_v33 }
 0x689   :  { %1449 = vpow2.f32 %v752_v34  ;;  %v754_v36 = vmul.f32 1.442695, %v751_v35 }
 0x68a   :  { %v817_v37 = vpop.permute.xlu1 %816 }
 0x68b   :  { %1451 = vpow2.f32 %v754_v36  ;;  %v822_v38 = vsel %vm327_vm3, %v817_v37, 0 }
 0x68c   :  { %1376 = vmatpush3.bf16.msra.mxu1 %v822_v38 }
 0x68d   :  { %1387 = vmatprep.subr.bf16.mxu1 %v1469_v0 }
 0x68e   :  { %v868_v47 = vpop.permute.xlu1 %867 }
 0x692   :  { %v918_v52 = vpop.permute.xlu1 %917 }
 0x693   :  { %v1450_v39 = vpop.eup %1449  ;;  %v923_v54 = vsel %vm204_vm2, %v918_v52, 0 }
 0x694   :  { %v756_v40 = vsel %vm204_vm2, %v1450_v39, 0.0 }
 0x695   :  { %v1452_v41 = vpop.eup %1451  ;;  %757 = vadd.xlane.f32.xlu0 %v756_v40 }
 0x696   :  { %v759_v27 = vsel %vm204_vm2, %v1452_v41, 0.0  ;;  %v916_v56 = vpop.permute.xlu1 %915 }
 0x699   :  { %760 = vadd.xlane.f32.xlu0 %v759_v27 }
 0x6af   :  { %768 = vrot.lane.b32.xlu0 %v1577_v15, %s1475_s29 }
 0x6b3   :  { %865 = vrot.lane.b32.xlu0 %v1588_v25, %s1476_s30  ;;  %v873_v25 = vsel %vm204_vm2, %v868_v47, 0 }
 0x722   :  { %v758_v42 = vpop.xlane.xlu0 %757 }
 0x723   :  { %1453 = vrcp.f32 %v758_v42  ;;  %v1430_v42 = vld [vmem:[%s1780_s6] sm:$0xff]  }
 0x726   :  { %v761_v43 = vpop.xlane.xlu0 %760 }
 0x727   :  { %1455 = vrcp.f32 %v761_v43  ;;  %v1431_v43 = vld [vmem:[%s1780_s6 + $0x8] sm:$0xff]  }
 0x72a   :  { %v769_v44 = vpop.permute.xlu0 %768 }
 0x72b   :  { %v774_v45 = vsel %vm327_vm3, %v769_v44, 0 }
 0x72c   :  { %1370 = vmatpush3.bf16.msra.mxu0 %v774_v45 }
 0x72d   :  { %v1454_v46 = vpop.eup %1453  ;;  %1381 = vmatprep.subr.bf16.mxu0 %v1469_v0 }
 0x72e   :  { %v764_v48 = vmul.f32 %v1454_v46, %v1450_v39  ;;  %v866_v55 = vpop.permute.xlu0 %865 }
 0x730   :  { %v766_v49 = vpack.c.bf16 %v764_v48, %v764_v48 }
 0x731   :  { %v1456_v50 = vpop.eup %1455 }
 0x732   :  { %v765_v51 = vmul.f32 %v1456_v50, %v1452_v41  ;;  %1372 = vmatmul.mubr.msk.bf16.vlgmr.msra.gmra.mrb[24].mxu0 %vm204_vm2, %v766_v49 }
 0x733   :  { %1383 = vmatprep.mubr.msk.bf16.mxu0 %vm1470_vm0, %v1469_v0 }
 0x734   :  { %v767_v53 = vpack.c.bf16 %v765_v51, %v765_v51 }
 0x735   :  { %1382 = vmatpush3.bf16.xpose.msra.mxu0 %v873_v25 }
 0x736   :  { %1378 = vmatmul.mubr.msk.bf16.vlgmr.msra.gmra.mrb[24].mxu1 %vm204_vm2, %v767_v53  ;;  %1393 = vmatprep.subr.bf16.mxu0 %v1469_v0 }
 0x737   :  { %1388 = vmatpush3.bf16.xpose.msra.mxu1 %v923_v54  ;;  %1389 = vmatprep.mubr.msk.bf16.mxu1 %vm1470_vm0, %v1469_v0 }
 0x738   :  { %1399 = vmatprep.subr.bf16.mxu1 %v1469_v0 }
 0x73c   :  { %1384 = vmatmul.mubr.msk.bf16.vlgmr.msra.gmra.mrb[28].mxu0 %vm204_vm2, %v866_v55 }
 0x73d   :  { %1395 = vmatprep.mubr.msk.bf16.mxu0 %vm1470_vm0, %v1469_v0 }
 0x73e   :  { %1390 = vmatmul.mubr.msk.bf16.vlgmr.msra.gmra.mrb[28].mxu1 %vm204_vm2, %v916_v56 }
 0x73f   :  { %1401 = vmatprep.mubr.msk.bf16.mxu1 %vm1470_vm0, %v1469_v0 }
 0x805   :  { %v810_v57 = vpop.f32.mrb[24].mxu0 }
 0x806   :  { %v1373_v58 = vpop.f32.mrb[25].mxu0 }
 0x807   :  { %v813_v59 = vpop.f32.mrb[26].mxu0  ;;  %v69_v58 = vunpack.c.l.bf16 %v1559_v5 }
 0x808   :  { %v1374_v60 = vpop.f32.mrb[27].mxu0 }
 0x809   :  { %v858_v61 = vpop.f32.mrb[24].mxu1 }
 0x80a   :  { %v864_v62 = vpack.c.bf16 %v858_v61, %v810_v57  ;;  %v1379_v1 = vpop.f32.mrb[25].mxu1  ;;  %v1246_v57 = vld [vmem:[%s1781_s7] ss:$0 sm:$0xff] }
 0x80b   :  { %v861_v2 = vpop.f32.mrb[26].mxu1 }
 0x80c   :  { %v1380_v3 = vpop.f32.mrb[27].mxu1 }
 0x80f   :  { %v909_v7 = vpop.f32.mrb[28].mxu0 }
 0x810   :  { %v910_v9 = vadd.f32 %v1608_v30, %v909_v7  ;;  %v1385_v10 = vpop.f32.mrb[29].mxu0 }
 0x811   :  { %v912_v11 = vpop.f32.mrb[30].mxu0  ;;  %v959_v14 = vpop.f32.mrb[28].mxu1 }
 0x812   :  { %v960_v16 = vadd.f32 %v1613_v32, %v959_v14  ;;  %v1386_v17 = vpop.f32.mrb[31].mxu0  ;;  %v1391_v18 = vpop.f32.mrb[29].mxu1  ;;  %v965_v19 = vsel %vm204_vm2, %v910_v9, -inf }
 0x813   :  { %v962_v21 = vpop.f32.mrb[30].mxu1  ;;  %966 = vmax.xlane.f32.xlu0 %v965_v19 }
 0x814   :  { %v1392_v22 = vpop.f32.mrb[31].mxu1  ;;  %v968_v23 = vsel %vm204_vm2, %v960_v16, -inf }
 0x815   :  { %969 = vmax.xlane.f32.xlu1 %v968_v23 }
 0x826   :  { %1037 = vrot.lane.b32.xlu1 %v1579_v20, %s1477_s11 }
 0x82a   :  { %1087 = vrot.lane.b32.xlu1 %v643_v6, %s1478_s12 }
 0x82e   :  { %1090 = vrot.lane.b32.xlu1 %v864_v62, %s1479_s13  ;;  %v70_v62 = vunpack.c.h.bf16 %v1559_v5 }
 0x8a0   :  { %v967_v30 = vpop.xlane.xlu0 %966 }
 0x8a1   :  { %v971_v32 = vsub.f32 %v910_v9, %v967_v30 }
 0x8a2   :  { %v970_v24 = vpop.xlane.xlu1 %969 }
 0x8a3   :  { %v973_v26 = vmul.f32 1.442695, %v971_v32  ;;  %v972_v28 = vsub.f32 %v960_v16, %v970_v24 }
 0x8a5   :  { %1457 = vpow2.f32 %v973_v26  ;;  %v975_v29 = vmul.f32 1.442695, %v972_v28 }
 0x8a6   :  { %v1038_v31 = vpop.permute.xlu1 %1037 }
 0x8a7   :  { %1459 = vpow2.f32 %v975_v29  ;;  %v1043_v33 = vsel %vm327_vm3, %v1038_v31, 0  ;;  %v1250_v29 = vld [vmem:[%s1782_s8] ss:$0 sm:$0xff] }
 0x8a8   :  { %1400 = vmatpush3.bf16.msra.mxu1 %v1043_v33  ;;  %v1251_v33 = vld [vmem:[%s1783_s9] ss:$0 sm:$0xff] }
 0x8aa   :  { %v1088_v25 = vpop.permute.xlu1 %1087 }
 0x8ae   :  { %v1091_v53 = vpop.permute.xlu1 %1090 }
 0x8af   :  { %v1458_v20 = vpop.eup %1457 }
 0x8b0   :  { %v977_v34 = vsel %vm204_vm2, %v1458_v20, 0.0 }
 0x8b1   :  { %v1460_v35 = vpop.eup %1459  ;;  %978 = vadd.xlane.f32.xlu0 %v977_v34 }
 0x8b2   :  { %v980_v63 = vsel %vm204_vm2, %v1460_v35, 0.0 }
 0x8b5   :  { %981 = vadd.xlane.f32.xlu0 %v980_v63 }
 0x8cb   :  { %989 = vrot.lane.b32.xlu0 %v1577_v15, %s1477_s11 }
 0x93e   :  { %v979_v4 = vpop.xlane.xlu0 %978 }
 0x93f   :  { %1461 = vrcp.f32 %v979_v4 }
 0x942   :  { %v982_v6 = vpop.xlane.xlu0 %981 }
 0x943   :  { %1463 = vrcp.f32 %v982_v6 }
 0x946   :  { %v990_v36 = vpop.permute.xlu0 %989 }
 0x947   :  { %v995_v37 = vsel %vm327_vm3, %v990_v36, 0 }
 0x948   :  { %1394 = vmatpush3.bf16.msra.mxu0 %v995_v37 }
 0x949   :  { %v1462_v38 = vpop.eup %1461  ;;  %1405 = vmatprep.subr.bf16.mxu0 %v1469_v0 }
 0x94a   :  { %v985_v39 = vmul.f32 %v1462_v38, %v1458_v20 }
 0x94c   :  { %v987_v40 = vpack.c.bf16 %v985_v39, %v985_v39 }
 0x94d   :  { %v1464_v41 = vpop.eup %1463 }
 0x94e   :  { %v986_v27 = vmul.f32 %v1464_v41, %v1460_v35  ;;  %1396 = vmatmul.mubr.msk.bf16.vlgmr.msra.gmra.mrb[32].mxu0 %vm204_vm2, %v987_v40 }
 0x94f   :  { %1409 = vmatprep.mubr.msk.bf16.mxu0 %vm1470_vm0, %v1469_v0  ;;  %1406 = vmatpush3.bf16.msra.mxu0 %v1430_v42 }
 0x950   :  { %v988_v15 = vpack.c.bf16 %v986_v27, %v986_v27  ;;  %1407 = vmatprep.subr.bf16.mxu0 %v1469_v0  ;;  %v1097_v0 = vsel %vm204_vm2, %v420_v13, %v1088_v25 }
 0x951   :  { %v1100_v54 = vsel %vm1098_vm4, %v1097_v0, %v1091_v53 }
 0x952   :  { %1402 = vmatmul.mubr.msk.bf16.vlgmr.msra.gmra.mrb[32].mxu1 %vm204_vm2, %v988_v15 }
 0x953   :  { %1408 = vmatpush3.bf16.msra.mxu0 %v1431_v43 }
 0xa21   :  { %v1031_v44 = vpop.f32.mrb[32].mxu0 }
 0xa22   :  { %v1397_v45 = vpop.f32.mrb[33].mxu0 }
 0xa23   :  { %v1034_v46 = vpop.f32.mrb[34].mxu0 }
 0xa24   :  { %v1398_v47 = vpop.f32.mrb[35].mxu0 }
 0xa25   :  { %v1079_v48 = vpop.f32.mrb[32].mxu1 }
 0xa26   :  { %v1085_v49 = vpack.c.bf16 %v1079_v48, %v1031_v44  ;;  %v1403_v50 = vpop.f32.mrb[33].mxu1 }
 0xa27   :  { %v1082_v51 = vpop.f32.mrb[34].mxu1 }
 0xa28   :  { %v1404_v52 = vpop.f32.mrb[35].mxu1  ;;  %1093 = vrot.lane.b32.xlu0 %v1085_v49, %s1480_s18 }
 0xa9a   :  { %v1094_v55 = vpop.permute.xlu0 %1093 }
 0xa9b   :  { %v1103_v56 = vsel %vm1101_vm5, %v1100_v54, %v1094_v55 }
 0xa9c   :  { %1410 = vmatmul.mubr.msk.bf16.vlgmr.msra.gmra.mrb[36].mxu0 %vm94_vm1, %v1103_v56 }
 0xb6f   :  { %v1158_v59 = vpop.f32.mrb[36].mxu0 }
 0xb70   :  { %v1159_v60 = vadd.f32 %v1246_v57, %v1158_v59  ;;  %v1411_v61 = vpop.f32.mrb[37].mxu0 }
 0xb71   :  { %v1161_v1 = vpop.f32.mrb[38].mxu0 }
 0xb72   :  { %v1162_v8 = vadd.f32 %v1246_v57, %v1161_v1  ;;  %v1412_v12 = vpop.f32.mrb[39].mxu0  ;;  %v1165_v13 = vadd.f32 %v1159_v60, %v69_v58 }
 0xb74   :  { %v1167_v2 = vsel %vm94_vm1, %v1165_v13, 0.0  ;;  %v1166_v3 = vadd.f32 %v1162_v8, %v70_v62 }
 0xb75   :  { %1168 = vadd.xlane.f32.xlu1 %v1167_v2 }
 0xb76   :  { %v1170_v7 = vsel %vm94_vm1, %v1166_v3, 0.0 }
 0xb77   :  { %1171 = vadd.xlane.f32.xlu0 %v1170_v7 }
 0xc02   :  { %v1169_v9 = vpop.xlane.xlu1 %1168 }
 0xc03   :  { %v1174_v10 = vmul.f32 0.03125, %v1169_v9 }
 0xc04   :  { %v1172_v11 = vpop.xlane.xlu0 %1171 }
 0xc05   :  { %v1176_v14 = vsub.f32 %v1165_v13, %v1174_v10  ;;  %v1175_v16 = vmul.f32 0.03125, %v1172_v11 }
 0xc07   :  { %v1177_v17 = vsub.f32 %v1166_v3, %v1175_v16  ;;  %v1178_v18 = vmul.f32 %v1176_v14, %v1176_v14 }
 0xc09   :  { %v1180_v5 = vsel %vm94_vm1, %v1178_v18, 0.0  ;;  %v1179_v19 = vmul.f32 %v1177_v17, %v1177_v17 }
 0xc0a   :  { %1181 = vadd.xlane.f32.xlu0 %v1180_v5 }
 0xc0b   :  { %v1183_v21 = vsel %vm94_vm1, %v1179_v19, 0.0 }
 0xc0e   :  { %1184 = vadd.xlane.f32.xlu0 %v1183_v21 }
 0xc97   :  { %v1182_v22 = vpop.xlane.xlu0 %1181 }
 0xc98   :  { %v1186_v23 = vmul.f32 0.03125, %v1182_v22 }
 0xc9a   :  { %v1188_v30 = vadd.f32 1e-05, %v1186_v23 }
 0xc9b   :  { %v1185_v32 = vpop.xlane.xlu0 %1184 }
 0xc9c   :  { %1465 = vrsqrt.f32 %v1188_v30  ;;  %v1187_v24 = vmul.f32 0.03125, %v1185_v32 }
 0xc9e   :  { %v1189_v26 = vadd.f32 1e-05, %v1187_v24 }
 0xca0   :  { %1467 = vrsqrt.f32 %v1189_v26 }
 0xca6   :  { %v1466_v28 = vpop.eup %1465 }
 0xca7   :  { %v1192_v31 = vmul.f32 %v1466_v28, %v1176_v14 }
 0xca9   :  { %v1200_v20 = vmul.f32 %v1250_v29, %v1192_v31 }
 0xcaa   :  { %v1468_v34 = vpop.eup %1467 }
 0xcab   :  { %v1208_v35 = vadd.f32 %v1251_v33, %v1200_v20  ;;  %v1193_v63 = vmul.f32 %v1468_v34, %v1177_v17 }
 0xcad   :  { %v1210_v4 = vpack.c.bf16 %v1208_v35, %v1208_v35  ;;  %v1201_v6 = vmul.f32 %v1250_v29, %v1193_v63 }
 0xcaf   :  { %1213 = vst.msk [vmem:[%s1784_s10] sm:$0xf] %vm1212_vm6, %v1210_v4  ;;  %v1209_v36 = vadd.f32 %v1251_v33, %v1201_v6 }
 0xcb1   :  { %v1211_v37 = vpack.c.bf16 %v1209_v36, %v1209_v36 }
 0xcb3   :  { %1214 = vst.msk [vmem:[%s1784_s10 + $0x4] sm:$0xf] %vm1212_vm6, %v1211_v37 }

// kernel: translation_transformer_forward.16
= control target key start
LH: loop header
LB: loop body
LE: loop exit
PB: predicated region body
PF: predicated region fallthrough
CT: control target
= control target key end

     0   :  { %v1484_v0 = vmov 0.0   ;;  %vm1485_vm0 = vmmov 0   ;;  %vm99_vm1 = vcmask 261120   ;;  %vm217_vm2 = vcmask 64512   ;;  %s1489_s14 = smov 112   ;;  %s1490_s15 = smov 80   ;;  %s1796_s4 = inlined_call_operand.vmem [shape: bf16[32,64], index: 4, kind: input, shape index: {}]   ;;  %s1797_s3 = inlined_call_operand.vmem [shape: bf16[32,32], index: 3, kind: input, shape index: {}]   ;;  %s1798_s1 = inlined_call_operand.vmem [shape: bf16[2,8,32], index: 1, kind: input, shape index: {}]   ;;  %s1799_s0 = inlined_call_operand.vmem [shape: bf16[2,8,32], index: 0, kind: input, shape index: {}]   ;;  %s1800_s6 = inlined_call_operand.vmem [shape: f32[1,64], index: 6, kind: input, shape index: {}]   ;;  %s1801_s5 = inlined_call_operand.vmem [shape: f32[1,32], index: 5, kind: input, shape index: {}]   ;;  %s1802_s2 = inlined_call_operand.vmem [shape: f32[2,1,8], index: 2, kind: input, shape index: {}]   ;;  %s1803_s7 = inlined_call_operand.vmem [shape: bf16[32,32], index: 7, kind: input, shape index: {}]   ;;  %s1804_s8 = inlined_call_operand.vmem [shape: f32[1,32], index: 8, kind: input, shape index: {}]   ;;  %s1805_s9 = inlined_call_operand.vmem [shape: f32[1,32], index: 9, kind: input, shape index: {}]   ;;  %s1806_s10 = inlined_call_operand.vmem [shape: f32[1,32], index: 10, kind: input, shape index: {}]   ;;  %s1807_s11 = inlined_call_operand.vmem [shape: bf16[2,8,32], index: 11, kind: output, shape index: {}]  }
   0x1   :  { %1315 = vmatprep.subr.bf16.mxu1 %v1484_v0  ;;  %v1439_v1 = vld [vmem:[%s1796_s4] sm:$0xff]   ;;  %1307 = vmatprep.subr.bf16.mxu0 %v1484_v0  ;;  %v1441_v3 = vld [vmem:[%s1796_s4 + $0x8] sm:$0xff]   ;;  %vm340_vm3 = vcmask 1043456   ;;  %s1491_s16 = smov 104   ;;  %s1492_s17 = smov 72   ;;  %vm1111_vm4 = vcmask 130048  }
   0x2   :  { %v1440_v2 = vld [vmem:[%s1797_s3] sm:$0xff]   ;;  %1319 = vmatprep.mubr.msk.bf16.mxu1 %vm1485_vm0, %v1484_v0  ;;  %1311 = vmatprep.mubr.msk.bf16.mxu0 %vm1485_vm0, %v1484_v0  ;;  %v1442_v4 = vld [vmem:[%s1797_s3 + $0x8] sm:$0xff]   ;;  %s1493_s18 = smov 8   ;;  %s1494_s19 = smov 16   ;;  %vm1114_vm5 = vcmask 195584   ;;  %vm1225_vm6 = vcmask 257024  }
   0x3   :  { %1316 = vmatpush3.bf16.msra.mxu1 %v1439_v1  ;;  %1308 = vmatpush3.bf16.msra.mxu0 %v1440_v2  ;;  %v1443_v5 = vld [vmem:[%s1798_s1] sm:$0xff]   ;;  %s1495_s24 = smov 24  }
   0x4   :  { %1317 = vmatprep.subr.bf16.mxu1 %v1484_v0  ;;  %1309 = vmatprep.subr.bf16.mxu0 %v1484_v0  ;;  %v1582_v6 = vld [vmem:[%s1799_s0] sm:$0xff]  }
   0x5   :  { %v1239_v7 = vld [vmem:[%s1800_s6] ss:$0 sm:$0xff]  ;;  %s1487_s6 = smov 120   ;;  %v1635_v33 = vld [vmem:[%s1802_s2 + $0x1] ss:$0 sm:$0xff] }
   0x6   :  { %v1234_v8 = vld [vmem:[%s1801_s5] ss:$0 sm:$0xff]  ;;  %s1486_s5 = smov 96  }
   0x7   :  { %1318 = vmatpush3.bf16.msra.mxu1 %v1441_v3  ;;  %1310 = vmatpush3.bf16.msra.mxu0 %v1442_v4  ;;  %v1630_v31 = vld [vmem:[%s1802_s2] ss:$0 sm:$0xff]  ;;  %s1488_s2 = smov 88  }
   0x8   :  { %1329 = vmatprep.subr.bf16.mxu1 %v1484_v0  ;;  %1323 = vmatprep.subr.bf16.mxu0 %v1484_v0 }
   0xa   :  { %1320 = vmatmul.mubr.msk.bf16.vlgmr.msra.gmra.mrb[0].mxu1 %vm99_vm1, %v1443_v5  ;;  %1312 = vmatmul.mubr.msk.bf16.vlgmr.msra.gmra.mrb[0].mxu0 %vm99_vm1, %v1582_v6 }
   0xb   :  { %1331 = vmatprep.mubr.msk.bf16.mxu1 %vm1485_vm0, %v1484_v0  ;;  %1325 = vmatprep.mubr.msk.bf16.mxu0 %vm1485_vm0, %v1484_v0 }
  0xdd   :  { %v204_v9 = vpop.f32.mrb[0].mxu1  ;;  %v137_v12 = vpop.f32.mrb[0].mxu0 }
  0xde   :  { %v205_v10 = vadd.f32 %v1239_v7, %v204_v9  ;;  %v1321_v11 = vpop.f32.mrb[1].mxu1  ;;  %v138_v14 = vadd.f32 %v1234_v8, %v137_v12  ;;  %v1313_v15 = vpop.f32.mrb[1].mxu0 }
  0xdf   :  { %v207_v13 = vpop.f32.mrb[2].mxu1  ;;  %v140_v19 = vpop.f32.mrb[2].mxu0 }
  0xe0   :  { %v1599_v16 = vpack.c.bf16 %v205_v10, %v205_v10  ;;  %v208_v17 = vadd.f32 %v1239_v7, %v207_v13  ;;  %v1322_v18 = vpop.f32.mrb[3].mxu1  ;;  %v1314_v20 = vpop.f32.mrb[3].mxu0  ;;  %v211_v22 = vmul.f32 0.35355338, %v138_v14  ;;  %v141_v23 = vadd.f32 %v1234_v8, %v140_v19 }
  0xe2   :  { %v1601_v21 = vpack.c.bf16 %v208_v17, %v208_v17  ;;  %v222_v24 = vsel %vm217_vm2, %v1599_v16, 0  ;;  %v1610_v26 = vpack.c.bf16 %v211_v22, %v211_v22  ;;  %v212_v27 = vmul.f32 0.35355338, %v141_v23 }
  0xe3   :  { %1324 = vmatpush3.bf16.xpose.msra.mxu0 %v222_v24 }
  0xe4   :  { %385 = vrot.lane.b32.xlu1 %v1601_v21, %s1486_s5  ;;  %v268_v25 = vsel %vm217_vm2, %v1601_v21, 0  ;;  %1335 = vmatprep.subr.bf16.mxu0 %v1484_v0  ;;  %v1615_v28 = vpack.c.bf16 %v212_v27, %v212_v27 }
  0xe5   :  { %1330 = vmatpush3.bf16.xpose.msra.mxu1 %v268_v25 }
  0xe6   :  { %1341 = vmatprep.subr.bf16.mxu1 %v1484_v0 }
  0xe8   :  { %437 = vrot.lane.b32.xlu1 %v1599_v16, %s1487_s6 }
  0xea   :  { %1326 = vmatmul.mubr.msk.bf16.vlgmr.msra.gmra.mrb[4].mxu0 %vm217_vm2, %v1610_v26 }
  0xeb   :  { %1337 = vmatprep.mubr.msk.bf16.mxu0 %vm1485_vm0, %v1484_v0 }
  0xec   :  { %1332 = vmatmul.mubr.msk.bf16.vlgmr.msra.gmra.mrb[4].mxu1 %vm217_vm2, %v1615_v28 }
  0xed   :  { %1343 = vmatprep.mubr.msk.bf16.mxu1 %vm1485_vm0, %v1484_v0 }
 0x156   :  { %v386_v29 = vpop.permute.xlu1 %385 }
 0x157   :  { %v391_v30 = vsel %vm340_vm3, %v386_v29, 0 }
 0x158   :  { %1342 = vmatpush3.bf16.msra.mxu1 %v391_v30 }
 0x159   :  { %1353 = vmatprep.subr.bf16.mxu1 %v1484_v0 }
 0x15a   :  { %v438_v57 = vpop.permute.xlu1 %437 }
 0x15b   :  { %v443_v1 = vsel %vm217_vm2, %v438_v57, 0 }
 0x1bd   :  { %v258_v32 = vpop.f32.mrb[4].mxu0 }
 0x1be   :  { %v259_v34 = vadd.f32 %v1630_v31, %v258_v32  ;;  %v1327_v35 = vpop.f32.mrb[5].mxu0 }
 0x1bf   :  { %v261_v36 = vpop.f32.mrb[6].mxu0  ;;  %v304_v37 = vpop.f32.mrb[4].mxu1 }
 0x1c0   :  { %v305_v38 = vadd.f32 %v1635_v33, %v304_v37  ;;  %v1328_v39 = vpop.f32.mrb[7].mxu0  ;;  %v1333_v40 = vpop.f32.mrb[5].mxu1  ;;  %v310_v41 = vsel %vm217_vm2, %v259_v34, -inf }
 0x1c1   :  { %v307_v42 = vpop.f32.mrb[6].mxu1  ;;  %311 = vmax.xlane.f32.xlu0 %v310_v41 }
 0x1c2   :  { %v1334_v43 = vpop.f32.mrb[7].mxu1  ;;  %v313_v44 = vsel %vm217_vm2, %v305_v38, -inf }
 0x1c5   :  { %314 = vmax.xlane.f32.xlu0 %v313_v44 }
 0x1db   :  { %335 = vrot.lane.b32.xlu0 %v1599_v16, %s1486_s5 }
 0x1df   :  { %435 = vrot.lane.b32.xlu0 %v1610_v26, %s1487_s6 }
 0x24e   :  { %v312_v45 = vpop.xlane.xlu0 %311 }
 0x24f   :  { %v316_v46 = vsub.f32 %v259_v34, %v312_v45 }
 0x251   :  { %v318_v47 = vmul.f32 1.442695, %v316_v46 }
 0x252   :  { %v315_v48 = vpop.xlane.xlu0 %314 }
 0x253   :  { %1448 = vpow2.f32 %v318_v47  ;;  %v317_v49 = vsub.f32 %v305_v38, %v315_v48 }
 0x255   :  { %v320_v50 = vmul.f32 1.442695, %v317_v49 }
 0x256   :  { %v336_v51 = vpop.permute.xlu0 %335 }
 0x257   :  { %1450 = vpow2.f32 %v320_v50  ;;  %v342_v52 = vsel %vm340_vm3, %v336_v51, 0 }
 0x258   :  { %1336 = vmatpush3.bf16.msra.mxu0 %v342_v52 }
 0x259   :  { %1347 = vmatprep.subr.bf16.mxu0 %v1484_v0 }
 0x25a   :  { %v436_v7 = vpop.permute.xlu0 %435 }
 0x25d   :  { %v1449_v53 = vpop.eup %1448 }
 0x25e   :  { %v322_v54 = vsel %vm217_vm2, %v1449_v53, 0.0 }
 0x25f   :  { %323 = vadd.xlane.f32.xlu1 %v322_v54 }
 0x261   :  { %v1451_v55 = vpop.eup %1450 }
 0x262   :  { %v325_v56 = vsel %vm217_vm2, %v1451_v55, 0.0 }
 0x263   :  { %326 = vadd.xlane.f32.xlu1 %v325_v56 }
 0x274   :  { %488 = vrot.lane.b32.xlu1 %v1601_v21, %s1487_s6 }
 0x278   :  { %486 = vrot.lane.b32.xlu1 %v1615_v28, %s1487_s6 }
 0x2ec   :  { %v324_v58 = vpop.xlane.xlu1 %323 }
 0x2ed   :  { %1452 = vrcp.f32 %v324_v58 }
 0x2f0   :  { %v327_v59 = vpop.xlane.xlu1 %326 }
 0x2f1   :  { %1454 = vrcp.f32 %v327_v59 }
 0x2f4   :  { %v489_v3 = vpop.permute.xlu1 %488 }
 0x2f5   :  { %v494_v5 = vsel %vm217_vm2, %v489_v3, 0 }
 0x2f7   :  { %v1453_v60 = vpop.eup %1452 }
 0x2f8   :  { %v330_v61 = vmul.f32 %v1453_v60, %v1449_v53  ;;  %v487_v8 = vpop.permute.xlu1 %486 }
 0x2fa   :  { %v332_v62 = vpack.c.bf16 %v330_v61, %v330_v61 }
 0x2fb   :  { %v1455_v63 = vpop.eup %1454 }
 0x2fc   :  { %v331_v2 = vmul.f32 %v1455_v63, %v1451_v55  ;;  %1338 = vmatmul.mubr.msk.bf16.vlgmr.msra.gmra.mrb[8].mxu0 %vm217_vm2, %v332_v62 }
 0x2fd   :  { %1348 = vmatpush3.bf16.xpose.msra.mxu0 %v443_v1  ;;  %1349 = vmatprep.mubr.msk.bf16.mxu0 %vm1485_vm0, %v1484_v0 }
 0x2fe   :  { %v333_v4 = vpack.c.bf16 %v331_v2, %v331_v2  ;;  %1359 = vmatprep.subr.bf16.mxu0 %v1484_v0 }
 0x300   :  { %1344 = vmatmul.mubr.msk.bf16.vlgmr.msra.gmra.mrb[8].mxu1 %vm217_vm2, %v333_v4 }
 0x301   :  { %1354 = vmatpush3.bf16.xpose.msra.mxu1 %v494_v5  ;;  %1355 = vmatprep.mubr.msk.bf16.mxu1 %vm1485_vm0, %v1484_v0 }
 0x302   :  { %1365 = vmatprep.subr.bf16.mxu1 %v1484_v0 }
 0x304   :  { %1350 = vmatmul.mubr.msk.bf16.vlgmr.msra.gmra.mrb[12].mxu0 %vm217_vm2, %v436_v7 }
 0x305   :  { %1361 = vmatprep.mubr.msk.bf16.mxu0 %vm1485_vm0, %v1484_v0 }
 0x308   :  { %1356 = vmatmul.mubr.msk.bf16.vlgmr.msra.gmra.mrb[12].mxu1 %vm217_vm2, %v487_v8 }
 0x309   :  { %1367 = vmatprep.mubr.msk.bf16.mxu1 %vm1485_vm0, %v1484_v0 }
 0x3cf   :  { %v1669_v9 = vpop.f32.mrb[8].mxu0 }
 0x3d0   :  { %v1339_v10 = vpop.f32.mrb[9].mxu0 }
 0x3d1   :  { %v381_v11 = vpop.f32.mrb[10].mxu0 }
 0x3d2   :  { %v1340_v12 = vpop.f32.mrb[11].mxu0 }
 0x3d3   :  { %v1671_v13 = vpop.f32.mrb[8].mxu1 }
 0x3d4   :  { %v433_v14 = vpack.c.bf16 %v1671_v13, %v1669_v9  ;;  %v1345_v15 = vpop.f32.mrb[9].mxu1 }
 0x3d5   :  { %v430_v17 = vpop.f32.mrb[10].mxu1 }
 0x3d6   :  { %v1346_v18 = vpop.f32.mrb[11].mxu1 }
 0x3d7   :  { %v479_v19 = vpop.f32.mrb[12].mxu0 }
 0x3d8   :  { %v480_v20 = vadd.f32 %v1630_v31, %v479_v19  ;;  %v1351_v22 = vpop.f32.mrb[13].mxu0 }
 0x3d9   :  { %v482_v23 = vpop.f32.mrb[14].mxu0 }
 0x3da   :  { %v1352_v24 = vpop.f32.mrb[15].mxu0  ;;  %v536_v25 = vsel %vm217_vm2, %v480_v20, -inf }
 0x3db   :  { %v530_v27 = vpop.f32.mrb[12].mxu1  ;;  %537 = vmax.xlane.f32.xlu0 %v536_v25 }
 0x3dc   :  { %v531_v29 = vadd.f32 %v1635_v33, %v530_v27  ;;  %v1357_v30 = vpop.f32.mrb[13].mxu1 }
 0x3dd   :  { %v533_v32 = vpop.f32.mrb[14].mxu1 }
 0x3de   :  { %v1358_v34 = vpop.f32.mrb[15].mxu1  ;;  %v539_v35 = vsel %vm217_vm2, %v531_v29, -inf }
 0x3df   :  { %540 = vmax.xlane.f32.xlu1 %v539_v35 }
 0x3f0   :  { %608 = vrot.lane.b32.xlu1 %v1601_v21, %s1488_s2 }
 0x3f4   :  { %659 = vrot.lane.b32.xlu1 %v1599_v16, %s1489_s14 }
 0x3f8   :  { %709 = vrot.lane.b32.xlu1 %v1601_v21, %s1489_s14 }
 0x3fc   :  { %707 = vrot.lane.b32.xlu1 %v1615_v28, %s1489_s14 }
 0x468   :  { %v538_v36 = vpop.xlane.xlu0 %537 }
 0x469   :  { %v542_v37 = vsub.f32 %v480_v20, %v538_v36 }
 0x46b   :  { %v544_v38 = vmul.f32 1.442695, %v542_v37 }
 0x46c   :  { %v541_v39 = vpop.xlane.xlu1 %540 }
 0x46d   :  { %1456 = vpow2.f32 %v544_v38  ;;  %v543_v40 = vsub.f32 %v531_v29, %v541_v39 }
 0x46f   :  { %v546_v41 = vmul.f32 1.442695, %v543_v40 }
 0x470   :  { %v609_v42 = vpop.permute.xlu1 %608 }
 0x471   :  { %1458 = vpow2.f32 %v546_v41  ;;  %v614_v43 = vsel %vm340_vm3, %v609_v42, 0 }
 0x472   :  { %1366 = vmatpush3.bf16.msra.mxu1 %v614_v43 }
 0x473   :  { %1377 = vmatprep.subr.bf16.mxu1 %v1484_v0 }
 0x474   :  { %v660_v53 = vpop.permute.xlu1 %659 }
 0x475   :  { %v665_v59 = vsel %vm217_vm2, %v660_v53, 0 }
 0x477   :  { %v1457_v44 = vpop.eup %1456 }
 0x478   :  { %v548_v45 = vsel %vm217_vm2, %v1457_v44, 0.0  ;;  %v710_v58 = vpop.permute.xlu1 %709 }
 0x479   :  { %549 = vadd.xlane.f32.xlu0 %v548_v45  ;;  %v715_v61 = vsel %vm217_vm2, %v710_v58, 0 }
 0x47b   :  { %v1459_v46 = vpop.eup %1458 }
 0x47c   :  { %v551_v47 = vsel %vm217_vm2, %v1459_v46, 0.0  ;;  %v708_v63 = vpop.permute.xlu1 %707 }
 0x47d   :  { %552 = vadd.xlane.f32.xlu0 %v551_v47 }
 0x493   :  { %560 = vrot.lane.b32.xlu0 %v1599_v16, %s1488_s2 }
 0x497   :  { %657 = vrot.lane.b32.xlu0 %v1610_v26, %s1489_s14 }
 0x506   :  { %v550_v48 = vpop.xlane.xlu0 %549 }
 0x507   :  { %1460 = vrcp.f32 %v550_v48 }
 0x50a   :  { %v553_v49 = vpop.xlane.xlu0 %552 }
 0x50b   :  { %1462 = vrcp.f32 %v553_v49 }
 0x50e   :  { %v561_v50 = vpop.permute.xlu0 %560 }
 0x50f   :  { %v566_v51 = vsel %vm340_vm3, %v561_v50, 0 }
 0x510   :  { %1360 = vmatpush3.bf16.msra.mxu0 %v566_v51 }
 0x511   :  { %v1461_v52 = vpop.eup %1460  ;;  %1371 = vmatprep.subr.bf16.mxu0 %v1484_v0 }
 0x512   :  { %v556_v54 = vmul.f32 %v1461_v52, %v1457_v44  ;;  %v658_v62 = vpop.permute.xlu0 %657 }
 0x514   :  { %v558_v55 = vpack.c.bf16 %v556_v54, %v556_v54 }
 0x515   :  { %v1463_v56 = vpop.eup %1462 }
 0x516   :  { %v557_v57 = vmul.f32 %v1463_v56, %v1459_v46  ;;  %1362 = vmatmul.mubr.msk.bf16.vlgmr.msra.gmra.mrb[16].mxu0 %vm217_vm2, %v558_v55 }
 0x517   :  { %1373 = vmatprep.mubr.msk.bf16.mxu0 %vm1485_vm0, %v1484_v0 }
 0x518   :  { %v559_v60 = vpack.c.bf16 %v557_v57, %v557_v57 }
 0x519   :  { %1372 = vmatpush3.bf16.xpose.msra.mxu0 %v665_v59 }
 0x51a   :  { %1368 = vmatmul.mubr.msk.bf16.vlgmr.msra.gmra.mrb[16].mxu1 %vm217_vm2, %v559_v60  ;;  %1383 = vmatprep.subr.bf16.mxu0 %v1484_v0 }
 0x51b   :  { %1378 = vmatpush3.bf16.xpose.msra.mxu1 %v715_v61  ;;  %1379 = vmatprep.mubr.msk.bf16.mxu1 %vm1485_vm0, %v1484_v0 }
 0x51c   :  { %1389 = vmatprep.subr.bf16.mxu1 %v1484_v0 }
 0x520   :  { %1374 = vmatmul.mubr.msk.bf16.vlgmr.msra.gmra.mrb[20].mxu0 %vm217_vm2, %v658_v62 }
 0x521   :  { %1385 = vmatprep.mubr.msk.bf16.mxu0 %vm1485_vm0, %v1484_v0 }
 0x522   :  { %1380 = vmatmul.mubr.msk.bf16.vlgmr.msra.gmra.mrb[20].mxu1 %vm217_vm2, %v708_v63 }
 0x523   :  { %1391 = vmatprep.mubr.msk.bf16.mxu1 %vm1485_vm0, %v1484_v0 }
 0x5e9   :  { %v1707_v1 = vpop.f32.mrb[16].mxu0 }
 0x5ea   :  { %v1363_v2 = vpop.f32.mrb[17].mxu0 }
 0x5eb   :  { %v605_v3 = vpop.f32.mrb[18].mxu0 }
 0x5ec   :  { %v1364_v4 = vpop.f32.mrb[19].mxu0 }
 0x5ed   :  { %v1709_v5 = vpop.f32.mrb[16].mxu1 }
 0x5ee   :  { %v656_v7 = vpack.c.bf16 %v1709_v5, %v1707_v1  ;;  %v1369_v8 = vpop.f32.mrb[17].mxu1 }
 0x5ef   :  { %v653_v10 = vpop.f32.mrb[18].mxu1 }
 0x5f0   :  { %v1370_v11 = vpop.f32.mrb[19].mxu1 }
 0x5f3   :  { %v701_v12 = vpop.f32.mrb[20].mxu0 }
 0x5f4   :  { %v702_v15 = vadd.f32 %v1630_v31, %v701_v12  ;;  %v1375_v17 = vpop.f32.mrb[21].mxu0 }
 0x5f5   :  { %v704_v18 = vpop.f32.mrb[22].mxu0  ;;  %v751_v19 = vpop.f32.mrb[20].mxu1 }
 0x5f6   :  { %v752_v20 = vadd.f32 %v1635_v33, %v751_v19  ;;  %v1376_v22 = vpop.f32.mrb[23].mxu0  ;;  %v1381_v23 = vpop.f32.mrb[21].mxu1  ;;  %v757_v24 = vsel %vm217_vm2, %v702_v15, -inf }
 0x5f7   :  { %v754_v25 = vpop.f32.mrb[22].mxu1  ;;  %758 = vmax.xlane.f32.xlu0 %v757_v24 }
 0x5f8   :  { %v1382_v27 = vpop.f32.mrb[23].mxu1  ;;  %v760_v29 = vsel %vm217_vm2, %v752_v20, -inf }
 0x5f9   :  { %761 = vmax.xlane.f32.xlu1 %v760_v29 }
 0x60a   :  { %829 = vrot.lane.b32.xlu1 %v1601_v21, %s1490_s15 }
 0x60e   :  { %880 = vrot.lane.b32.xlu1 %v1599_v16, %s1491_s16 }
 0x612   :  { %930 = vrot.lane.b32.xlu1 %v1601_v21, %s1491_s16 }
 0x616   :  { %928 = vrot.lane.b32.xlu1 %v1615_v28, %s1491_s16 }
 0x684   :  { %v759_v30 = vpop.xlane.xlu0 %758 }
 0x685   :  { %v763_v32 = vsub.f32 %v702_v15, %v759_v30 }
 0x686   :  { %v762_v34 = vpop.xlane.xlu1 %761 }
 0x687   :  { %v765_v35 = vmul.f32 1.442695, %v763_v32  ;;  %v764_v36 = vsub.f32 %v752_v20, %v762_v34 }
 0x689   :  { %1464 = vpow2.f32 %v765_v35  ;;  %v767_v37 = vmul.f32 1.442695, %v764_v36 }
 0x68a   :  { %v830_v38 = vpop.permute.xlu1 %829 }
 0x68b   :  { %1466 = vpow2.f32 %v767_v37  ;;  %v835_v39 = vsel %vm340_vm3, %v830_v38, 0 }
 0x68c   :  { %1390 = vmatpush3.bf16.msra.mxu1 %v835_v39 }
 0x68d   :  { %1401 = vmatprep.subr.bf16.mxu1 %v1484_v0 }
 0x68e   :  { %v881_v48 = vpop.permute.xlu1 %880 }
 0x692   :  { %v931_v53 = vpop.permute.xlu1 %930 }
 0x693   :  { %v1465_v40 = vpop.eup %1464  ;;  %v936_v55 = vsel %vm217_vm2, %v931_v53, 0 }
 0x694   :  { %v769_v41 = vsel %vm217_vm2, %v1465_v40, 0.0 }
 0x695   :  { %v1467_v42 = vpop.eup %1466  ;;  %770 = vadd.xlane.f32.xlu0 %v769_v41 }
 0x696   :  { %v772_v28 = vsel %vm217_vm2, %v1467_v42, 0.0  ;;  %v929_v57 = vpop.permute.xlu1 %928 }
 0x699   :  { %773 = vadd.xlane.f32.xlu0 %v772_v28 }
 0x6af   :  { %781 = vrot.lane.b32.xlu0 %v1599_v16, %s1490_s15 }
 0x6b3   :  { %878 = vrot.lane.b32.xlu0 %v1610_v26, %s1491_s16  ;;  %v886_v26 = vsel %vm217_vm2, %v881_v48, 0 }
 0x722   :  { %v771_v43 = vpop.xlane.xlu0 %770 }
 0x723   :  { %1468 = vrcp.f32 %v771_v43  ;;  %v1445_v43 = vld [vmem:[%s1803_s7] sm:$0xff]  }
 0x726   :  { %v774_v44 = vpop.xlane.xlu0 %773 }
 0x727   :  { %1470 = vrcp.f32 %v774_v44  ;;  %v1446_v44 = vld [vmem:[%s1803_s7 + $0x8] sm:$0xff]  }
 0x72a   :  { %v782_v45 = vpop.permute.xlu0 %781 }
 0x72b   :  { %v787_v46 = vsel %vm340_vm3, %v782_v45, 0 }
 0x72c   :  { %1384 = vmatpush3.bf16.msra.mxu0 %v787_v46 }
 0x72d   :  { %v1469_v47 = vpop.eup %1468  ;;  %1395 = vmatprep.subr.bf16.mxu0 %v1484_v0 }
 0x72e   :  { %v777_v49 = vmul.f32 %v1469_v47, %v1465_v40  ;;  %v879_v56 = vpop.permute.xlu0 %878 }
 0x730   :  { %v779_v50 = vpack.c.bf16 %v777_v49, %v777_v49 }
 0x731   :  { %v1471_v51 = vpop.eup %1470 }
 0x732   :  { %v778_v52 = vmul.f32 %v1471_v51, %v1467_v42  ;;  %1386 = vmatmul.mubr.msk.bf16.vlgmr.msra.gmra.mrb[24].mxu0 %vm217_vm2, %v779_v50 }
 0x733   :  { %1397 = vmatprep.mubr.msk.bf16.mxu0 %vm1485_vm0, %v1484_v0 }
 0x734   :  { %v780_v54 = vpack.c.bf16 %v778_v52, %v778_v52 }
 0x735   :  { %1396 = vmatpush3.bf16.xpose.msra.mxu0 %v886_v26 }
 0x736   :  { %1392 = vmatmul.mubr.msk.bf16.vlgmr.msra.gmra.mrb[24].mxu1 %vm217_vm2, %v780_v54  ;;  %1407 = vmatprep.subr.bf16.mxu0 %v1484_v0 }
 0x737   :  { %1402 = vmatpush3.bf16.xpose.msra.mxu1 %v936_v55  ;;  %1403 = vmatprep.mubr.msk.bf16.mxu1 %vm1485_vm0, %v1484_v0 }
 0x738   :  { %1413 = vmatprep.subr.bf16.mxu1 %v1484_v0 }
 0x73c   :  { %1398 = vmatmul.mubr.msk.bf16.vlgmr.msra.gmra.mrb[28].mxu0 %vm217_vm2, %v879_v56 }
 0x73d   :  { %1409 = vmatprep.mubr.msk.bf16.mxu0 %vm1485_vm0, %v1484_v0 }
 0x73e   :  { %1404 = vmatmul.mubr.msk.bf16.vlgmr.msra.gmra.mrb[28].mxu1 %vm217_vm2, %v929_v57 }
 0x73f   :  { %1415 = vmatprep.mubr.msk.bf16.mxu1 %vm1485_vm0, %v1484_v0 }
 0x805   :  { %v823_v58 = vpop.f32.mrb[24].mxu0 }
 0x806   :  { %v1387_v59 = vpop.f32.mrb[25].mxu0 }
 0x807   :  { %v826_v60 = vpop.f32.mrb[26].mxu0  ;;  %v74_v59 = vunpack.c.l.bf16 %v1582_v6 }
 0x808   :  { %v1388_v61 = vpop.f32.mrb[27].mxu0 }
 0x809   :  { %v871_v62 = vpop.f32.mrb[24].mxu1 }
 0x80a   :  { %v877_v63 = vpack.c.bf16 %v871_v62, %v823_v58  ;;  %v1393_v2 = vpop.f32.mrb[25].mxu1  ;;  %v1260_v58 = vld [vmem:[%s1804_s8] ss:$0 sm:$0xff] }
 0x80b   :  { %v874_v3 = vpop.f32.mrb[26].mxu1 }
 0x80c   :  { %v1394_v4 = vpop.f32.mrb[27].mxu1 }
 0x80f   :  { %v922_v8 = vpop.f32.mrb[28].mxu0 }
 0x810   :  { %v923_v10 = vadd.f32 %v1630_v31, %v922_v8  ;;  %v1399_v11 = vpop.f32.mrb[29].mxu0 }
 0x811   :  { %v925_v12 = vpop.f32.mrb[30].mxu0  ;;  %v972_v15 = vpop.f32.mrb[28].mxu1 }
 0x812   :  { %v973_v17 = vadd.f32 %v1635_v33, %v972_v15  ;;  %v1400_v18 = vpop.f32.mrb[31].mxu0  ;;  %v1405_v19 = vpop.f32.mrb[29].mxu1  ;;  %v978_v20 = vsel %vm217_vm2, %v923_v10, -inf }
 0x813   :  { %v975_v22 = vpop.f32.mrb[30].mxu1  ;;  %979 = vmax.xlane.f32.xlu0 %v978_v20 }
 0x814   :  { %v1406_v23 = vpop.f32.mrb[31].mxu1  ;;  %v981_v24 = vsel %vm217_vm2, %v973_v17, -inf }
 0x815   :  { %982 = vmax.xlane.f32.xlu1 %v981_v24 }
 0x826   :  { %1050 = vrot.lane.b32.xlu1 %v1601_v21, %s1492_s17 }
 0x82a   :  { %1100 = vrot.lane.b32.xlu1 %v656_v7, %s1493_s18 }
 0x82e   :  { %1103 = vrot.lane.b32.xlu1 %v877_v63, %s1494_s19  ;;  %v75_v63 = vunpack.c.h.bf16 %v1582_v6 }
 0x8a0   :  { %v980_v31 = vpop.xlane.xlu0 %979 }
 0x8a1   :  { %v984_v33 = vsub.f32 %v923_v10, %v980_v31 }
 0x8a2   :  { %v983_v25 = vpop.xlane.xlu1 %982 }
 0x8a3   :  { %v986_v27 = vmul.f32 1.442695, %v984_v33  ;;  %v985_v29 = vsub.f32 %v973_v17, %v983_v25 }
 0x8a5   :  { %1472 = vpow2.f32 %v986_v27  ;;  %v988_v30 = vmul.f32 1.442695, %v985_v29 }
 0x8a6   :  { %v1051_v32 = vpop.permute.xlu1 %1050 }
 0x8a7   :  { %1474 = vpow2.f32 %v988_v30  ;;  %v1056_v34 = vsel %vm340_vm3, %v1051_v32, 0  ;;  %v1264_v30 = vld [vmem:[%s1805_s9] ss:$0 sm:$0xff] }
 0x8a8   :  { %1414 = vmatpush3.bf16.msra.mxu1 %v1056_v34  ;;  %v1265_v34 = vld [vmem:[%s1806_s10] ss:$0 sm:$0xff] }
 0x8aa   :  { %v1101_v26 = vpop.permute.xlu1 %1100 }
 0x8ae   :  { %v1104_v54 = vpop.permute.xlu1 %1103 }
 0x8af   :  { %v1473_v21 = vpop.eup %1472 }
 0x8b0   :  { %v990_v35 = vsel %vm217_vm2, %v1473_v21, 0.0 }
 0x8b1   :  { %v1475_v36 = vpop.eup %1474  ;;  %991 = vadd.xlane.f32.xlu0 %v990_v35 }
 0x8b2   :  { %v993_v1 = vsel %vm217_vm2, %v1475_v36, 0.0 }
 0x8b5   :  { %994 = vadd.xlane.f32.xlu0 %v993_v1 }
 0x8cb   :  { %1002 = vrot.lane.b32.xlu0 %v1599_v16, %s1492_s17 }
 0x93e   :  { %v992_v5 = vpop.xlane.xlu0 %991 }
 0x93f   :  { %1476 = vrcp.f32 %v992_v5 }
 0x942   :  { %v995_v7 = vpop.xlane.xlu0 %994 }
 0x943   :  { %1478 = vrcp.f32 %v995_v7 }
 0x946   :  { %v1003_v37 = vpop.permute.xlu0 %1002 }
 0x947   :  { %v1008_v38 = vsel %vm340_vm3, %v1003_v37, 0 }
 0x948   :  { %1408 = vmatpush3.bf16.msra.mxu0 %v1008_v38 }
 0x949   :  { %v1477_v39 = vpop.eup %1476  ;;  %1419 = vmatprep.subr.bf16.mxu0 %v1484_v0 }
 0x94a   :  { %v998_v40 = vmul.f32 %v1477_v39, %v1473_v21 }
 0x94c   :  { %v1000_v41 = vpack.c.bf16 %v998_v40, %v998_v40 }
 0x94d   :  { %v1479_v42 = vpop.eup %1478 }
 0x94e   :  { %v999_v28 = vmul.f32 %v1479_v42, %v1475_v36  ;;  %1410 = vmatmul.mubr.msk.bf16.vlgmr.msra.gmra.mrb[32].mxu0 %vm217_vm2, %v1000_v41 }
 0x94f   :  { %1423 = vmatprep.mubr.msk.bf16.mxu0 %vm1485_vm0, %v1484_v0  ;;  %1420 = vmatpush3.bf16.msra.mxu0 %v1445_v43 }
 0x950   :  { %v1001_v16 = vpack.c.bf16 %v999_v28, %v999_v28  ;;  %1421 = vmatprep.subr.bf16.mxu0 %v1484_v0  ;;  %v1110_v0 = vsel %vm217_vm2, %v433_v14, %v1101_v26 }
 0x951   :  { %v1113_v55 = vsel %vm1111_vm4, %v1110_v0, %v1104_v54 }
 0x952   :  { %1416 = vmatmul.mubr.msk.bf16.vlgmr.msra.gmra.mrb[32].mxu1 %vm217_vm2, %v1001_v16 }
 0x953   :  { %1422 = vmatpush3.bf16.msra.mxu0 %v1446_v44 }
 0xa21   :  { %v1044_v45 = vpop.f32.mrb[32].mxu0 }
 0xa22   :  { %v1411_v46 = vpop.f32.mrb[33].mxu0 }
 0xa23   :  { %v1047_v47 = vpop.f32.mrb[34].mxu0 }
 0xa24   :  { %v1412_v48 = vpop.f32.mrb[35].mxu0 }
 0xa25   :  { %v1092_v49 = vpop.f32.mrb[32].mxu1 }
 0xa26   :  { %v1098_v50 = vpack.c.bf16 %v1092_v49, %v1044_v45  ;;  %v1417_v51 = vpop.f32.mrb[33].mxu1 }
 0xa27   :  { %v1095_v52 = vpop.f32.mrb[34].mxu1 }
 0xa28   :  { %v1418_v53 = vpop.f32.mrb[35].mxu1  ;;  %1106 = vrot.lane.b32.xlu0 %v1098_v50, %s1495_s24 }
 0xa9a   :  { %v1107_v56 = vpop.permute.xlu0 %1106 }
 0xa9b   :  { %v1116_v57 = vsel %vm1114_vm5, %v1113_v55, %v1107_v56 }
 0xa9c   :  { %1424 = vmatmul.mubr.msk.bf16.vlgmr.msra.gmra.mrb[36].mxu0 %vm99_vm1, %v1116_v57 }
 0xb6f   :  { %v1171_v60 = vpop.f32.mrb[36].mxu0 }
 0xb70   :  { %v1172_v61 = vadd.f32 %v1260_v58, %v1171_v60  ;;  %v1425_v62 = vpop.f32.mrb[37].mxu0 }
 0xb71   :  { %v1174_v2 = vpop.f32.mrb[38].mxu0 }
 0xb72   :  { %v1175_v9 = vadd.f32 %v1260_v58, %v1174_v2  ;;  %v1426_v13 = vpop.f32.mrb[39].mxu0  ;;  %v1178_v14 = vadd.f32 %v1172_v61, %v74_v59 }
 0xb74   :  { %v1180_v3 = vsel %vm99_vm1, %v1178_v14, 0.0  ;;  %v1179_v4 = vadd.f32 %v1175_v9, %v75_v63 }
 0xb75   :  { %1181 = vadd.xlane.f32.xlu1 %v1180_v3 }
 0xb76   :  { %v1183_v8 = vsel %vm99_vm1, %v1179_v4, 0.0 }
 0xb77   :  { %1184 = vadd.xlane.f32.xlu0 %v1183_v8 }
 0xc02   :  { %v1182_v10 = vpop.xlane.xlu1 %1181 }
 0xc03   :  { %v1187_v11 = vmul.f32 0.03125, %v1182_v10 }
 0xc04   :  { %v1185_v12 = vpop.xlane.xlu0 %1184 }
 0xc05   :  { %v1189_v15 = vsub.f32 %v1178_v14, %v1187_v11  ;;  %v1188_v17 = vmul.f32 0.03125, %v1185_v12 }
 0xc07   :  { %v1190_v18 = vsub.f32 %v1179_v4, %v1188_v17  ;;  %v1191_v19 = vmul.f32 %v1189_v15, %v1189_v15 }
 0xc09   :  { %v1193_v6 = vsel %vm99_vm1, %v1191_v19, 0.0  ;;  %v1192_v20 = vmul.f32 %v1190_v18, %v1190_v18 }
 0xc0a   :  { %1194 = vadd.xlane.f32.xlu0 %v1193_v6 }
 0xc0b   :  { %v1196_v22 = vsel %vm99_vm1, %v1192_v20, 0.0 }
 0xc0e   :  { %1197 = vadd.xlane.f32.xlu0 %v1196_v22 }
 0xc97   :  { %v1195_v23 = vpop.xlane.xlu0 %1194 }
 0xc98   :  { %v1199_v24 = vmul.f32 0.03125, %v1195_v23 }
 0xc9a   :  { %v1201_v31 = vadd.f32 1e-05, %v1199_v24 }
 0xc9b   :  { %v1198_v33 = vpop.xlane.xlu0 %1197 }
 0xc9c   :  { %1480 = vrsqrt.f32 %v1201_v31  ;;  %v1200_v25 = vmul.f32 0.03125, %v1198_v33 }
 0xc9e   :  { %v1202_v27 = vadd.f32 1e-05, %v1200_v25 }
 0xca0   :  { %1482 = vrsqrt.f32 %v1202_v27 }
 0xca6   :  { %v1481_v29 = vpop.eup %1480 }
 0xca7   :  { %v1205_v32 = vmul.f32 %v1481_v29, %v1189_v15 }
 0xca9   :  { %v1213_v21 = vmul.f32 %v1264_v30, %v1205_v32 }
 0xcaa   :  { %v1483_v35 = vpop.eup %1482 }
 0xcab   :  { %v1221_v36 = vadd.f32 %v1265_v34, %v1213_v21  ;;  %v1206_v1 = vmul.f32 %v1483_v35, %v1190_v18 }
 0xcad   :  { %v1223_v5 = vpack.c.bf16 %v1221_v36, %v1221_v36  ;;  %v1214_v7 = vmul.f32 %v1264_v30, %v1206_v1 }
 0xcaf   :  { %1226 = vst.msk [vmem:[%s1807_s11] sm:$0xf] %vm1225_vm6, %v1223_v5  ;;  %v1222_v37 = vadd.f32 %v1265_v34, %v1214_v7 }
 0xcb1   :  { %v1224_v38 = vpack.c.bf16 %v1222_v37, %v1222_v37 }
 0xcb3   :  { %1227 = vst.msk [vmem:[%s1807_s11 + $0x4] sm:$0xf] %vm1225_vm6, %v1224_v38 }

// kernel: translation_transformer_forward.21
= control target key start
LH: loop header
LB: loop body
LE: loop exit
PB: predicated region body
PF: predicated region fallthrough
CT: control target
= control target key end

     0   :  { %v117_v0 = vmov 0.0   ;;  %vm118_vm0 = vmmov 0   ;;  %vm45_vm1 = vcmask 261120   ;;  %s157_s1 = inlined_call_operand.vmem [shape: bf16[32,128], index: 1, kind: input, shape index: {}]   ;;  %s158_s0 = inlined_call_operand.vmem [shape: bf16[16,32], index: 0, kind: input, shape index: {}]   ;;  %s159_s2 = inlined_call_operand.vmem [shape: f32[1,128], index: 2, kind: input, shape index: {}]   ;;  %s160_s3 = inlined_call_operand.vmem [shape: f32[16,128], index: 3, kind: output, shape index: {}]  }
   0x1   :  { %104 = vmatprep.subr.bf16.mxu0 %v117_v0  ;;  %v114_v1 = vld [vmem:[%s157_s1] sm:$0xff]   ;;  %108 = vmatprep.mubr.msk.bf16.mxu0 %vm118_vm0, %v117_v0  ;;  %v115_v2 = vld [vmem:[%s157_s1 + $0x8] sm:$0xff]  }
   0x2   :  { %105 = vmatpush3.bf16.msra.mxu0 %v114_v1  ;;  %v116_v3 = vld [vmem:[%s158_s0] sm:$0xff]  }
   0x3   :  { %106 = vmatprep.subr.bf16.mxu0 %v117_v0  ;;  %v96_v4 = vld [vmem:[%s159_s2] ss:$0 sm:$0xff] }
   0x6   :  { %107 = vmatpush3.bf16.msra.mxu0 %v115_v2 }
   0x9   :  { %109 = vmatmul.mubr.msk.bf16.vlgmr.msra.gmra.mrb[0].mxu0 %vm45_vm1, %v116_v3 }
  0xdc   :  { %v83_v5 = vpop.f32.mrb[0].mxu0 }
  0xdd   :  { %v84_v6 = vadd.f32 %v96_v4, %v83_v5  ;;  %v110_v7 = vpop.f32.mrb[1].mxu0 }
  0xde   :  { %v86_v8 = vpop.f32.mrb[2].mxu0 }
  0xdf   :  { %90 = vst [vmem:[%s160_s3] sm:$0xff] %v84_v6  ;;  %v87_v9 = vadd.f32 %v96_v4, %v86_v8  ;;  %v111_v10 = vpop.f32.mrb[3].mxu0 }
  0xe1   :  { %91 = vst [vmem:[%s160_s3 + $0x8] sm:$0xff] %v87_v9 }

// kernel: translation_transformer_forward.15
= control target key start
LH: loop header
LB: loop body
LE: loop exit
PB: predicated region body
PF: predicated region fallthrough
CT: control target
= control target key end

     0   :  { %v1477_v0 = vmov 0.0   ;;  %vm1478_vm0 = vmmov 0   ;;  %vm102_vm1 = vcmask 261120   ;;  %vm212_vm2 = vcmask 64512   ;;  %s1482_s28 = smov 112   ;;  %s1483_s29 = smov 80   ;;  %s1783_s3 = inlined_call_operand.vmem [shape: bf16[32,64], index: 3, kind: input, shape index: {}]   ;;  %s1784_s2 = inlined_call_operand.vmem [shape: bf16[32,32], index: 2, kind: input, shape index: {}]   ;;  %s1785_s0 = inlined_call_operand.vmem [shape: bf16[2,8,32], index: 0, kind: input, shape index: {}]   ;;  %s1786_s5 = inlined_call_operand.vmem [shape: f32[1,64], index: 5, kind: input, shape index: {}]   ;;  %s1787_s4 = inlined_call_operand.vmem [shape: f32[1,32], index: 4, kind: input, shape index: {}]   ;;  %s1788_s1 = inlined_call_operand.vmem [shape: f32[2,1,8], index: 1, kind: input, shape index: {}]   ;;  %s1789_s6 = inlined_call_operand.vmem [shape: bf16[32,32], index: 6, kind: input, shape index: {}]   ;;  %s1790_s7 = inlined_call_operand.vmem [shape: f32[1,32], index: 7, kind: input, shape index: {}]   ;;  %s1791_s8 = inlined_call_operand.vmem [shape: f32[1,32], index: 8, kind: input, shape index: {}]   ;;  %s1792_s9 = inlined_call_operand.vmem [shape: f32[1,32], index: 9, kind: input, shape index: {}]   ;;  %s1793_s10 = inlined_call_operand.vmem [shape: bf16[2,8,32], index: 10, kind: output, shape index: {}]  }
   0x1   :  { %1309 = vmatprep.subr.bf16.mxu1 %v1477_v0  ;;  %v1433_v1 = vld [vmem:[%s1783_s3] sm:$0xff]   ;;  %1301 = vmatprep.subr.bf16.mxu0 %v1477_v0  ;;  %v1435_v3 = vld [vmem:[%s1783_s3 + $0x8] sm:$0xff]   ;;  %vm335_vm3 = vcmask 1043456   ;;  %v52_v30 = vlaneseq  ;;  %s1484_s30 = smov 104   ;;  %s1485_s11 = smov 72   ;;  %vm1106_vm5 = vcmask 130048  }
   0x2   :  { %v1434_v2 = vld [vmem:[%s1784_s2] sm:$0xff]   ;;  %1313 = vmatprep.mubr.msk.bf16.mxu1 %vm1478_vm0, %v1477_v0  ;;  %1305 = vmatprep.mubr.msk.bf16.mxu0 %vm1478_vm0, %v1477_v0  ;;  %v1436_v4 = vld [vmem:[%s1784_s2 + $0x8] sm:$0xff]   ;;  %s1486_s12 = smov 8   ;;  %s1487_s13 = smov 16   ;;  %vm1109_vm6 = vcmask 195584   ;;  %vm1220_vm7 = vcmask 257024  }
   0x3   :  { %1310 = vmatpush3.bf16.msra.mxu1 %v1433_v1  ;;  %1302 = vmatpush3.bf16.msra.mxu0 %v1434_v2  ;;  %v1567_v5 = vld [vmem:[%s1785_s0] sm:$0xff]   ;;  %v53_v31 = vshrl.u32 %v52_v30, 7  ;;  %v55_v32 = vand.u32 127, %v52_v30  ;;  %s1488_s18 = smov 24  }
   0x4   :  { %1311 = vmatprep.subr.bf16.mxu1 %v1477_v0  ;;  %1303 = vmatprep.subr.bf16.mxu0 %v1477_v0  ;;  %v1234_v6 = vld [vmem:[%s1786_s5] ss:$0 sm:$0xff]  ;;  %s1480_s5 = smov 120   ;;  %v1228_v35 = vld [vmem:[%s1788_s1 + $0x1] ss:$0 sm:$0xff] }
   0x5   :  { %v1229_v7 = vld [vmem:[%s1787_s4] ss:$0 sm:$0xff]  ;;  %s1479_s4 = smov 96   ;;  %vm56_vm4 = vcmp.gt.s32.totalorder %v55_v32, %v53_v31 }
   0x6   :  { %v1227_v33 = vld [vmem:[%s1788_s1] ss:$0 sm:$0xff]  ;;  %v57_v34 = vsel %vm56_vm4, -1e+09, %v1477_v0  ;;  %s1481_s1 = smov 88  }
   0x7   :  { %1312 = vmatpush3.bf16.msra.mxu1 %v1435_v3  ;;  %1304 = vmatpush3.bf16.msra.mxu0 %v1436_v4  ;;  %v1620_v36 = vadd.f32 %v1227_v33, %v57_v34  ;;  %v1622_v37 = vadd.f32 %v1228_v35, %v57_v34 }
   0x8   :  { %1323 = vmatprep.subr.bf16.mxu1 %v1477_v0  ;;  %1317 = vmatprep.subr.bf16.mxu0 %v1477_v0 }
   0xa   :  { %1314 = vmatmul.mubr.msk.bf16.vlgmr.msra.gmra.mrb[0].mxu1 %vm102_vm1, %v1567_v5  ;;  %1306 = vmatmul.mubr.msk.bf16.vlgmr.msra.gmra.mrb[0].mxu0 %vm102_vm1, %v1567_v5 }
   0xb   :  { %1325 = vmatprep.mubr.msk.bf16.mxu1 %vm1478_vm0, %v1477_v0  ;;  %1319 = vmatprep.mubr.msk.bf16.mxu0 %vm1478_vm0, %v1477_v0 }
  0xdd   :  { %v199_v8 = vpop.f32.mrb[0].mxu1  ;;  %v140_v11 = vpop.f32.mrb[0].mxu0 }
  0xde   :  { %v200_v9 = vadd.f32 %v1234_v6, %v199_v8  ;;  %v1315_v10 = vpop.f32.mrb[1].mxu1  ;;  %v141_v13 = vadd.f32 %v1229_v7, %v140_v11  ;;  %v1307_v14 = vpop.f32.mrb[1].mxu0 }
  0xdf   :  { %v202_v12 = vpop.f32.mrb[2].mxu1  ;;  %v143_v18 = vpop.f32.mrb[2].mxu0 }
  0xe0   :  { %v1585_v15 = vpack.c.bf16 %v200_v9, %v200_v9  ;;  %v203_v16 = vadd.f32 %v1234_v6, %v202_v12  ;;  %v1316_v17 = vpop.f32.mrb[3].mxu1  ;;  %v1308_v19 = vpop.f32.mrb[3].mxu0  ;;  %v206_v21 = vmul.f32 0.35355338, %v141_v13  ;;  %v144_v22 = vadd.f32 %v1229_v7, %v143_v18 }
  0xe2   :  { %v1587_v20 = vpack.c.bf16 %v203_v16, %v203_v16  ;;  %v217_v23 = vsel %vm212_vm2, %v1585_v15, 0  ;;  %v1596_v25 = vpack.c.bf16 %v206_v21, %v206_v21  ;;  %v207_v26 = vmul.f32 0.35355338, %v144_v22 }
  0xe3   :  { %1318 = vmatpush3.bf16.xpose.msra.mxu0 %v217_v23 }
  0xe4   :  { %380 = vrot.lane.b32.xlu1 %v1587_v20, %s1479_s4  ;;  %v263_v24 = vsel %vm212_vm2, %v1587_v20, 0  ;;  %1329 = vmatprep.subr.bf16.mxu0 %v1477_v0  ;;  %v1601_v27 = vpack.c.bf16 %v207_v26, %v207_v26 }
  0xe5   :  { %1324 = vmatpush3.bf16.xpose.msra.mxu1 %v263_v24 }
  0xe6   :  { %1335 = vmatprep.subr.bf16.mxu1 %v1477_v0 }
  0xe8   :  { %432 = vrot.lane.b32.xlu1 %v1585_v15, %s1480_s5 }
  0xea   :  { %1320 = vmatmul.mubr.msk.bf16.vlgmr.msra.gmra.mrb[4].mxu0 %vm212_vm2, %v1596_v25 }
  0xeb   :  { %1331 = vmatprep.mubr.msk.bf16.mxu0 %vm1478_vm0, %v1477_v0 }
  0xec   :  { %1326 = vmatmul.mubr.msk.bf16.vlgmr.msra.gmra.mrb[4].mxu1 %vm212_vm2, %v1601_v27 }
  0xed   :  { %1337 = vmatprep.mubr.msk.bf16.mxu1 %vm1478_vm0, %v1477_v0 }
 0x156   :  { %v381_v28 = vpop.permute.xlu1 %380 }
 0x157   :  { %v386_v29 = vsel %vm335_vm3, %v381_v28, 0 }
 0x158   :  { %1336 = vmatpush3.bf16.msra.mxu1 %v386_v29 }
 0x159   :  { %1347 = vmatprep.subr.bf16.mxu1 %v1477_v0 }
 0x15a   :  { %v433_v62 = vpop.permute.xlu1 %432 }
 0x15b   :  { %v438_v7 = vsel %vm212_vm2, %v433_v62, 0 }
 0x1bd   :  { %v253_v38 = vpop.f32.mrb[4].mxu0 }
 0x1be   :  { %v254_v39 = vadd.f32 %v253_v38, %v1620_v36  ;;  %v1321_v40 = vpop.f32.mrb[5].mxu0 }
 0x1bf   :  { %v256_v41 = vpop.f32.mrb[6].mxu0  ;;  %v299_v42 = vpop.f32.mrb[4].mxu1 }
 0x1c0   :  { %v300_v43 = vadd.f32 %v299_v42, %v1622_v37  ;;  %v1322_v44 = vpop.f32.mrb[7].mxu0  ;;  %v1327_v45 = vpop.f32.mrb[5].mxu1  ;;  %v305_v46 = vsel %vm212_vm2, %v254_v39, -inf }
 0x1c1   :  { %v302_v47 = vpop.f32.mrb[6].mxu1  ;;  %306 = vmax.xlane.f32.xlu0 %v305_v46 }
 0x1c2   :  { %v1328_v48 = vpop.f32.mrb[7].mxu1  ;;  %v308_v49 = vsel %vm212_vm2, %v300_v43, -inf }
 0x1c5   :  { %309 = vmax.xlane.f32.xlu0 %v308_v49 }
 0x1db   :  { %330 = vrot.lane.b32.xlu0 %v1585_v15, %s1479_s4 }
 0x1df   :  { %430 = vrot.lane.b32.xlu0 %v1596_v25, %s1480_s5 }
 0x24e   :  { %v307_v50 = vpop.xlane.xlu0 %306 }
 0x24f   :  { %v311_v51 = vsub.f32 %v254_v39, %v307_v50 }
 0x251   :  { %v313_v52 = vmul.f32 1.442695, %v311_v51 }
 0x252   :  { %v310_v53 = vpop.xlane.xlu0 %309 }
 0x253   :  { %1441 = vpow2.f32 %v313_v52  ;;  %v312_v54 = vsub.f32 %v300_v43, %v310_v53 }
 0x255   :  { %v315_v55 = vmul.f32 1.442695, %v312_v54 }
 0x256   :  { %v331_v56 = vpop.permute.xlu0 %330 }
 0x257   :  { %1443 = vpow2.f32 %v315_v55  ;;  %v337_v57 = vsel %vm335_vm3, %v331_v56, 0 }
 0x258   :  { %1330 = vmatpush3.bf16.msra.mxu0 %v337_v57 }
 0x259   :  { %1341 = vmatprep.subr.bf16.mxu0 %v1477_v0 }
 0x25a   :  { %v431_v12 = vpop.permute.xlu0 %430 }
 0x25d   :  { %v1442_v58 = vpop.eup %1441 }
 0x25e   :  { %v317_v59 = vsel %vm212_vm2, %v1442_v58, 0.0 }
 0x25f   :  { %318 = vadd.xlane.f32.xlu1 %v317_v59 }
 0x261   :  { %v1444_v60 = vpop.eup %1443 }
 0x262   :  { %v320_v61 = vsel %vm212_vm2, %v1444_v60, 0.0 }
 0x263   :  { %321 = vadd.xlane.f32.xlu1 %v320_v61 }
 0x274   :  { %483 = vrot.lane.b32.xlu1 %v1587_v20, %s1480_s5 }
 0x278   :  { %481 = vrot.lane.b32.xlu1 %v1601_v27, %s1480_s5 }
 0x2ec   :  { %v319_v63 = vpop.xlane.xlu1 %318 }
 0x2ed   :  { %1445 = vrcp.f32 %v319_v63 }
 0x2f0   :  { %v322_v1 = vpop.xlane.xlu1 %321 }
 0x2f1   :  { %1447 = vrcp.f32 %v322_v1 }
 0x2f4   :  { %v484_v9 = vpop.permute.xlu1 %483 }
 0x2f5   :  { %v489_v11 = vsel %vm212_vm2, %v484_v9, 0 }
 0x2f7   :  { %v1446_v2 = vpop.eup %1445 }
 0x2f8   :  { %v325_v3 = vmul.f32 %v1446_v2, %v1442_v58  ;;  %v482_v13 = vpop.permute.xlu1 %481 }
 0x2fa   :  { %v327_v4 = vpack.c.bf16 %v325_v3, %v325_v3 }
 0x2fb   :  { %v1448_v6 = vpop.eup %1447 }
 0x2fc   :  { %v326_v8 = vmul.f32 %v1448_v6, %v1444_v60  ;;  %1332 = vmatmul.mubr.msk.bf16.vlgmr.msra.gmra.mrb[8].mxu0 %vm212_vm2, %v327_v4 }
 0x2fd   :  { %1342 = vmatpush3.bf16.xpose.msra.mxu0 %v438_v7  ;;  %1343 = vmatprep.mubr.msk.bf16.mxu0 %vm1478_vm0, %v1477_v0 }
 0x2fe   :  { %v328_v10 = vpack.c.bf16 %v326_v8, %v326_v8  ;;  %1353 = vmatprep.subr.bf16.mxu0 %v1477_v0 }
 0x300   :  { %1338 = vmatmul.mubr.msk.bf16.vlgmr.msra.gmra.mrb[8].mxu1 %vm212_vm2, %v328_v10 }
 0x301   :  { %1348 = vmatpush3.bf16.xpose.msra.mxu1 %v489_v11  ;;  %1349 = vmatprep.mubr.msk.bf16.mxu1 %vm1478_vm0, %v1477_v0 }
 0x302   :  { %1359 = vmatprep.subr.bf16.mxu1 %v1477_v0 }
 0x304   :  { %1344 = vmatmul.mubr.msk.bf16.vlgmr.msra.gmra.mrb[12].mxu0 %vm212_vm2, %v431_v12 }
 0x305   :  { %1355 = vmatprep.mubr.msk.bf16.mxu0 %vm1478_vm0, %v1477_v0 }
 0x308   :  { %1350 = vmatmul.mubr.msk.bf16.vlgmr.msra.gmra.mrb[12].mxu1 %vm212_vm2, %v482_v13 }
 0x309   :  { %1361 = vmatprep.mubr.msk.bf16.mxu1 %vm1478_vm0, %v1477_v0 }
 0x3cf   :  { %v1656_v14 = vpop.f32.mrb[8].mxu0 }
 0x3d0   :  { %v1333_v16 = vpop.f32.mrb[9].mxu0 }
 0x3d1   :  { %v376_v17 = vpop.f32.mrb[10].mxu0 }
 0x3d2   :  { %v1334_v18 = vpop.f32.mrb[11].mxu0 }
 0x3d3   :  { %v1658_v19 = vpop.f32.mrb[8].mxu1 }
 0x3d4   :  { %v428_v21 = vpack.c.bf16 %v1658_v19, %v1656_v14  ;;  %v1339_v22 = vpop.f32.mrb[9].mxu1 }
 0x3d5   :  { %v425_v23 = vpop.f32.mrb[10].mxu1 }
 0x3d6   :  { %v1340_v24 = vpop.f32.mrb[11].mxu1 }
 0x3d7   :  { %v474_v26 = vpop.f32.mrb[12].mxu0 }
 0x3d8   :  { %v475_v28 = vadd.f32 %v474_v26, %v1620_v36  ;;  %v1345_v29 = vpop.f32.mrb[13].mxu0 }
 0x3d9   :  { %v477_v30 = vpop.f32.mrb[14].mxu0 }
 0x3da   :  { %v1346_v31 = vpop.f32.mrb[15].mxu0  ;;  %v531_v32 = vsel %vm212_vm2, %v475_v28, -inf }
 0x3db   :  { %v525_v33 = vpop.f32.mrb[12].mxu1  ;;  %532 = vmax.xlane.f32.xlu0 %v531_v32 }
 0x3dc   :  { %v526_v34 = vadd.f32 %v525_v33, %v1622_v37  ;;  %v1351_v35 = vpop.f32.mrb[13].mxu1 }
 0x3dd   :  { %v528_v38 = vpop.f32.mrb[14].mxu1 }
 0x3de   :  { %v1352_v39 = vpop.f32.mrb[15].mxu1  ;;  %v534_v40 = vsel %vm212_vm2, %v526_v34, -inf }
 0x3df   :  { %535 = vmax.xlane.f32.xlu1 %v534_v40 }
 0x3f0   :  { %603 = vrot.lane.b32.xlu1 %v1587_v20, %s1481_s1 }
 0x3f4   :  { %654 = vrot.lane.b32.xlu1 %v1585_v15, %s1482_s28 }
 0x3f8   :  { %704 = vrot.lane.b32.xlu1 %v1587_v20, %s1482_s28 }
 0x3fc   :  { %702 = vrot.lane.b32.xlu1 %v1601_v27, %s1482_s28 }
 0x468   :  { %v533_v41 = vpop.xlane.xlu0 %532 }
 0x469   :  { %v537_v42 = vsub.f32 %v475_v28, %v533_v41 }
 0x46b   :  { %v539_v43 = vmul.f32 1.442695, %v537_v42 }
 0x46c   :  { %v536_v44 = vpop.xlane.xlu1 %535 }
 0x46d   :  { %1449 = vpow2.f32 %v539_v43  ;;  %v538_v45 = vsub.f32 %v526_v34, %v536_v44 }
 0x46f   :  { %v541_v46 = vmul.f32 1.442695, %v538_v45 }
 0x470   :  { %v604_v47 = vpop.permute.xlu1 %603 }
 0x471   :  { %1451 = vpow2.f32 %v541_v46  ;;  %v609_v48 = vsel %vm335_vm3, %v604_v47, 0 }
 0x472   :  { %1360 = vmatpush3.bf16.msra.mxu1 %v609_v48 }
 0x473   :  { %1371 = vmatprep.subr.bf16.mxu1 %v1477_v0 }
 0x474   :  { %v655_v58 = vpop.permute.xlu1 %654 }
 0x475   :  { %v660_v1 = vsel %vm212_vm2, %v655_v58, 0 }
 0x477   :  { %v1450_v49 = vpop.eup %1449 }
 0x478   :  { %v543_v50 = vsel %vm212_vm2, %v1450_v49, 0.0  ;;  %v705_v63 = vpop.permute.xlu1 %704 }
 0x479   :  { %544 = vadd.xlane.f32.xlu0 %v543_v50  ;;  %v710_v3 = vsel %vm212_vm2, %v705_v63, 0 }
 0x47b   :  { %v1452_v51 = vpop.eup %1451 }
 0x47c   :  { %v546_v52 = vsel %vm212_vm2, %v1452_v51, 0.0  ;;  %v703_v6 = vpop.permute.xlu1 %702 }
 0x47d   :  { %547 = vadd.xlane.f32.xlu0 %v546_v52 }
 0x493   :  { %555 = vrot.lane.b32.xlu0 %v1585_v15, %s1481_s1 }
 0x497   :  { %652 = vrot.lane.b32.xlu0 %v1596_v25, %s1482_s28 }
 0x506   :  { %v545_v53 = vpop.xlane.xlu0 %544 }
 0x507   :  { %1453 = vrcp.f32 %v545_v53 }
 0x50a   :  { %v548_v54 = vpop.xlane.xlu0 %547 }
 0x50b   :  { %1455 = vrcp.f32 %v548_v54 }
 0x50e   :  { %v556_v55 = vpop.permute.xlu0 %555 }
 0x50f   :  { %v561_v56 = vsel %vm335_vm3, %v556_v55, 0 }
 0x510   :  { %1354 = vmatpush3.bf16.msra.mxu0 %v561_v56 }
 0x511   :  { %v1454_v57 = vpop.eup %1453  ;;  %1365 = vmatprep.subr.bf16.mxu0 %v1477_v0 }
 0x512   :  { %v551_v59 = vmul.f32 %v1454_v57, %v1450_v49  ;;  %v653_v4 = vpop.permute.xlu0 %652 }
 0x514   :  { %v553_v60 = vpack.c.bf16 %v551_v59, %v551_v59 }
 0x515   :  { %v1456_v61 = vpop.eup %1455 }
 0x516   :  { %v552_v62 = vmul.f32 %v1456_v61, %v1452_v51  ;;  %1356 = vmatmul.mubr.msk.bf16.vlgmr.msra.gmra.mrb[16].mxu0 %vm212_vm2, %v553_v60 }
 0x517   :  { %1367 = vmatprep.mubr.msk.bf16.mxu0 %vm1478_vm0, %v1477_v0 }
 0x518   :  { %v554_v2 = vpack.c.bf16 %v552_v62, %v552_v62 }
 0x519   :  { %1366 = vmatpush3.bf16.xpose.msra.mxu0 %v660_v1 }
 0x51a   :  { %1362 = vmatmul.mubr.msk.bf16.vlgmr.msra.gmra.mrb[16].mxu1 %vm212_vm2, %v554_v2  ;;  %1377 = vmatprep.subr.bf16.mxu0 %v1477_v0 }
 0x51b   :  { %1372 = vmatpush3.bf16.xpose.msra.mxu1 %v710_v3  ;;  %1373 = vmatprep.mubr.msk.bf16.mxu1 %vm1478_vm0, %v1477_v0 }
 0x51c   :  { %1383 = vmatprep.subr.bf16.mxu1 %v1477_v0 }
 0x520   :  { %1368 = vmatmul.mubr.msk.bf16.vlgmr.msra.gmra.mrb[20].mxu0 %vm212_vm2, %v653_v4 }
 0x521   :  { %1379 = vmatprep.mubr.msk.bf16.mxu0 %vm1478_vm0, %v1477_v0 }
 0x522   :  { %1374 = vmatmul.mubr.msk.bf16.vlgmr.msra.gmra.mrb[20].mxu1 %vm212_vm2, %v703_v6 }
 0x523   :  { %1385 = vmatprep.mubr.msk.bf16.mxu1 %vm1478_vm0, %v1477_v0 }
 0x5e9   :  { %v1694_v7 = vpop.f32.mrb[16].mxu0 }
 0x5ea   :  { %v1357_v8 = vpop.f32.mrb[17].mxu0 }
 0x5eb   :  { %v600_v9 = vpop.f32.mrb[18].mxu0 }
 0x5ec   :  { %v1358_v10 = vpop.f32.mrb[19].mxu0 }
 0x5ed   :  { %v1696_v11 = vpop.f32.mrb[16].mxu1 }
 0x5ee   :  { %v651_v12 = vpack.c.bf16 %v1696_v11, %v1694_v7  ;;  %v1363_v13 = vpop.f32.mrb[17].mxu1 }
 0x5ef   :  { %v648_v16 = vpop.f32.mrb[18].mxu1 }
 0x5f0   :  { %v1364_v17 = vpop.f32.mrb[19].mxu1 }
 0x5f3   :  { %v696_v18 = vpop.f32.mrb[20].mxu0 }
 0x5f4   :  { %v697_v22 = vadd.f32 %v696_v18, %v1620_v36  ;;  %v1369_v23 = vpop.f32.mrb[21].mxu0 }
 0x5f5   :  { %v699_v24 = vpop.f32.mrb[22].mxu0  ;;  %v746_v26 = vpop.f32.mrb[20].mxu1 }
 0x5f6   :  { %v747_v28 = vadd.f32 %v746_v26, %v1622_v37  ;;  %v1370_v29 = vpop.f32.mrb[23].mxu0  ;;  %v1375_v30 = vpop.f32.mrb[21].mxu1  ;;  %v752_v31 = vsel %vm212_vm2, %v697_v22, -inf }
 0x5f7   :  { %v749_v32 = vpop.f32.mrb[22].mxu1  ;;  %753 = vmax.xlane.f32.xlu0 %v752_v31 }
 0x5f8   :  { %v1376_v33 = vpop.f32.mrb[23].mxu1  ;;  %v755_v34 = vsel %vm212_vm2, %v747_v28, -inf }
 0x5f9   :  { %756 = vmax.xlane.f32.xlu1 %v755_v34 }
 0x60a   :  { %824 = vrot.lane.b32.xlu1 %v1587_v20, %s1483_s29 }
 0x60e   :  { %875 = vrot.lane.b32.xlu1 %v1585_v15, %s1484_s30 }
 0x612   :  { %925 = vrot.lane.b32.xlu1 %v1587_v20, %s1484_s30 }
 0x616   :  { %923 = vrot.lane.b32.xlu1 %v1601_v27, %s1484_s30 }
 0x684   :  { %v754_v35 = vpop.xlane.xlu0 %753 }
 0x685   :  { %v758_v38 = vsub.f32 %v697_v22, %v754_v35 }
 0x686   :  { %v757_v39 = vpop.xlane.xlu1 %756 }
 0x687   :  { %v760_v40 = vmul.f32 1.442695, %v758_v38  ;;  %v759_v41 = vsub.f32 %v747_v28, %v757_v39 }
 0x689   :  { %1457 = vpow2.f32 %v760_v40  ;;  %v762_v42 = vmul.f32 1.442695, %v759_v41 }
 0x68a   :  { %v825_v43 = vpop.permute.xlu1 %824 }
 0x68b   :  { %1459 = vpow2.f32 %v762_v42  ;;  %v830_v44 = vsel %vm335_vm3, %v825_v43, 0 }
 0x68c   :  { %1384 = vmatpush3.bf16.msra.mxu1 %v830_v44 }
 0x68d   :  { %1395 = vmatprep.subr.bf16.mxu1 %v1477_v0 }
 0x68e   :  { %v876_v53 = vpop.permute.xlu1 %875 }
 0x692   :  { %v926_v58 = vpop.permute.xlu1 %925 }
 0x693   :  { %v1458_v45 = vpop.eup %1457  ;;  %v931_v60 = vsel %vm212_vm2, %v926_v58, 0 }
 0x694   :  { %v764_v46 = vsel %vm212_vm2, %v1458_v45, 0.0 }
 0x695   :  { %v1460_v47 = vpop.eup %1459  ;;  %765 = vadd.xlane.f32.xlu0 %v764_v46 }
 0x696   :  { %v767_v27 = vsel %vm212_vm2, %v1460_v47, 0.0  ;;  %v924_v62 = vpop.permute.xlu1 %923 }
 0x699   :  { %768 = vadd.xlane.f32.xlu0 %v767_v27 }
 0x6af   :  { %776 = vrot.lane.b32.xlu0 %v1585_v15, %s1483_s29 }
 0x6b3   :  { %873 = vrot.lane.b32.xlu0 %v1596_v25, %s1484_s30  ;;  %v881_v25 = vsel %vm212_vm2, %v876_v53, 0 }
 0x722   :  { %v766_v48 = vpop.xlane.xlu0 %765 }
 0x723   :  { %1461 = vrcp.f32 %v766_v48  ;;  %v1438_v48 = vld [vmem:[%s1789_s6] sm:$0xff]  }
 0x726   :  { %v769_v49 = vpop.xlane.xlu0 %768 }
 0x727   :  { %1463 = vrcp.f32 %v769_v49  ;;  %v1439_v49 = vld [vmem:[%s1789_s6 + $0x8] sm:$0xff]  }
 0x72a   :  { %v777_v50 = vpop.permute.xlu0 %776 }
 0x72b   :  { %v782_v51 = vsel %vm335_vm3, %v777_v50, 0 }
 0x72c   :  { %1378 = vmatpush3.bf16.msra.mxu0 %v782_v51 }
 0x72d   :  { %v1462_v52 = vpop.eup %1461  ;;  %1389 = vmatprep.subr.bf16.mxu0 %v1477_v0 }
 0x72e   :  { %v772_v54 = vmul.f32 %v1462_v52, %v1458_v45  ;;  %v874_v61 = vpop.permute.xlu0 %873 }
 0x730   :  { %v774_v55 = vpack.c.bf16 %v772_v54, %v772_v54 }
 0x731   :  { %v1464_v56 = vpop.eup %1463 }
 0x732   :  { %v773_v57 = vmul.f32 %v1464_v56, %v1460_v47  ;;  %1380 = vmatmul.mubr.msk.bf16.vlgmr.msra.gmra.mrb[24].mxu0 %vm212_vm2, %v774_v55 }
 0x733   :  { %1391 = vmatprep.mubr.msk.bf16.mxu0 %vm1478_vm0, %v1477_v0 }
 0x734   :  { %v775_v59 = vpack.c.bf16 %v773_v57, %v773_v57 }
 0x735   :  { %1390 = vmatpush3.bf16.xpose.msra.mxu0 %v881_v25 }
 0x736   :  { %1386 = vmatmul.mubr.msk.bf16.vlgmr.msra.gmra.mrb[24].mxu1 %vm212_vm2, %v775_v59  ;;  %1401 = vmatprep.subr.bf16.mxu0 %v1477_v0 }
 0x737   :  { %1396 = vmatpush3.bf16.xpose.msra.mxu1 %v931_v60  ;;  %1397 = vmatprep.mubr.msk.bf16.mxu1 %vm1478_vm0, %v1477_v0 }
 0x738   :  { %1407 = vmatprep.subr.bf16.mxu1 %v1477_v0 }
 0x73c   :  { %1392 = vmatmul.mubr.msk.bf16.vlgmr.msra.gmra.mrb[28].mxu0 %vm212_vm2, %v874_v61 }
 0x73d   :  { %1403 = vmatprep.mubr.msk.bf16.mxu0 %vm1478_vm0, %v1477_v0 }
 0x73e   :  { %1398 = vmatmul.mubr.msk.bf16.vlgmr.msra.gmra.mrb[28].mxu1 %vm212_vm2, %v924_v62 }
 0x73f   :  { %1409 = vmatprep.mubr.msk.bf16.mxu1 %vm1478_vm0, %v1477_v0 }
 0x805   :  { %v818_v63 = vpop.f32.mrb[24].mxu0 }
 0x806   :  { %v1381_v1 = vpop.f32.mrb[25].mxu0 }
 0x807   :  { %v821_v2 = vpop.f32.mrb[26].mxu0  ;;  %v77_v1 = vunpack.c.l.bf16 %v1567_v5 }
 0x808   :  { %v1382_v3 = vpop.f32.mrb[27].mxu0 }
 0x809   :  { %v866_v4 = vpop.f32.mrb[24].mxu1 }
 0x80a   :  { %v872_v6 = vpack.c.bf16 %v866_v4, %v818_v63  ;;  %v1387_v8 = vpop.f32.mrb[25].mxu1  ;;  %v1254_v63 = vld [vmem:[%s1790_s7] ss:$0 sm:$0xff] }
 0x80b   :  { %v869_v9 = vpop.f32.mrb[26].mxu1 }
 0x80c   :  { %v1388_v10 = vpop.f32.mrb[27].mxu1 }
 0x80f   :  { %v917_v13 = vpop.f32.mrb[28].mxu0 }
 0x810   :  { %v918_v16 = vadd.f32 %v917_v13, %v1620_v36  ;;  %v1393_v17 = vpop.f32.mrb[29].mxu0 }
 0x811   :  { %v920_v18 = vpop.f32.mrb[30].mxu0  ;;  %v967_v22 = vpop.f32.mrb[28].mxu1 }
 0x812   :  { %v968_v23 = vadd.f32 %v967_v22, %v1622_v37  ;;  %v1394_v24 = vpop.f32.mrb[31].mxu0  ;;  %v1399_v26 = vpop.f32.mrb[29].mxu1  ;;  %v973_v28 = vsel %vm212_vm2, %v918_v16, -inf }
 0x813   :  { %v970_v29 = vpop.f32.mrb[30].mxu1  ;;  %974 = vmax.xlane.f32.xlu0 %v973_v28 }
 0x814   :  { %v1400_v30 = vpop.f32.mrb[31].mxu1  ;;  %v976_v31 = vsel %vm212_vm2, %v968_v23, -inf }
 0x815   :  { %977 = vmax.xlane.f32.xlu1 %v976_v31 }
 0x826   :  { %1045 = vrot.lane.b32.xlu1 %v1587_v20, %s1485_s11 }
 0x82a   :  { %1095 = vrot.lane.b32.xlu1 %v651_v12, %s1486_s12 }
 0x82e   :  { %1098 = vrot.lane.b32.xlu1 %v872_v6, %s1487_s13  ;;  %v78_v6 = vunpack.c.h.bf16 %v1567_v5 }
 0x8a0   :  { %v975_v36 = vpop.xlane.xlu0 %974 }
 0x8a1   :  { %v979_v37 = vsub.f32 %v918_v16, %v975_v36 }
 0x8a2   :  { %v978_v32 = vpop.xlane.xlu1 %977 }
 0x8a3   :  { %v981_v33 = vmul.f32 1.442695, %v979_v37  ;;  %v980_v34 = vsub.f32 %v968_v23, %v978_v32 }
 0x8a5   :  { %1465 = vpow2.f32 %v981_v33  ;;  %v983_v35 = vmul.f32 1.442695, %v980_v34 }
 0x8a6   :  { %v1046_v38 = vpop.permute.xlu1 %1045 }
 0x8a7   :  { %1467 = vpow2.f32 %v983_v35  ;;  %v1051_v39 = vsel %vm335_vm3, %v1046_v38, 0  ;;  %v1258_v35 = vld [vmem:[%s1791_s8] ss:$0 sm:$0xff] }
 0x8a8   :  { %1408 = vmatpush3.bf16.msra.mxu1 %v1051_v39  ;;  %v1259_v39 = vld [vmem:[%s1792_s9] ss:$0 sm:$0xff] }
 0x8aa   :  { %v1096_v25 = vpop.permute.xlu1 %1095 }
 0x8ae   :  { %v1099_v59 = vpop.permute.xlu1 %1098 }
 0x8af   :  { %v1466_v20 = vpop.eup %1465 }
 0x8b0   :  { %v985_v40 = vsel %vm212_vm2, %v1466_v20, 0.0 }
 0x8b1   :  { %v1468_v41 = vpop.eup %1467  ;;  %986 = vadd.xlane.f32.xlu0 %v985_v40 }
 0x8b2   :  { %v988_v7 = vsel %vm212_vm2, %v1468_v41, 0.0 }
 0x8b5   :  { %989 = vadd.xlane.f32.xlu0 %v988_v7 }
 0x8cb   :  { %997 = vrot.lane.b32.xlu0 %v1585_v15, %s1485_s11 }
 0x93e   :  { %v987_v11 = vpop.xlane.xlu0 %986 }
 0x93f   :  { %1469 = vrcp.f32 %v987_v11 }
 0x942   :  { %v990_v12 = vpop.xlane.xlu0 %989 }
 0x943   :  { %1471 = vrcp.f32 %v990_v12 }
 0x946   :  { %v998_v42 = vpop.permute.xlu0 %997 }
 0x947   :  { %v1003_v43 = vsel %vm335_vm3, %v998_v42, 0 }
 0x948   :  { %1402 = vmatpush3.bf16.msra.mxu0 %v1003_v43 }
 0x949   :  { %v1470_v44 = vpop.eup %1469  ;;  %1413 = vmatprep.subr.bf16.mxu0 %v1477_v0 }
 0x94a   :  { %v993_v45 = vmul.f32 %v1470_v44, %v1466_v20 }
 0x94c   :  { %v995_v46 = vpack.c.bf16 %v993_v45, %v993_v45 }
 0x94d   :  { %v1472_v47 = vpop.eup %1471 }
 0x94e   :  { %v994_v27 = vmul.f32 %v1472_v47, %v1468_v41  ;;  %1404 = vmatmul.mubr.msk.bf16.vlgmr.msra.gmra.mrb[32].mxu0 %vm212_vm2, %v995_v46 }
 0x94f   :  { %1417 = vmatprep.mubr.msk.bf16.mxu0 %vm1478_vm0, %v1477_v0  ;;  %1414 = vmatpush3.bf16.msra.mxu0 %v1438_v48 }
 0x950   :  { %v996_v15 = vpack.c.bf16 %v994_v27, %v994_v27  ;;  %1415 = vmatprep.subr.bf16.mxu0 %v1477_v0  ;;  %v1105_v0 = vsel %vm212_vm2, %v428_v21, %v1096_v25 }
 0x951   :  { %v1108_v60 = vsel %vm1106_vm5, %v1105_v0, %v1099_v59 }
 0x952   :  { %1410 = vmatmul.mubr.msk.bf16.vlgmr.msra.gmra.mrb[32].mxu1 %vm212_vm2, %v996_v15 }
 0x953   :  { %1416 = vmatpush3.bf16.msra.mxu0 %v1439_v49 }
 0xa21   :  { %v1039_v50 = vpop.f32.mrb[32].mxu0 }
 0xa22   :  { %v1405_v51 = vpop.f32.mrb[33].mxu0 }
 0xa23   :  { %v1042_v52 = vpop.f32.mrb[34].mxu0 }
 0xa24   :  { %v1406_v53 = vpop.f32.mrb[35].mxu0 }
 0xa25   :  { %v1087_v54 = vpop.f32.mrb[32].mxu1 }
 0xa26   :  { %v1093_v55 = vpack.c.bf16 %v1087_v54, %v1039_v50  ;;  %v1411_v56 = vpop.f32.mrb[33].mxu1 }
 0xa27   :  { %v1090_v57 = vpop.f32.mrb[34].mxu1 }
 0xa28   :  { %v1412_v58 = vpop.f32.mrb[35].mxu1  ;;  %1101 = vrot.lane.b32.xlu0 %v1093_v55, %s1488_s18 }
 0xa9a   :  { %v1102_v61 = vpop.permute.xlu0 %1101 }
 0xa9b   :  { %v1111_v62 = vsel %vm1109_vm6, %v1108_v60, %v1102_v61 }
 0xa9c   :  { %1418 = vmatmul.mubr.msk.bf16.vlgmr.msra.gmra.mrb[36].mxu0 %vm102_vm1, %v1111_v62 }
 0xb6f   :  { %v1166_v2 = vpop.f32.mrb[36].mxu0 }
 0xb70   :  { %v1167_v3 = vadd.f32 %v1254_v63, %v1166_v2  ;;  %v1419_v4 = vpop.f32.mrb[37].mxu0 }
 0xb71   :  { %v1169_v8 = vpop.f32.mrb[38].mxu0 }
 0xb72   :  { %v1170_v14 = vadd.f32 %v1254_v63, %v1169_v8  ;;  %v1420_v19 = vpop.f32.mrb[39].mxu0  ;;  %v1173_v21 = vadd.f32 %v1167_v3, %v77_v1 }
 0xb74   :  { %v1175_v9 = vsel %vm102_vm1, %v1173_v21, 0.0  ;;  %v1174_v10 = vadd.f32 %v1170_v14, %v78_v6 }
 0xb75   :  { %1176 = vadd.xlane.f32.xlu1 %v1175_v9 }
 0xb76   :  { %v1178_v13 = vsel %vm102_vm1, %v1174_v10, 0.0 }
 0xb77   :  { %1179 = vadd.xlane.f32.xlu0 %v1178_v13 }
 0xc02   :  { %v1177_v16 = vpop.xlane.xlu1 %1176 }
 0xc03   :  { %v1182_v17 = vmul.f32 0.03125, %v1177_v16 }
 0xc04   :  { %v1180_v18 = vpop.xlane.xlu0 %1179 }
 0xc05   :  { %v1184_v22 = vsub.f32 %v1173_v21, %v1182_v17  ;;  %v1183_v23 = vmul.f32 0.03125, %v1180_v18 }
 0xc07   :  { %v1185_v24 = vsub.f32 %v1174_v10, %v1183_v23  ;;  %v1186_v26 = vmul.f32 %v1184_v22, %v1184_v22 }
 0xc09   :  { %v1188_v5 = vsel %vm102_vm1, %v1186_v26, 0.0  ;;  %v1187_v28 = vmul.f32 %v1185_v24, %v1185_v24 }
 0xc0a   :  { %1189 = vadd.xlane.f32.xlu0 %v1188_v5 }
 0xc0b   :  { %v1191_v29 = vsel %vm102_vm1, %v1187_v28, 0.0 }
 0xc0e   :  { %1192 = vadd.xlane.f32.xlu0 %v1191_v29 }
 0xc97   :  { %v1190_v30 = vpop.xlane.xlu0 %1189 }
 0xc98   :  { %v1194_v31 = vmul.f32 0.03125, %v1190_v30 }
 0xc9a   :  { %v1196_v36 = vadd.f32 1e-05, %v1194_v31 }
 0xc9b   :  { %v1193_v37 = vpop.xlane.xlu0 %1192 }
 0xc9c   :  { %1473 = vrsqrt.f32 %v1196_v36  ;;  %v1195_v32 = vmul.f32 0.03125, %v1193_v37 }
 0xc9e   :  { %v1197_v33 = vadd.f32 1e-05, %v1195_v32 }
 0xca0   :  { %1475 = vrsqrt.f32 %v1197_v33 }
 0xca6   :  { %v1474_v34 = vpop.eup %1473 }
 0xca7   :  { %v1200_v38 = vmul.f32 %v1474_v34, %v1184_v22 }
 0xca9   :  { %v1208_v20 = vmul.f32 %v1258_v35, %v1200_v38 }
 0xcaa   :  { %v1476_v40 = vpop.eup %1475 }
 0xcab   :  { %v1216_v41 = vadd.f32 %v1259_v39, %v1208_v20  ;;  %v1201_v7 = vmul.f32 %v1476_v40, %v1185_v24 }
 0xcad   :  { %v1218_v11 = vpack.c.bf16 %v1216_v41, %v1216_v41  ;;  %v1209_v12 = vmul.f32 %v1258_v35, %v1201_v7 }
 0xcaf   :  { %1221 = vst.msk [vmem:[%s1793_s10] sm:$0xf] %vm1220_vm7, %v1218_v11  ;;  %v1217_v42 = vadd.f32 %v1259_v39, %v1209_v12 }
 0xcb1   :  { %v1219_v43 = vpack.c.bf16 %v1217_v42, %v1217_v42 }
 0xcb3   :  { %1222 = vst.msk [vmem:[%s1793_s10 + $0x4] sm:$0xf] %vm1220_vm7, %v1219_v43 }

</bundles_post_ra>
